<compile_context>
chip_gen: v5e
topology: v5e:2x2
jax: 0.10.0
libtpu: 0.0.40
codegen_flags: <defaults>
</compile_context>

<pallas_src>
import math

import jax
import jax.numpy as jnp
from jax import lax
from jax.experimental import pallas as pl
from jax.experimental.pallas import tpu as pltpu


# ----------------------------- Pallas kernel --------------------------------


def _make_model_kernel(seq, batch, hidden, n_tags, n_layers):
    H = hidden

    def cell(gi, h, whh, bhh):
        # gi, gh: (batch, 3H), gate order [r | z | n] along lanes.
        gh = jnp.dot(h, whh, preferred_element_type=jnp.float32) + bhh
        r = jax.nn.sigmoid(gi[:, :H] + gh[:, :H])
        z = jax.nn.sigmoid(gi[:, H:2 * H] + gh[:, H:2 * H])
        n = jnp.tanh(gi[:, 2 * H:] + r * gh[:, 2 * H:])
        return (1.0 - z) * n + z * h

    def kernel(x_ref, *refs):
        nw = 6 * n_layers
        w_refs = refs[:nw]
        fc_w_ref = refs[nw]
        fc_b_ref = refs[nw + 1]
        out_ref = refs[nw + 2]
        act_scr = refs[nw + 3]            # (seq*batch, 2H) inter-layer activations

        act = x_ref[...]                  # (seq*batch, in_dim), rows = t*batch + b
        x0 = act[:batch, :]               # x[0] for the residual

        h_f_last = None
        h_b_last = None

        for l in range(n_layers):
            base = 6 * l
            wih = w_refs[base + 0][...]   # (in_dim, 6H)   [rzn_fwd | rzn_bwd]
            bih = w_refs[base + 1][...]   # (1, 6H)
            whh_f = w_refs[base + 2][...]
            bhh_f = w_refs[base + 3][...]
            whh_b = w_refs[base + 4][...]
            bhh_b = w_refs[base + 5][...]

            last = (l == n_layers - 1)

            # Hoisted input projection for BOTH directions: one lane-dense matmul.
            gi = jnp.dot(act, wih, preferred_element_type=jnp.float32) + bih

            # Forward recurrence (fully unrolled).
            h_f = jnp.zeros((batch, H), jnp.float32)
            for t in range(seq):
                h_f = cell(gi[t * batch:(t + 1) * batch, :3 * H], h_f, whh_f, bhh_f)
                if not last:
                    act_scr[t * batch:(t + 1) * batch, 0:H] = h_f

            if last:
                # outs[-1]'s backward half = one GRU cell on x[seq-1] with h0 = 0.
                h_b = cell(gi[(seq - 1) * batch:, 3 * H:],
                           jnp.zeros((batch, H), jnp.float32), whh_b, bhh_b)
                h_f_last = h_f
                h_b_last = h_b
            else:
                # Backward recurrence (fully unrolled, time-reversed).
                h_b = jnp.zeros((batch, H), jnp.float32)
                for t in range(seq - 1, -1, -1):
                    h_b = cell(gi[t * batch:(t + 1) * batch, 3 * H:],
                               h_b, whh_b, bhh_b)
                    act_scr[t * batch:(t + 1) * batch, H:2 * H] = h_b
                act = act_scr[...]        # next layer's input: (seq*batch, 2H)

        # Final fc + residual: x[0] + outs[-1] @ W_fc + b_fc
        fcw = fc_w_ref[...]
        out_ref[...] = (
            x0
            + jnp.dot(h_f_last, fcw[:H, :], preferred_element_type=jnp.float32)
            + jnp.dot(h_b_last, fcw[H:, :], preferred_element_type=jnp.float32)
            + fc_b_ref[...])

    return kernel


# ------------------------------- model glue ---------------------------------


def gru_model_forward(x, params):
    """x: (batch, seq, n_tags) -> (batch, n_tags). Mirrors the PyTorch module."""
    batch, seq, n_tags = x.shape
    n_layers = len(params["layers"])
    hidden = params["layers"][0]["fwd"][1].shape[0]          # w_hh: (H, 3H)

    # time-major, flattened to (seq*batch, n_tags) so all in-kernel matmuls are 2D
    xs2d = jnp.transpose(x, (1, 0, 2)).reshape(seq * batch, n_tags)

    flat = [xs2d]
    for lp in params["layers"]:
        w_ih_f, w_hh_f, b_ih_f, b_hh_f = lp["fwd"]
        w_ih_b, w_hh_b, b_ih_b, b_hh_b = lp["bwd"]
        flat += [
            jnp.concatenate([w_ih_f, w_ih_b], axis=1),   # (in, 6H)
            jnp.concatenate([b_ih_f, b_ih_b], axis=1),   # (1, 6H)
            w_hh_f, b_hh_f, w_hh_b, b_hh_b,
        ]
    flat += [params["fc_w"], params["fc_b"]]

    vmem = lambda: pl.BlockSpec(memory_space=pltpu.MemorySpace.VMEM)
    return pl.pallas_call(
        _make_model_kernel(seq, batch, hidden, n_tags, n_layers),
        out_shape=jax.ShapeDtypeStruct((batch, n_tags), jnp.float32),
        in_specs=[vmem() for _ in flat],
        out_specs=vmem(),
        scratch_shapes=[pltpu.VMEM((seq * batch, 2 * hidden), jnp.float32)],
    )(*flat)


def init_params(key, n_tags, n_hidden, n_layers):
    """PyTorch-like init; gate-stacked layout: W (in, 3H), b (1, 3H), order [r,z,n]."""
    def uni(k, shape, bound):
        return jax.random.uniform(k, shape, jnp.float32, -bound, bound)

    params = {"layers": []}
    bound = 1.0 / math.sqrt(n_hidden)
    keys = jax.random.split(key, n_layers * 2 * 4 + 2)
    idx = 0
    for layer in range(n_layers):
        in_dim = n_tags if layer == 0 else 2 * n_hidden
        lp = {}
        for d in ("fwd", "bwd"):
            w_ih = uni(keys[idx], (in_dim, 3 * n_hidden), bound); idx += 1
            w_hh = uni(keys[idx], (n_hidden, 3 * n_hidden), bound); idx += 1
            b_ih = uni(keys[idx], (1, 3 * n_hidden), bound); idx += 1
            b_hh = uni(keys[idx], (1, 3 * n_hidden), bound); idx += 1
            lp[d] = (w_ih, w_hh, b_ih, b_hh)
        params["layers"].append(lp)
    kf = 1.0 / math.sqrt(2 * n_hidden)
    params["fc_w"] = uni(keys[idx], (2 * n_hidden, n_tags), kf); idx += 1
    params["fc_b"] = uni(keys[idx], (1, n_tags), kf)
    return params


# ------------------------- pure-JAX reference check -------------------------


def _ref_direction(x_seq, w_ih, w_hh, b_ih, b_hh):
    H = w_hh.shape[0]

    def step(h, x_t):
        gi = x_t @ w_ih + b_ih
        gh = h @ w_hh + b_hh
        r = jax.nn.sigmoid(gi[:, :H] + gh[:, :H])
        z = jax.nn.sigmoid(gi[:, H:2 * H] + gh[:, H:2 * H])
        n = jnp.tanh(gi[:, 2 * H:] + r * gh[:, 2 * H:])
        h_new = (1.0 - z) * n + z * h
        return h_new, h_new

    h0 = jnp.zeros((x_seq.shape[1], H), jnp.float32)
    _, ys = lax.scan(step, h0, x_seq)
    return ys


def ref_forward(x, params):
    xs = jnp.transpose(x, (1, 0, 2))
    layer_in = xs
    for lp in params["layers"]:
        out_f = _ref_direction(layer_in, *lp["fwd"])
        out_b = jnp.flip(
            _ref_direction(jnp.flip(layer_in, axis=0), *lp["bwd"]), axis=0)
        layer_in = jnp.concatenate([out_f, out_b], axis=-1)
    return xs[0] + layer_in[-1] @ params["fc_w"] + params["fc_b"]


# ---------------------------------- main -------------------------------------


if __name__ == "__main__":
    n_tags, n_hidden, n_layers = 8, 32, 2
    batch, seq = 4, 8

    key = jax.random.PRNGKey(0)
    kx, kp = jax.random.split(key)
    x = jax.random.normal(kx, (batch, seq, n_tags), jnp.float32)
    params = init_params(kp, n_tags, n_hidden, n_layers)

    fwd = jax.jit(gru_model_forward)
    out = jax.block_until_ready(fwd(x, params))

    ref = jax.block_until_ready(ref_forward(x, params))
    assert out.shape == (batch, n_tags), out.shape
    if not jnp.allclose(out, ref, atol=1e-4, rtol=1e-4):
        raise AssertionError("Pallas GRU output mismatch vs pure-JAX reference")

    print("KERNEL_OK")
</pallas_src>

<mosaic_0001>
module attributes {stable_mosaic.version = 11 : i64} {
  func.func @kernel(%arg0: memref<32x8xf32, #tpu.memory_space<vmem>>, %arg1: memref<8x192xf32, #tpu.memory_space<vmem>>, %arg2: memref<1x192xf32, #tpu.memory_space<vmem>>, %arg3: memref<32x96xf32, #tpu.memory_space<vmem>>, %arg4: memref<1x96xf32, #tpu.memory_space<vmem>>, %arg5: memref<32x96xf32, #tpu.memory_space<vmem>>, %arg6: memref<1x96xf32, #tpu.memory_space<vmem>>, %arg7: memref<64x192xf32, #tpu.memory_space<vmem>>, %arg8: memref<1x192xf32, #tpu.memory_space<vmem>>, %arg9: memref<32x96xf32, #tpu.memory_space<vmem>>, %arg10: memref<1x96xf32, #tpu.memory_space<vmem>>, %arg11: memref<32x96xf32, #tpu.memory_space<vmem>>, %arg12: memref<1x96xf32, #tpu.memory_space<vmem>>, %arg13: memref<64x8xf32, #tpu.memory_space<vmem>>, %arg14: memref<1x8xf32, #tpu.memory_space<vmem>>, %arg15: memref<4x8xf32, #tpu.memory_space<vmem>>, %arg16: memref<32x64xf32, #tpu.memory_space<vmem>>) attributes {dimension_semantics = [], scalar_prefetch = 0 : i64, scratch_operands = 1 : i64, tpu.core_type = #tpu.core_type<tc>} {
    %c0 = arith.constant 0 : index
    %c0_0 = arith.constant 0 : index
    %0 = vector.load %arg0[%c0, %c0_0] : memref<32x8xf32, #tpu.memory_space<vmem>>, vector<32x8xf32>
    %1 = vector.extract_strided_slice %0 {offsets = [0, 0], sizes = [4, 8], strides = [1, 1]} : vector<32x8xf32> to vector<4x8xf32>
    %c0_1 = arith.constant 0 : index
    %c0_2 = arith.constant 0 : index
    %2 = vector.load %arg1[%c0_1, %c0_2] : memref<8x192xf32, #tpu.memory_space<vmem>>, vector<8x192xf32>
    %c0_3 = arith.constant 0 : index
    %c0_4 = arith.constant 0 : index
    %3 = vector.load %arg2[%c0_3, %c0_4] : memref<1x192xf32, #tpu.memory_space<vmem>>, vector<1x192xf32>
    %c0_5 = arith.constant 0 : index
    %c0_6 = arith.constant 0 : index
    %4 = vector.load %arg3[%c0_5, %c0_6] : memref<32x96xf32, #tpu.memory_space<vmem>>, vector<32x96xf32>
    %c0_7 = arith.constant 0 : index
    %c0_8 = arith.constant 0 : index
    %5 = vector.load %arg4[%c0_7, %c0_8] : memref<1x96xf32, #tpu.memory_space<vmem>>, vector<1x96xf32>
    %c0_9 = arith.constant 0 : index
    %c0_10 = arith.constant 0 : index
    %6 = vector.load %arg5[%c0_9, %c0_10] : memref<32x96xf32, #tpu.memory_space<vmem>>, vector<32x96xf32>
    %c0_11 = arith.constant 0 : index
    %c0_12 = arith.constant 0 : index
    %7 = vector.load %arg6[%c0_11, %c0_12] : memref<1x96xf32, #tpu.memory_space<vmem>>, vector<1x96xf32>
    %cst = arith.constant dense<0.000000e+00> : vector<32x192xf32>
    %8 = tpu.matmul %0, %2, %cst {dimension_numbers = #tpu.dot_dimension_numbers<[1], [0], [0], [1], [0, 0, 1, 1], [], []>} : vector<32x8xf32>, vector<8x192xf32>, vector<32x192xf32> -> vector<32x192xf32>
    %9 = vector.broadcast %3 : vector<1x192xf32> to vector<32x192xf32>
    %10 = arith.addf %8, %9 : vector<32x192xf32>
    %cst_13 = arith.constant 0.000000e+00 : f32
    %11 = vector.broadcast %cst_13 : f32 to vector<4x32xf32>
    %12 = vector.extract_strided_slice %10 {offsets = [0, 0], sizes = [4, 96], strides = [1, 1]} : vector<32x192xf32> to vector<4x96xf32>
    %cst_14 = arith.constant dense<0.000000e+00> : vector<4x96xf32>
    %13 = tpu.matmul %11, %4, %cst_14 {dimension_numbers = #tpu.dot_dimension_numbers<[1], [0], [0], [1], [0, 0, 1, 1], [], []>} : vector<4x32xf32>, vector<32x96xf32>, vector<4x96xf32> -> vector<4x96xf32>
    %14 = vector.broadcast %5 : vector<1x96xf32> to vector<4x96xf32>
    %15 = arith.addf %13, %14 : vector<4x96xf32>
    %16 = vector.extract_strided_slice %12 {offsets = [0, 0], sizes = [4, 32], strides = [1, 1]} : vector<4x96xf32> to vector<4x32xf32>
    %17 = vector.extract_strided_slice %15 {offsets = [0, 0], sizes = [4, 32], strides = [1, 1]} : vector<4x96xf32> to vector<4x32xf32>
    %18 = arith.addf %16, %17 : vector<4x32xf32>
    %19 = arith.negf %18 : vector<4x32xf32>
    %20 = math.exp %19 : vector<4x32xf32>
    %cst_15 = arith.constant 1.000000e+00 : f32
    %21 = vector.broadcast %cst_15 : f32 to vector<4x32xf32>
    %22 = arith.addf %21, %20 : vector<4x32xf32>
    %23 = arith.divf %21, %22 : vector<4x32xf32>
    %24 = vector.extract_strided_slice %12 {offsets = [0, 32], sizes = [4, 32], strides = [1, 1]} : vector<4x96xf32> to vector<4x32xf32>
    %25 = vector.extract_strided_slice %15 {offsets = [0, 32], sizes = [4, 32], strides = [1, 1]} : vector<4x96xf32> to vector<4x32xf32>
    %26 = arith.addf %24, %25 : vector<4x32xf32>
    %27 = arith.negf %26 : vector<4x32xf32>
    %28 = math.exp %27 : vector<4x32xf32>
    %cst_16 = arith.constant 1.000000e+00 : f32
    %29 = vector.broadcast %cst_16 : f32 to vector<4x32xf32>
    %30 = arith.addf %29, %28 : vector<4x32xf32>
    %31 = arith.divf %29, %30 : vector<4x32xf32>
    %32 = vector.extract_strided_slice %12 {offsets = [0, 64], sizes = [4, 32], strides = [1, 1]} : vector<4x96xf32> to vector<4x32xf32>
    %33 = vector.extract_strided_slice %15 {offsets = [0, 64], sizes = [4, 32], strides = [1, 1]} : vector<4x96xf32> to vector<4x32xf32>
    %34 = arith.mulf %23, %33 : vector<4x32xf32>
    %35 = arith.addf %32, %34 : vector<4x32xf32>
    %36 = math.tanh %35 : vector<4x32xf32>
    %cst_17 = arith.constant 1.000000e+00 : f32
    %37 = vector.broadcast %cst_17 : f32 to vector<4x32xf32>
    %38 = arith.subf %37, %31 : vector<4x32xf32>
    %39 = arith.mulf %38, %36 : vector<4x32xf32>
    %40 = arith.mulf %31, %11 : vector<4x32xf32>
    %41 = arith.addf %39, %40 : vector<4x32xf32>
    %c0_18 = arith.constant 0 : index
    %c0_19 = arith.constant 0 : index
    %42 = vector.load %arg16[%c0_18, %c0_19] : memref<32x64xf32, #tpu.memory_space<vmem>>, vector<4x32xf32>
    tpu.vector_store %arg16[%c0_18, %c0_19], %41 {strides = array<i32>} : memref<32x64xf32, #tpu.memory_space<vmem>>, vector<4x32xf32>,
    %43 = vector.extract_strided_slice %10 {offsets = [4, 0], sizes = [4, 96], strides = [1, 1]} : vector<32x192xf32> to vector<4x96xf32>
    %cst_20 = arith.constant dense<0.000000e+00> : vector<4x96xf32>
    %44 = tpu.matmul %41, %4, %cst_20 {dimension_numbers = #tpu.dot_dimension_numbers<[1], [0], [0], [1], [0, 0, 1, 1], [], []>} : vector<4x32xf32>, vector<32x96xf32>, vector<4x96xf32> -> vector<4x96xf32>
    %45 = vector.broadcast %5 : vector<1x96xf32> to vector<4x96xf32>
    %46 = arith.addf %44, %45 : vector<4x96xf32>
    %47 = vector.extract_strided_slice %43 {offsets = [0, 0], sizes = [4, 32], strides = [1, 1]} : vector<4x96xf32> to vector<4x32xf32>
    %48 = vector.extract_strided_slice %46 {offsets = [0, 0], sizes = [4, 32], strides = [1, 1]} : vector<4x96xf32> to vector<4x32xf32>
    %49 = arith.addf %47, %48 : vector<4x32xf32>
    %50 = arith.negf %49 : vector<4x32xf32>
    %51 = math.exp %50 : vector<4x32xf32>
    %cst_21 = arith.constant 1.000000e+00 : f32
    %52 = vector.broadcast %cst_21 : f32 to vector<4x32xf32>
    %53 = arith.addf %52, %51 : vector<4x32xf32>
    %54 = arith.divf %52, %53 : vector<4x32xf32>
    %55 = vector.extract_strided_slice %43 {offsets = [0, 32], sizes = [4, 32], strides = [1, 1]} : vector<4x96xf32> to vector<4x32xf32>
    %56 = vector.extract_strided_slice %46 {offsets = [0, 32], sizes = [4, 32], strides = [1, 1]} : vector<4x96xf32> to vector<4x32xf32>
    %57 = arith.addf %55, %56 : vector<4x32xf32>
    %58 = arith.negf %57 : vector<4x32xf32>
    %59 = math.exp %58 : vector<4x32xf32>
    %cst_22 = arith.constant 1.000000e+00 : f32
    %60 = vector.broadcast %cst_22 : f32 to vector<4x32xf32>
    %61 = arith.addf %60, %59 : vector<4x32xf32>
    %62 = arith.divf %60, %61 : vector<4x32xf32>
    %63 = vector.extract_strided_slice %43 {offsets = [0, 64], sizes = [4, 32], strides = [1, 1]} : vector<4x96xf32> to vector<4x32xf32>
    %64 = vector.extract_strided_slice %46 {offsets = [0, 64], sizes = [4, 32], strides = [1, 1]} : vector<4x96xf32> to vector<4x32xf32>
    %65 = arith.mulf %54, %64 : vector<4x32xf32>
    %66 = arith.addf %63, %65 : vector<4x32xf32>
    %67 = math.tanh %66 : vector<4x32xf32>
    %cst_23 = arith.constant 1.000000e+00 : f32
    %68 = vector.broadcast %cst_23 : f32 to vector<4x32xf32>
    %69 = arith.subf %68, %62 : vector<4x32xf32>
    %70 = arith.mulf %69, %67 : vector<4x32xf32>
    %71 = arith.mulf %62, %41 : vector<4x32xf32>
    %72 = arith.addf %70, %71 : vector<4x32xf32>
    %c4 = arith.constant 4 : index
    %c0_24 = arith.constant 0 : index
    %73 = vector.load %arg16[%c4, %c0_24] : memref<32x64xf32, #tpu.memory_space<vmem>>, vector<4x32xf32>
    tpu.vector_store %arg16[%c4, %c0_24], %72 {strides = array<i32>} : memref<32x64xf32, #tpu.memory_space<vmem>>, vector<4x32xf32>,
    %74 = vector.extract_strided_slice %10 {offsets = [8, 0], sizes = [4, 96], strides = [1, 1]} : vector<32x192xf32> to vector<4x96xf32>
    %cst_25 = arith.constant dense<0.000000e+00> : vector<4x96xf32>
    %75 = tpu.matmul %72, %4, %cst_25 {dimension_numbers = #tpu.dot_dimension_numbers<[1], [0], [0], [1], [0, 0, 1, 1], [], []>} : vector<4x32xf32>, vector<32x96xf32>, vector<4x96xf32> -> vector<4x96xf32>
    %76 = vector.broadcast %5 : vector<1x96xf32> to vector<4x96xf32>
    %77 = arith.addf %75, %76 : vector<4x96xf32>
    %78 = vector.extract_strided_slice %74 {offsets = [0, 0], sizes = [4, 32], strides = [1, 1]} : vector<4x96xf32> to vector<4x32xf32>
    %79 = vector.extract_strided_slice %77 {offsets = [0, 0], sizes = [4, 32], strides = [1, 1]} : vector<4x96xf32> to vector<4x32xf32>
    %80 = arith.addf %78, %79 : vector<4x32xf32>
    %81 = arith.negf %80 : vector<4x32xf32>
    %82 = math.exp %81 : vector<4x32xf32>
    %cst_26 = arith.constant 1.000000e+00 : f32
    %83 = vector.broadcast %cst_26 : f32 to vector<4x32xf32>
    %84 = arith.addf %83, %82 : vector<4x32xf32>
    %85 = arith.divf %83, %84 : vector<4x32xf32>
    %86 = vector.extract_strided_slice %74 {offsets = [0, 32], sizes = [4, 32], strides = [1, 1]} : vector<4x96xf32> to vector<4x32xf32>
    %87 = vector.extract_strided_slice %77 {offsets = [0, 32], sizes = [4, 32], strides = [1, 1]} : vector<4x96xf32> to vector<4x32xf32>
    %88 = arith.addf %86, %87 : vector<4x32xf32>
    %89 = arith.negf %88 : vector<4x32xf32>
    %90 = math.exp %89 : vector<4x32xf32>
    %cst_27 = arith.constant 1.000000e+00 : f32
    %91 = vector.broadcast %cst_27 : f32 to vector<4x32xf32>
    %92 = arith.addf %91, %90 : vector<4x32xf32>
    %93 = arith.divf %91, %92 : vector<4x32xf32>
    %94 = vector.extract_strided_slice %74 {offsets = [0, 64], sizes = [4, 32], strides = [1, 1]} : vector<4x96xf32> to vector<4x32xf32>
    %95 = vector.extract_strided_slice %77 {offsets = [0, 64], sizes = [4, 32], strides = [1, 1]} : vector<4x96xf32> to vector<4x32xf32>
    %96 = arith.mulf %85, %95 : vector<4x32xf32>
    %97 = arith.addf %94, %96 : vector<4x32xf32>
    %98 = math.tanh %97 : vector<4x32xf32>
    %cst_28 = arith.constant 1.000000e+00 : f32
    %99 = vector.broadcast %cst_28 : f32 to vector<4x32xf32>
    %100 = arith.subf %99, %93 : vector<4x32xf32>
    %101 = arith.mulf %100, %98 : vector<4x32xf32>
    %102 = arith.mulf %93, %72 : vector<4x32xf32>
    %103 = arith.addf %101, %102 : vector<4x32xf32>
    %c8 = arith.constant 8 : index
    %c0_29 = arith.constant 0 : index
    %104 = vector.load %arg16[%c8, %c0_29] : memref<32x64xf32, #tpu.memory_space<vmem>>, vector<4x32xf32>
    tpu.vector_store %arg16[%c8, %c0_29], %103 {strides = array<i32>} : memref<32x64xf32, #tpu.memory_space<vmem>>, vector<4x32xf32>,
    %105 = vector.extract_strided_slice %10 {offsets = [12, 0], sizes = [4, 96], strides = [1, 1]} : vector<32x192xf32> to vector<4x96xf32>
    %cst_30 = arith.constant dense<0.000000e+00> : vector<4x96xf32>
    %106 = tpu.matmul %103, %4, %cst_30 {dimension_numbers = #tpu.dot_dimension_numbers<[1], [0], [0], [1], [0, 0, 1, 1], [], []>} : vector<4x32xf32>, vector<32x96xf32>, vector<4x96xf32> -> vector<4x96xf32>
    %107 = vector.broadcast %5 : vector<1x96xf32> to vector<4x96xf32>
    %108 = arith.addf %106, %107 : vector<4x96xf32>
    %109 = vector.extract_strided_slice %105 {offsets = [0, 0], sizes = [4, 32], strides = [1, 1]} : vector<4x96xf32> to vector<4x32xf32>
    %110 = vector.extract_strided_slice %108 {offsets = [0, 0], sizes = [4, 32], strides = [1, 1]} : vector<4x96xf32> to vector<4x32xf32>
    %111 = arith.addf %109, %110 : vector<4x32xf32>
    %112 = arith.negf %111 : vector<4x32xf32>
    %113 = math.exp %112 : vector<4x32xf32>
    %cst_31 = arith.constant 1.000000e+00 : f32
    %114 = vector.broadcast %cst_31 : f32 to vector<4x32xf32>
    %115 = arith.addf %114, %113 : vector<4x32xf32>
    %116 = arith.divf %114, %115 : vector<4x32xf32>
    %117 = vector.extract_strided_slice %105 {offsets = [0, 32], sizes = [4, 32], strides = [1, 1]} : vector<4x96xf32> to vector<4x32xf32>
    %118 = vector.extract_strided_slice %108 {offsets = [0, 32], sizes = [4, 32], strides = [1, 1]} : vector<4x96xf32> to vector<4x32xf32>
    %119 = arith.addf %117, %118 : vector<4x32xf32>
    %120 = arith.negf %119 : vector<4x32xf32>
    %121 = math.exp %120 : vector<4x32xf32>
    %cst_32 = arith.constant 1.000000e+00 : f32
    %122 = vector.broadcast %cst_32 : f32 to vector<4x32xf32>
    %123 = arith.addf %122, %121 : vector<4x32xf32>
    %124 = arith.divf %122, %123 : vector<4x32xf32>
    %125 = vector.extract_strided_slice %105 {offsets = [0, 64], sizes = [4, 32], strides = [1, 1]} : vector<4x96xf32> to vector<4x32xf32>
    %126 = vector.extract_strided_slice %108 {offsets = [0, 64], sizes = [4, 32], strides = [1, 1]} : vector<4x96xf32> to vector<4x32xf32>
    %127 = arith.mulf %116, %126 : vector<4x32xf32>
    %128 = arith.addf %125, %127 : vector<4x32xf32>
    %129 = math.tanh %128 : vector<4x32xf32>
    %cst_33 = arith.constant 1.000000e+00 : f32
    %130 = vector.broadcast %cst_33 : f32 to vector<4x32xf32>
    %131 = arith.subf %130, %124 : vector<4x32xf32>
    %132 = arith.mulf %131, %129 : vector<4x32xf32>
    %133 = arith.mulf %124, %103 : vector<4x32xf32>
    %134 = arith.addf %132, %133 : vector<4x32xf32>
    %c12 = arith.constant 12 : index
    %c0_34 = arith.constant 0 : index
    %135 = vector.load %arg16[%c12, %c0_34] : memref<32x64xf32, #tpu.memory_space<vmem>>, vector<4x32xf32>
    tpu.vector_store %arg16[%c12, %c0_34], %134 {strides = array<i32>} : memref<32x64xf32, #tpu.memory_space<vmem>>, vector<4x32xf32>,
    %136 = vector.extract_strided_slice %10 {offsets = [16, 0], sizes = [4, 96], strides = [1, 1]} : vector<32x192xf32> to vector<4x96xf32>
    %cst_35 = arith.constant dense<0.000000e+00> : vector<4x96xf32>
    %137 = tpu.matmul %134, %4, %cst_35 {dimension_numbers = #tpu.dot_dimension_numbers<[1], [0], [0], [1], [0, 0, 1, 1], [], []>} : vector<4x32xf32>, vector<32x96xf32>, vector<4x96xf32> -> vector<4x96xf32>
    %138 = vector.broadcast %5 : vector<1x96xf32> to vector<4x96xf32>
    %139 = arith.addf %137, %138 : vector<4x96xf32>
    %140 = vector.extract_strided_slice %136 {offsets = [0, 0], sizes = [4, 32], strides = [1, 1]} : vector<4x96xf32> to vector<4x32xf32>
    %141 = vector.extract_strided_slice %139 {offsets = [0, 0], sizes = [4, 32], strides = [1, 1]} : vector<4x96xf32> to vector<4x32xf32>
    %142 = arith.addf %140, %141 : vector<4x32xf32>
    %143 = arith.negf %142 : vector<4x32xf32>
    %144 = math.exp %143 : vector<4x32xf32>
    %cst_36 = arith.constant 1.000000e+00 : f32
    %145 = vector.broadcast %cst_36 : f32 to vector<4x32xf32>
    %146 = arith.addf %145, %144 : vector<4x32xf32>
    %147 = arith.divf %145, %146 : vector<4x32xf32>
    %148 = vector.extract_strided_slice %136 {offsets = [0, 32], sizes = [4, 32], strides = [1, 1]} : vector<4x96xf32> to vector<4x32xf32>
    %149 = vector.extract_strided_slice %139 {offsets = [0, 32], sizes = [4, 32], strides = [1, 1]} : vector<4x96xf32> to vector<4x32xf32>
    %150 = arith.addf %148, %149 : vector<4x32xf32>
    %151 = arith.negf %150 : vector<4x32xf32>
    %152 = math.exp %151 : vector<4x32xf32>
    %cst_37 = arith.constant 1.000000e+00 : f32
    %153 = vector.broadcast %cst_37 : f32 to vector<4x32xf32>
    %154 = arith.addf %153, %152 : vector<4x32xf32>
    %155 = arith.divf %153, %154 : vector<4x32xf32>
    %156 = vector.extract_strided_slice %136 {offsets = [0, 64], sizes = [4, 32], strides = [1, 1]} : vector<4x96xf32> to vector<4x32xf32>
    %157 = vector.extract_strided_slice %139 {offsets = [0, 64], sizes = [4, 32], strides = [1, 1]} : vector<4x96xf32> to vector<4x32xf32>
    %158 = arith.mulf %147, %157 : vector<4x32xf32>
    %159 = arith.addf %156, %158 : vector<4x32xf32>
    %160 = math.tanh %159 : vector<4x32xf32>
    %cst_38 = arith.constant 1.000000e+00 : f32
    %161 = vector.broadcast %cst_38 : f32 to vector<4x32xf32>
    %162 = arith.subf %161, %155 : vector<4x32xf32>
    %163 = arith.mulf %162, %160 : vector<4x32xf32>
    %164 = arith.mulf %155, %134 : vector<4x32xf32>
    %165 = arith.addf %163, %164 : vector<4x32xf32>
    %c16 = arith.constant 16 : index
    %c0_39 = arith.constant 0 : index
    %166 = vector.load %arg16[%c16, %c0_39] : memref<32x64xf32, #tpu.memory_space<vmem>>, vector<4x32xf32>
    tpu.vector_store %arg16[%c16, %c0_39], %165 {strides = array<i32>} : memref<32x64xf32, #tpu.memory_space<vmem>>, vector<4x32xf32>,
    %167 = vector.extract_strided_slice %10 {offsets = [20, 0], sizes = [4, 96], strides = [1, 1]} : vector<32x192xf32> to vector<4x96xf32>
    %cst_40 = arith.constant dense<0.000000e+00> : vector<4x96xf32>
    %168 = tpu.matmul %165, %4, %cst_40 {dimension_numbers = #tpu.dot_dimension_numbers<[1], [0], [0], [1], [0, 0, 1, 1], [], []>} : vector<4x32xf32>, vector<32x96xf32>, vector<4x96xf32> -> vector<4x96xf32>
    %169 = vector.broadcast %5 : vector<1x96xf32> to vector<4x96xf32>
    %170 = arith.addf %168, %169 : vector<4x96xf32>
    %171 = vector.extract_strided_slice %167 {offsets = [0, 0], sizes = [4, 32], strides = [1, 1]} : vector<4x96xf32> to vector<4x32xf32>
    %172 = vector.extract_strided_slice %170 {offsets = [0, 0], sizes = [4, 32], strides = [1, 1]} : vector<4x96xf32> to vector<4x32xf32>
    %173 = arith.addf %171, %172 : vector<4x32xf32>
    %174 = arith.negf %173 : vector<4x32xf32>
    %175 = math.exp %174 : vector<4x32xf32>
    %cst_41 = arith.constant 1.000000e+00 : f32
    %176 = vector.broadcast %cst_41 : f32 to vector<4x32xf32>
    %177 = arith.addf %176, %175 : vector<4x32xf32>
    %178 = arith.divf %176, %177 : vector<4x32xf32>
    %179 = vector.extract_strided_slice %167 {offsets = [0, 32], sizes = [4, 32], strides = [1, 1]} : vector<4x96xf32> to vector<4x32xf32>
    %180 = vector.extract_strided_slice %170 {offsets = [0, 32], sizes = [4, 32], strides = [1, 1]} : vector<4x96xf32> to vector<4x32xf32>
    %181 = arith.addf %179, %180 : vector<4x32xf32>
    %182 = arith.negf %181 : vector<4x32xf32>
    %183 = math.exp %182 : vector<4x32xf32>
    %cst_42 = arith.constant 1.000000e+00 : f32
    %184 = vector.broadcast %cst_42 : f32 to vector<4x32xf32>
    %185 = arith.addf %184, %183 : vector<4x32xf32>
    %186 = arith.divf %184, %185 : vector<4x32xf32>
    %187 = vector.extract_strided_slice %167 {offsets = [0, 64], sizes = [4, 32], strides = [1, 1]} : vector<4x96xf32> to vector<4x32xf32>
    %188 = vector.extract_strided_slice %170 {offsets = [0, 64], sizes = [4, 32], strides = [1, 1]} : vector<4x96xf32> to vector<4x32xf32>
    %189 = arith.mulf %178, %188 : vector<4x32xf32>
    %190 = arith.addf %187, %189 : vector<4x32xf32>
    %191 = math.tanh %190 : vector<4x32xf32>
    %cst_43 = arith.constant 1.000000e+00 : f32
    %192 = vector.broadcast %cst_43 : f32 to vector<4x32xf32>
    %193 = arith.subf %192, %186 : vector<4x32xf32>
    %194 = arith.mulf %193, %191 : vector<4x32xf32>
    %195 = arith.mulf %186, %165 : vector<4x32xf32>
    %196 = arith.addf %194, %195 : vector<4x32xf32>
    %c20 = arith.constant 20 : index
    %c0_44 = arith.constant 0 : index
    %197 = vector.load %arg16[%c20, %c0_44] : memref<32x64xf32, #tpu.memory_space<vmem>>, vector<4x32xf32>
    tpu.vector_store %arg16[%c20, %c0_44], %196 {strides = array<i32>} : memref<32x64xf32, #tpu.memory_space<vmem>>, vector<4x32xf32>,
    %198 = vector.extract_strided_slice %10 {offsets = [24, 0], sizes = [4, 96], strides = [1, 1]} : vector<32x192xf32> to vector<4x96xf32>
    %cst_45 = arith.constant dense<0.000000e+00> : vector<4x96xf32>
    %199 = tpu.matmul %196, %4, %cst_45 {dimension_numbers = #tpu.dot_dimension_numbers<[1], [0], [0], [1], [0, 0, 1, 1], [], []>} : vector<4x32xf32>, vector<32x96xf32>, vector<4x96xf32> -> vector<4x96xf32>
    %200 = vector.broadcast %5 : vector<1x96xf32> to vector<4x96xf32>
    %201 = arith.addf %199, %200 : vector<4x96xf32>
    %202 = vector.extract_strided_slice %198 {offsets = [0, 0], sizes = [4, 32], strides = [1, 1]} : vector<4x96xf32> to vector<4x32xf32>
    %203 = vector.extract_strided_slice %201 {offsets = [0, 0], sizes = [4, 32], strides = [1, 1]} : vector<4x96xf32> to vector<4x32xf32>
    %204 = arith.addf %202, %203 : vector<4x32xf32>
    %205 = arith.negf %204 : vector<4x32xf32>
    %206 = math.exp %205 : vector<4x32xf32>
    %cst_46 = arith.constant 1.000000e+00 : f32
    %207 = vector.broadcast %cst_46 : f32 to vector<4x32xf32>
    %208 = arith.addf %207, %206 : vector<4x32xf32>
    %209 = arith.divf %207, %208 : vector<4x32xf32>
    %210 = vector.extract_strided_slice %198 {offsets = [0, 32], sizes = [4, 32], strides = [1, 1]} : vector<4x96xf32> to vector<4x32xf32>
    %211 = vector.extract_strided_slice %201 {offsets = [0, 32], sizes = [4, 32], strides = [1, 1]} : vector<4x96xf32> to vector<4x32xf32>
    %212 = arith.addf %210, %211 : vector<4x32xf32>
    %213 = arith.negf %212 : vector<4x32xf32>
    %214 = math.exp %213 : vector<4x32xf32>
    %cst_47 = arith.constant 1.000000e+00 : f32
    %215 = vector.broadcast %cst_47 : f32 to vector<4x32xf32>
    %216 = arith.addf %215, %214 : vector<4x32xf32>
    %217 = arith.divf %215, %216 : vector<4x32xf32>
    %218 = vector.extract_strided_slice %198 {offsets = [0, 64], sizes = [4, 32], strides = [1, 1]} : vector<4x96xf32> to vector<4x32xf32>
    %219 = vector.extract_strided_slice %201 {offsets = [0, 64], sizes = [4, 32], strides = [1, 1]} : vector<4x96xf32> to vector<4x32xf32>
    %220 = arith.mulf %209, %219 : vector<4x32xf32>
    %221 = arith.addf %218, %220 : vector<4x32xf32>
    %222 = math.tanh %221 : vector<4x32xf32>
    %cst_48 = arith.constant 1.000000e+00 : f32
    %223 = vector.broadcast %cst_48 : f32 to vector<4x32xf32>
    %224 = arith.subf %223, %217 : vector<4x32xf32>
    %225 = arith.mulf %224, %222 : vector<4x32xf32>
    %226 = arith.mulf %217, %196 : vector<4x32xf32>
    %227 = arith.addf %225, %226 : vector<4x32xf32>
    %c24 = arith.constant 24 : index
    %c0_49 = arith.constant 0 : index
    %228 = vector.load %arg16[%c24, %c0_49] : memref<32x64xf32, #tpu.memory_space<vmem>>, vector<4x32xf32>
    tpu.vector_store %arg16[%c24, %c0_49], %227 {strides = array<i32>} : memref<32x64xf32, #tpu.memory_space<vmem>>, vector<4x32xf32>,
    %229 = vector.extract_strided_slice %10 {offsets = [28, 0], sizes = [4, 96], strides = [1, 1]} : vector<32x192xf32> to vector<4x96xf32>
    %cst_50 = arith.constant dense<0.000000e+00> : vector<4x96xf32>
    %230 = tpu.matmul %227, %4, %cst_50 {dimension_numbers = #tpu.dot_dimension_numbers<[1], [0], [0], [1], [0, 0, 1, 1], [], []>} : vector<4x32xf32>, vector<32x96xf32>, vector<4x96xf32> -> vector<4x96xf32>
    %231 = vector.broadcast %5 : vector<1x96xf32> to vector<4x96xf32>
    %232 = arith.addf %230, %231 : vector<4x96xf32>
    %233 = vector.extract_strided_slice %229 {offsets = [0, 0], sizes = [4, 32], strides = [1, 1]} : vector<4x96xf32> to vector<4x32xf32>
    %234 = vector.extract_strided_slice %232 {offsets = [0, 0], sizes = [4, 32], strides = [1, 1]} : vector<4x96xf32> to vector<4x32xf32>
    %235 = arith.addf %233, %234 : vector<4x32xf32>
    %236 = arith.negf %235 : vector<4x32xf32>
    %237 = math.exp %236 : vector<4x32xf32>
    %cst_51 = arith.constant 1.000000e+00 : f32
    %238 = vector.broadcast %cst_51 : f32 to vector<4x32xf32>
    %239 = arith.addf %238, %237 : vector<4x32xf32>
    %240 = arith.divf %238, %239 : vector<4x32xf32>
    %241 = vector.extract_strided_slice %229 {offsets = [0, 32], sizes = [4, 32], strides = [1, 1]} : vector<4x96xf32> to vector<4x32xf32>
    %242 = vector.extract_strided_slice %232 {offsets = [0, 32], sizes = [4, 32], strides = [1, 1]} : vector<4x96xf32> to vector<4x32xf32>
    %243 = arith.addf %241, %242 : vector<4x32xf32>
    %244 = arith.negf %243 : vector<4x32xf32>
    %245 = math.exp %244 : vector<4x32xf32>
    %cst_52 = arith.constant 1.000000e+00 : f32
    %246 = vector.broadcast %cst_52 : f32 to vector<4x32xf32>
    %247 = arith.addf %246, %245 : vector<4x32xf32>
    %248 = arith.divf %246, %247 : vector<4x32xf32>
    %249 = vector.extract_strided_slice %229 {offsets = [0, 64], sizes = [4, 32], strides = [1, 1]} : vector<4x96xf32> to vector<4x32xf32>
    %250 = vector.extract_strided_slice %232 {offsets = [0, 64], sizes = [4, 32], strides = [1, 1]} : vector<4x96xf32> to vector<4x32xf32>
    %251 = arith.mulf %240, %250 : vector<4x32xf32>
    %252 = arith.addf %249, %251 : vector<4x32xf32>
    %253 = math.tanh %252 : vector<4x32xf32>
    %cst_53 = arith.constant 1.000000e+00 : f32
    %254 = vector.broadcast %cst_53 : f32 to vector<4x32xf32>
    %255 = arith.subf %254, %248 : vector<4x32xf32>
    %256 = arith.mulf %255, %253 : vector<4x32xf32>
    %257 = arith.mulf %248, %227 : vector<4x32xf32>
    %258 = arith.addf %256, %257 : vector<4x32xf32>
    %c28 = arith.constant 28 : index
    %c0_54 = arith.constant 0 : index
    %259 = vector.load %arg16[%c28, %c0_54] : memref<32x64xf32, #tpu.memory_space<vmem>>, vector<4x32xf32>
    tpu.vector_store %arg16[%c28, %c0_54], %258 {strides = array<i32>} : memref<32x64xf32, #tpu.memory_space<vmem>>, vector<4x32xf32>,
    %cst_55 = arith.constant 0.000000e+00 : f32
    %260 = vector.broadcast %cst_55 : f32 to vector<4x32xf32>
    %261 = vector.extract_strided_slice %10 {offsets = [28, 96], sizes = [4, 96], strides = [1, 1]} : vector<32x192xf32> to vector<4x96xf32>
    %cst_56 = arith.constant dense<0.000000e+00> : vector<4x96xf32>
    %262 = tpu.matmul %260, %6, %cst_56 {dimension_numbers = #tpu.dot_dimension_numbers<[1], [0], [0], [1], [0, 0, 1, 1], [], []>} : vector<4x32xf32>, vector<32x96xf32>, vector<4x96xf32> -> vector<4x96xf32>
    %263 = vector.broadcast %7 : vector<1x96xf32> to vector<4x96xf32>
    %264 = arith.addf %262, %263 : vector<4x96xf32>
    %265 = vector.extract_strided_slice %261 {offsets = [0, 0], sizes = [4, 32], strides = [1, 1]} : vector<4x96xf32> to vector<4x32xf32>
    %266 = vector.extract_strided_slice %264 {offsets = [0, 0], sizes = [4, 32], strides = [1, 1]} : vector<4x96xf32> to vector<4x32xf32>
    %267 = arith.addf %265, %266 : vector<4x32xf32>
    %268 = arith.negf %267 : vector<4x32xf32>
    %269 = math.exp %268 : vector<4x32xf32>
    %cst_57 = arith.constant 1.000000e+00 : f32
    %270 = vector.broadcast %cst_57 : f32 to vector<4x32xf32>
    %271 = arith.addf %270, %269 : vector<4x32xf32>
    %272 = arith.divf %270, %271 : vector<4x32xf32>
    %273 = vector.extract_strided_slice %261 {offsets = [0, 32], sizes = [4, 32], strides = [1, 1]} : vector<4x96xf32> to vector<4x32xf32>
    %274 = vector.extract_strided_slice %264 {offsets = [0, 32], sizes = [4, 32], strides = [1, 1]} : vector<4x96xf32> to vector<4x32xf32>
    %275 = arith.addf %273, %274 : vector<4x32xf32>
    %276 = arith.negf %275 : vector<4x32xf32>
    %277 = math.exp %276 : vector<4x32xf32>
    %cst_58 = arith.constant 1.000000e+00 : f32
    %278 = vector.broadcast %cst_58 : f32 to vector<4x32xf32>
    %279 = arith.addf %278, %277 : vector<4x32xf32>
    %280 = arith.divf %278, %279 : vector<4x32xf32>
    %281 = vector.extract_strided_slice %261 {offsets = [0, 64], sizes = [4, 32], strides = [1, 1]} : vector<4x96xf32> to vector<4x32xf32>
    %282 = vector.extract_strided_slice %264 {offsets = [0, 64], sizes = [4, 32], strides = [1, 1]} : vector<4x96xf32> to vector<4x32xf32>
    %283 = arith.mulf %272, %282 : vector<4x32xf32>
    %284 = arith.addf %281, %283 : vector<4x32xf32>
    %285 = math.tanh %284 : vector<4x32xf32>
    %cst_59 = arith.constant 1.000000e+00 : f32
    %286 = vector.broadcast %cst_59 : f32 to vector<4x32xf32>
    %287 = arith.subf %286, %280 : vector<4x32xf32>
    %288 = arith.mulf %287, %285 : vector<4x32xf32>
    %289 = arith.mulf %280, %260 : vector<4x32xf32>
    %290 = arith.addf %288, %289 : vector<4x32xf32>
    %c28_60 = arith.constant 28 : index
    %c32 = arith.constant 32 : index
    %291 = vector.load %arg16[%c28_60, %c32] : memref<32x64xf32, #tpu.memory_space<vmem>>, vector<4x32xf32>
    tpu.vector_store %arg16[%c28_60, %c32], %290 {strides = array<i32>} : memref<32x64xf32, #tpu.memory_space<vmem>>, vector<4x32xf32>,
    %292 = vector.extract_strided_slice %10 {offsets = [24, 96], sizes = [4, 96], strides = [1, 1]} : vector<32x192xf32> to vector<4x96xf32>
    %cst_61 = arith.constant dense<0.000000e+00> : vector<4x96xf32>
    %293 = tpu.matmul %290, %6, %cst_61 {dimension_numbers = #tpu.dot_dimension_numbers<[1], [0], [0], [1], [0, 0, 1, 1], [], []>} : vector<4x32xf32>, vector<32x96xf32>, vector<4x96xf32> -> vector<4x96xf32>
    %294 = vector.broadcast %7 : vector<1x96xf32> to vector<4x96xf32>
    %295 = arith.addf %293, %294 : vector<4x96xf32>
    %296 = vector.extract_strided_slice %292 {offsets = [0, 0], sizes = [4, 32], strides = [1, 1]} : vector<4x96xf32> to vector<4x32xf32>
    %297 = vector.extract_strided_slice %295 {offsets = [0, 0], sizes = [4, 32], strides = [1, 1]} : vector<4x96xf32> to vector<4x32xf32>
    %298 = arith.addf %296, %297 : vector<4x32xf32>
    %299 = arith.negf %298 : vector<4x32xf32>
    %300 = math.exp %299 : vector<4x32xf32>
    %cst_62 = arith.constant 1.000000e+00 : f32
    %301 = vector.broadcast %cst_62 : f32 to vector<4x32xf32>
    %302 = arith.addf %301, %300 : vector<4x32xf32>
    %303 = arith.divf %301, %302 : vector<4x32xf32>
    %304 = vector.extract_strided_slice %292 {offsets = [0, 32], sizes = [4, 32], strides = [1, 1]} : vector<4x96xf32> to vector<4x32xf32>
    %305 = vector.extract_strided_slice %295 {offsets = [0, 32], sizes = [4, 32], strides = [1, 1]} : vector<4x96xf32> to vector<4x32xf32>
    %306 = arith.addf %304, %305 : vector<4x32xf32>
    %307 = arith.negf %306 : vector<4x32xf32>
    %308 = math.exp %307 : vector<4x32xf32>
    %cst_63 = arith.constant 1.000000e+00 : f32
    %309 = vector.broadcast %cst_63 : f32 to vector<4x32xf32>
    %310 = arith.addf %309, %308 : vector<4x32xf32>
    %311 = arith.divf %309, %310 : vector<4x32xf32>
    %312 = vector.extract_strided_slice %292 {offsets = [0, 64], sizes = [4, 32], strides = [1, 1]} : vector<4x96xf32> to vector<4x32xf32>
    %313 = vector.extract_strided_slice %295 {offsets = [0, 64], sizes = [4, 32], strides = [1, 1]} : vector<4x96xf32> to vector<4x32xf32>
    %314 = arith.mulf %303, %313 : vector<4x32xf32>
    %315 = arith.addf %312, %314 : vector<4x32xf32>
    %316 = math.tanh %315 : vector<4x32xf32>
    %cst_64 = arith.constant 1.000000e+00 : f32
    %317 = vector.broadcast %cst_64 : f32 to vector<4x32xf32>
    %318 = arith.subf %317, %311 : vector<4x32xf32>
    %319 = arith.mulf %318, %316 : vector<4x32xf32>
    %320 = arith.mulf %311, %290 : vector<4x32xf32>
    %321 = arith.addf %319, %320 : vector<4x32xf32>
    %c24_65 = arith.constant 24 : index
    %c32_66 = arith.constant 32 : index
    %322 = vector.load %arg16[%c24_65, %c32_66] : memref<32x64xf32, #tpu.memory_space<vmem>>, vector<4x32xf32>
    tpu.vector_store %arg16[%c24_65, %c32_66], %321 {strides = array<i32>} : memref<32x64xf32, #tpu.memory_space<vmem>>, vector<4x32xf32>,
    %323 = vector.extract_strided_slice %10 {offsets = [20, 96], sizes = [4, 96], strides = [1, 1]} : vector<32x192xf32> to vector<4x96xf32>
    %cst_67 = arith.constant dense<0.000000e+00> : vector<4x96xf32>
    %324 = tpu.matmul %321, %6, %cst_67 {dimension_numbers = #tpu.dot_dimension_numbers<[1], [0], [0], [1], [0, 0, 1, 1], [], []>} : vector<4x32xf32>, vector<32x96xf32>, vector<4x96xf32> -> vector<4x96xf32>
    %325 = vector.broadcast %7 : vector<1x96xf32> to vector<4x96xf32>
    %326 = arith.addf %324, %325 : vector<4x96xf32>
    %327 = vector.extract_strided_slice %323 {offsets = [0, 0], sizes = [4, 32], strides = [1, 1]} : vector<4x96xf32> to vector<4x32xf32>
    %328 = vector.extract_strided_slice %326 {offsets = [0, 0], sizes = [4, 32], strides = [1, 1]} : vector<4x96xf32> to vector<4x32xf32>
    %329 = arith.addf %327, %328 : vector<4x32xf32>
    %330 = arith.negf %329 : vector<4x32xf32>
    %331 = math.exp %330 : vector<4x32xf32>
    %cst_68 = arith.constant 1.000000e+00 : f32
    %332 = vector.broadcast %cst_68 : f32 to vector<4x32xf32>
    %333 = arith.addf %332, %331 : vector<4x32xf32>
    %334 = arith.divf %332, %333 : vector<4x32xf32>
    %335 = vector.extract_strided_slice %323 {offsets = [0, 32], sizes = [4, 32], strides = [1, 1]} : vector<4x96xf32> to vector<4x32xf32>
    %336 = vector.extract_strided_slice %326 {offsets = [0, 32], sizes = [4, 32], strides = [1, 1]} : vector<4x96xf32> to vector<4x32xf32>
    %337 = arith.addf %335, %336 : vector<4x32xf32>
    %338 = arith.negf %337 : vector<4x32xf32>
    %339 = math.exp %338 : vector<4x32xf32>
    %cst_69 = arith.constant 1.000000e+00 : f32
    %340 = vector.broadcast %cst_69 : f32 to vector<4x32xf32>
    %341 = arith.addf %340, %339 : vector<4x32xf32>
    %342 = arith.divf %340, %341 : vector<4x32xf32>
    %343 = vector.extract_strided_slice %323 {offsets = [0, 64], sizes = [4, 32], strides = [1, 1]} : vector<4x96xf32> to vector<4x32xf32>
    %344 = vector.extract_strided_slice %326 {offsets = [0, 64], sizes = [4, 32], strides = [1, 1]} : vector<4x96xf32> to vector<4x32xf32>
    %345 = arith.mulf %334, %344 : vector<4x32xf32>
    %346 = arith.addf %343, %345 : vector<4x32xf32>
    %347 = math.tanh %346 : vector<4x32xf32>
    %cst_70 = arith.constant 1.000000e+00 : f32
    %348 = vector.broadcast %cst_70 : f32 to vector<4x32xf32>
    %349 = arith.subf %348, %342 : vector<4x32xf32>
    %350 = arith.mulf %349, %347 : vector<4x32xf32>
    %351 = arith.mulf %342, %321 : vector<4x32xf32>
    %352 = arith.addf %350, %351 : vector<4x32xf32>
    %c20_71 = arith.constant 20 : index
    %c32_72 = arith.constant 32 : index
    %353 = vector.load %arg16[%c20_71, %c32_72] : memref<32x64xf32, #tpu.memory_space<vmem>>, vector<4x32xf32>
    tpu.vector_store %arg16[%c20_71, %c32_72], %352 {strides = array<i32>} : memref<32x64xf32, #tpu.memory_space<vmem>>, vector<4x32xf32>,
    %354 = vector.extract_strided_slice %10 {offsets = [16, 96], sizes = [4, 96], strides = [1, 1]} : vector<32x192xf32> to vector<4x96xf32>
    %cst_73 = arith.constant dense<0.000000e+00> : vector<4x96xf32>
    %355 = tpu.matmul %352, %6, %cst_73 {dimension_numbers = #tpu.dot_dimension_numbers<[1], [0], [0], [1], [0, 0, 1, 1], [], []>} : vector<4x32xf32>, vector<32x96xf32>, vector<4x96xf32> -> vector<4x96xf32>
    %356 = vector.broadcast %7 : vector<1x96xf32> to vector<4x96xf32>
    %357 = arith.addf %355, %356 : vector<4x96xf32>
    %358 = vector.extract_strided_slice %354 {offsets = [0, 0], sizes = [4, 32], strides = [1, 1]} : vector<4x96xf32> to vector<4x32xf32>
    %359 = vector.extract_strided_slice %357 {offsets = [0, 0], sizes = [4, 32], strides = [1, 1]} : vector<4x96xf32> to vector<4x32xf32>
    %360 = arith.addf %358, %359 : vector<4x32xf32>
    %361 = arith.negf %360 : vector<4x32xf32>
    %362 = math.exp %361 : vector<4x32xf32>
    %cst_74 = arith.constant 1.000000e+00 : f32
    %363 = vector.broadcast %cst_74 : f32 to vector<4x32xf32>
    %364 = arith.addf %363, %362 : vector<4x32xf32>
    %365 = arith.divf %363, %364 : vector<4x32xf32>
    %366 = vector.extract_strided_slice %354 {offsets = [0, 32], sizes = [4, 32], strides = [1, 1]} : vector<4x96xf32> to vector<4x32xf32>
    %367 = vector.extract_strided_slice %357 {offsets = [0, 32], sizes = [4, 32], strides = [1, 1]} : vector<4x96xf32> to vector<4x32xf32>
    %368 = arith.addf %366, %367 : vector<4x32xf32>
    %369 = arith.negf %368 : vector<4x32xf32>
    %370 = math.exp %369 : vector<4x32xf32>
    %cst_75 = arith.constant 1.000000e+00 : f32
    %371 = vector.broadcast %cst_75 : f32 to vector<4x32xf32>
    %372 = arith.addf %371, %370 : vector<4x32xf32>
    %373 = arith.divf %371, %372 : vector<4x32xf32>
    %374 = vector.extract_strided_slice %354 {offsets = [0, 64], sizes = [4, 32], strides = [1, 1]} : vector<4x96xf32> to vector<4x32xf32>
    %375 = vector.extract_strided_slice %357 {offsets = [0, 64], sizes = [4, 32], strides = [1, 1]} : vector<4x96xf32> to vector<4x32xf32>
    %376 = arith.mulf %365, %375 : vector<4x32xf32>
    %377 = arith.addf %374, %376 : vector<4x32xf32>
    %378 = math.tanh %377 : vector<4x32xf32>
    %cst_76 = arith.constant 1.000000e+00 : f32
    %379 = vector.broadcast %cst_76 : f32 to vector<4x32xf32>
    %380 = arith.subf %379, %373 : vector<4x32xf32>
    %381 = arith.mulf %380, %378 : vector<4x32xf32>
    %382 = arith.mulf %373, %352 : vector<4x32xf32>
    %383 = arith.addf %381, %382 : vector<4x32xf32>
    %c16_77 = arith.constant 16 : index
    %c32_78 = arith.constant 32 : index
    %384 = vector.load %arg16[%c16_77, %c32_78] : memref<32x64xf32, #tpu.memory_space<vmem>>, vector<4x32xf32>
    tpu.vector_store %arg16[%c16_77, %c32_78], %383 {strides = array<i32>} : memref<32x64xf32, #tpu.memory_space<vmem>>, vector<4x32xf32>,
    %385 = vector.extract_strided_slice %10 {offsets = [12, 96], sizes = [4, 96], strides = [1, 1]} : vector<32x192xf32> to vector<4x96xf32>
    %cst_79 = arith.constant dense<0.000000e+00> : vector<4x96xf32>
    %386 = tpu.matmul %383, %6, %cst_79 {dimension_numbers = #tpu.dot_dimension_numbers<[1], [0], [0], [1], [0, 0, 1, 1], [], []>} : vector<4x32xf32>, vector<32x96xf32>, vector<4x96xf32> -> vector<4x96xf32>
    %387 = vector.broadcast %7 : vector<1x96xf32> to vector<4x96xf32>
    %388 = arith.addf %386, %387 : vector<4x96xf32>
    %389 = vector.extract_strided_slice %385 {offsets = [0, 0], sizes = [4, 32], strides = [1, 1]} : vector<4x96xf32> to vector<4x32xf32>
    %390 = vector.extract_strided_slice %388 {offsets = [0, 0], sizes = [4, 32], strides = [1, 1]} : vector<4x96xf32> to vector<4x32xf32>
    %391 = arith.addf %389, %390 : vector<4x32xf32>
    %392 = arith.negf %391 : vector<4x32xf32>
    %393 = math.exp %392 : vector<4x32xf32>
    %cst_80 = arith.constant 1.000000e+00 : f32
    %394 = vector.broadcast %cst_80 : f32 to vector<4x32xf32>
    %395 = arith.addf %394, %393 : vector<4x32xf32>
    %396 = arith.divf %394, %395 : vector<4x32xf32>
    %397 = vector.extract_strided_slice %385 {offsets = [0, 32], sizes = [4, 32], strides = [1, 1]} : vector<4x96xf32> to vector<4x32xf32>
    %398 = vector.extract_strided_slice %388 {offsets = [0, 32], sizes = [4, 32], strides = [1, 1]} : vector<4x96xf32> to vector<4x32xf32>
    %399 = arith.addf %397, %398 : vector<4x32xf32>
    %400 = arith.negf %399 : vector<4x32xf32>
    %401 = math.exp %400 : vector<4x32xf32>
    %cst_81 = arith.constant 1.000000e+00 : f32
    %402 = vector.broadcast %cst_81 : f32 to vector<4x32xf32>
    %403 = arith.addf %402, %401 : vector<4x32xf32>
    %404 = arith.divf %402, %403 : vector<4x32xf32>
    %405 = vector.extract_strided_slice %385 {offsets = [0, 64], sizes = [4, 32], strides = [1, 1]} : vector<4x96xf32> to vector<4x32xf32>
    %406 = vector.extract_strided_slice %388 {offsets = [0, 64], sizes = [4, 32], strides = [1, 1]} : vector<4x96xf32> to vector<4x32xf32>
    %407 = arith.mulf %396, %406 : vector<4x32xf32>
    %408 = arith.addf %405, %407 : vector<4x32xf32>
    %409 = math.tanh %408 : vector<4x32xf32>
    %cst_82 = arith.constant 1.000000e+00 : f32
    %410 = vector.broadcast %cst_82 : f32 to vector<4x32xf32>
    %411 = arith.subf %410, %404 : vector<4x32xf32>
    %412 = arith.mulf %411, %409 : vector<4x32xf32>
    %413 = arith.mulf %404, %383 : vector<4x32xf32>
    %414 = arith.addf %412, %413 : vector<4x32xf32>
    %c12_83 = arith.constant 12 : index
    %c32_84 = arith.constant 32 : index
    %415 = vector.load %arg16[%c12_83, %c32_84] : memref<32x64xf32, #tpu.memory_space<vmem>>, vector<4x32xf32>
    tpu.vector_store %arg16[%c12_83, %c32_84], %414 {strides = array<i32>} : memref<32x64xf32, #tpu.memory_space<vmem>>, vector<4x32xf32>,
    %416 = vector.extract_strided_slice %10 {offsets = [8, 96], sizes = [4, 96], strides = [1, 1]} : vector<32x192xf32> to vector<4x96xf32>
    %cst_85 = arith.constant dense<0.000000e+00> : vector<4x96xf32>
    %417 = tpu.matmul %414, %6, %cst_85 {dimension_numbers = #tpu.dot_dimension_numbers<[1], [0], [0], [1], [0, 0, 1, 1], [], []>} : vector<4x32xf32>, vector<32x96xf32>, vector<4x96xf32> -> vector<4x96xf32>
    %418 = vector.broadcast %7 : vector<1x96xf32> to vector<4x96xf32>
    %419 = arith.addf %417, %418 : vector<4x96xf32>
    %420 = vector.extract_strided_slice %416 {offsets = [0, 0], sizes = [4, 32], strides = [1, 1]} : vector<4x96xf32> to vector<4x32xf32>
    %421 = vector.extract_strided_slice %419 {offsets = [0, 0], sizes = [4, 32], strides = [1, 1]} : vector<4x96xf32> to vector<4x32xf32>
    %422 = arith.addf %420, %421 : vector<4x32xf32>
    %423 = arith.negf %422 : vector<4x32xf32>
    %424 = math.exp %423 : vector<4x32xf32>
    %cst_86 = arith.constant 1.000000e+00 : f32
    %425 = vector.broadcast %cst_86 : f32 to vector<4x32xf32>
    %426 = arith.addf %425, %424 : vector<4x32xf32>
    %427 = arith.divf %425, %426 : vector<4x32xf32>
    %428 = vector.extract_strided_slice %416 {offsets = [0, 32], sizes = [4, 32], strides = [1, 1]} : vector<4x96xf32> to vector<4x32xf32>
    %429 = vector.extract_strided_slice %419 {offsets = [0, 32], sizes = [4, 32], strides = [1, 1]} : vector<4x96xf32> to vector<4x32xf32>
    %430 = arith.addf %428, %429 : vector<4x32xf32>
    %431 = arith.negf %430 : vector<4x32xf32>
    %432 = math.exp %431 : vector<4x32xf32>
    %cst_87 = arith.constant 1.000000e+00 : f32
    %433 = vector.broadcast %cst_87 : f32 to vector<4x32xf32>
    %434 = arith.addf %433, %432 : vector<4x32xf32>
    %435 = arith.divf %433, %434 : vector<4x32xf32>
    %436 = vector.extract_strided_slice %416 {offsets = [0, 64], sizes = [4, 32], strides = [1, 1]} : vector<4x96xf32> to vector<4x32xf32>
    %437 = vector.extract_strided_slice %419 {offsets = [0, 64], sizes = [4, 32], strides = [1, 1]} : vector<4x96xf32> to vector<4x32xf32>
    %438 = arith.mulf %427, %437 : vector<4x32xf32>
    %439 = arith.addf %436, %438 : vector<4x32xf32>
    %440 = math.tanh %439 : vector<4x32xf32>
    %cst_88 = arith.constant 1.000000e+00 : f32
    %441 = vector.broadcast %cst_88 : f32 to vector<4x32xf32>
    %442 = arith.subf %441, %435 : vector<4x32xf32>
    %443 = arith.mulf %442, %440 : vector<4x32xf32>
    %444 = arith.mulf %435, %414 : vector<4x32xf32>
    %445 = arith.addf %443, %444 : vector<4x32xf32>
    %c8_89 = arith.constant 8 : index
    %c32_90 = arith.constant 32 : index
    %446 = vector.load %arg16[%c8_89, %c32_90] : memref<32x64xf32, #tpu.memory_space<vmem>>, vector<4x32xf32>
    tpu.vector_store %arg16[%c8_89, %c32_90], %445 {strides = array<i32>} : memref<32x64xf32, #tpu.memory_space<vmem>>, vector<4x32xf32>,
    %447 = vector.extract_strided_slice %10 {offsets = [4, 96], sizes = [4, 96], strides = [1, 1]} : vector<32x192xf32> to vector<4x96xf32>
    %cst_91 = arith.constant dense<0.000000e+00> : vector<4x96xf32>
    %448 = tpu.matmul %445, %6, %cst_91 {dimension_numbers = #tpu.dot_dimension_numbers<[1], [0], [0], [1], [0, 0, 1, 1], [], []>} : vector<4x32xf32>, vector<32x96xf32>, vector<4x96xf32> -> vector<4x96xf32>
    %449 = vector.broadcast %7 : vector<1x96xf32> to vector<4x96xf32>
    %450 = arith.addf %448, %449 : vector<4x96xf32>
    %451 = vector.extract_strided_slice %447 {offsets = [0, 0], sizes = [4, 32], strides = [1, 1]} : vector<4x96xf32> to vector<4x32xf32>
    %452 = vector.extract_strided_slice %450 {offsets = [0, 0], sizes = [4, 32], strides = [1, 1]} : vector<4x96xf32> to vector<4x32xf32>
    %453 = arith.addf %451, %452 : vector<4x32xf32>
    %454 = arith.negf %453 : vector<4x32xf32>
    %455 = math.exp %454 : vector<4x32xf32>
    %cst_92 = arith.constant 1.000000e+00 : f32
    %456 = vector.broadcast %cst_92 : f32 to vector<4x32xf32>
    %457 = arith.addf %456, %455 : vector<4x32xf32>
    %458 = arith.divf %456, %457 : vector<4x32xf32>
    %459 = vector.extract_strided_slice %447 {offsets = [0, 32], sizes = [4, 32], strides = [1, 1]} : vector<4x96xf32> to vector<4x32xf32>
    %460 = vector.extract_strided_slice %450 {offsets = [0, 32], sizes = [4, 32], strides = [1, 1]} : vector<4x96xf32> to vector<4x32xf32>
    %461 = arith.addf %459, %460 : vector<4x32xf32>
    %462 = arith.negf %461 : vector<4x32xf32>
    %463 = math.exp %462 : vector<4x32xf32>
    %cst_93 = arith.constant 1.000000e+00 : f32
    %464 = vector.broadcast %cst_93 : f32 to vector<4x32xf32>
    %465 = arith.addf %464, %463 : vector<4x32xf32>
    %466 = arith.divf %464, %465 : vector<4x32xf32>
    %467 = vector.extract_strided_slice %447 {offsets = [0, 64], sizes = [4, 32], strides = [1, 1]} : vector<4x96xf32> to vector<4x32xf32>
    %468 = vector.extract_strided_slice %450 {offsets = [0, 64], sizes = [4, 32], strides = [1, 1]} : vector<4x96xf32> to vector<4x32xf32>
    %469 = arith.mulf %458, %468 : vector<4x32xf32>
    %470 = arith.addf %467, %469 : vector<4x32xf32>
    %471 = math.tanh %470 : vector<4x32xf32>
    %cst_94 = arith.constant 1.000000e+00 : f32
    %472 = vector.broadcast %cst_94 : f32 to vector<4x32xf32>
    %473 = arith.subf %472, %466 : vector<4x32xf32>
    %474 = arith.mulf %473, %471 : vector<4x32xf32>
    %475 = arith.mulf %466, %445 : vector<4x32xf32>
    %476 = arith.addf %474, %475 : vector<4x32xf32>
    %c4_95 = arith.constant 4 : index
    %c32_96 = arith.constant 32 : index
    %477 = vector.load %arg16[%c4_95, %c32_96] : memref<32x64xf32, #tpu.memory_space<vmem>>, vector<4x32xf32>
    tpu.vector_store %arg16[%c4_95, %c32_96], %476 {strides = array<i32>} : memref<32x64xf32, #tpu.memory_space<vmem>>, vector<4x32xf32>,
    %478 = vector.extract_strided_slice %10 {offsets = [0, 96], sizes = [4, 96], strides = [1, 1]} : vector<32x192xf32> to vector<4x96xf32>
    %cst_97 = arith.constant dense<0.000000e+00> : vector<4x96xf32>
    %479 = tpu.matmul %476, %6, %cst_97 {dimension_numbers = #tpu.dot_dimension_numbers<[1], [0], [0], [1], [0, 0, 1, 1], [], []>} : vector<4x32xf32>, vector<32x96xf32>, vector<4x96xf32> -> vector<4x96xf32>
    %480 = vector.broadcast %7 : vector<1x96xf32> to vector<4x96xf32>
    %481 = arith.addf %479, %480 : vector<4x96xf32>
    %482 = vector.extract_strided_slice %478 {offsets = [0, 0], sizes = [4, 32], strides = [1, 1]} : vector<4x96xf32> to vector<4x32xf32>
    %483 = vector.extract_strided_slice %481 {offsets = [0, 0], sizes = [4, 32], strides = [1, 1]} : vector<4x96xf32> to vector<4x32xf32>
    %484 = arith.addf %482, %483 : vector<4x32xf32>
    %485 = arith.negf %484 : vector<4x32xf32>
    %486 = math.exp %485 : vector<4x32xf32>
    %cst_98 = arith.constant 1.000000e+00 : f32
    %487 = vector.broadcast %cst_98 : f32 to vector<4x32xf32>
    %488 = arith.addf %487, %486 : vector<4x32xf32>
    %489 = arith.divf %487, %488 : vector<4x32xf32>
    %490 = vector.extract_strided_slice %478 {offsets = [0, 32], sizes = [4, 32], strides = [1, 1]} : vector<4x96xf32> to vector<4x32xf32>
    %491 = vector.extract_strided_slice %481 {offsets = [0, 32], sizes = [4, 32], strides = [1, 1]} : vector<4x96xf32> to vector<4x32xf32>
    %492 = arith.addf %490, %491 : vector<4x32xf32>
    %493 = arith.negf %492 : vector<4x32xf32>
    %494 = math.exp %493 : vector<4x32xf32>
    %cst_99 = arith.constant 1.000000e+00 : f32
    %495 = vector.broadcast %cst_99 : f32 to vector<4x32xf32>
    %496 = arith.addf %495, %494 : vector<4x32xf32>
    %497 = arith.divf %495, %496 : vector<4x32xf32>
    %498 = vector.extract_strided_slice %478 {offsets = [0, 64], sizes = [4, 32], strides = [1, 1]} : vector<4x96xf32> to vector<4x32xf32>
    %499 = vector.extract_strided_slice %481 {offsets = [0, 64], sizes = [4, 32], strides = [1, 1]} : vector<4x96xf32> to vector<4x32xf32>
    %500 = arith.mulf %489, %499 : vector<4x32xf32>
    %501 = arith.addf %498, %500 : vector<4x32xf32>
    %502 = math.tanh %501 : vector<4x32xf32>
    %cst_100 = arith.constant 1.000000e+00 : f32
    %503 = vector.broadcast %cst_100 : f32 to vector<4x32xf32>
    %504 = arith.subf %503, %497 : vector<4x32xf32>
    %505 = arith.mulf %504, %502 : vector<4x32xf32>
    %506 = arith.mulf %497, %476 : vector<4x32xf32>
    %507 = arith.addf %505, %506 : vector<4x32xf32>
    %c0_101 = arith.constant 0 : index
    %c32_102 = arith.constant 32 : index
    %508 = vector.load %arg16[%c0_101, %c32_102] : memref<32x64xf32, #tpu.memory_space<vmem>>, vector<4x32xf32>
    tpu.vector_store %arg16[%c0_101, %c32_102], %507 {strides = array<i32>} : memref<32x64xf32, #tpu.memory_space<vmem>>, vector<4x32xf32>,
    %c0_103 = arith.constant 0 : index
    %c0_104 = arith.constant 0 : index
    %509 = vector.load %arg16[%c0_103, %c0_104] : memref<32x64xf32, #tpu.memory_space<vmem>>, vector<32x64xf32>
    %c0_105 = arith.constant 0 : index
    %c0_106 = arith.constant 0 : index
    %510 = vector.load %arg7[%c0_105, %c0_106] : memref<64x192xf32, #tpu.memory_space<vmem>>, vector<64x192xf32>
    %c0_107 = arith.constant 0 : index
    %c0_108 = arith.constant 0 : index
    %511 = vector.load %arg8[%c0_107, %c0_108] : memref<1x192xf32, #tpu.memory_space<vmem>>, vector<1x192xf32>
    %c0_109 = arith.constant 0 : index
    %c0_110 = arith.constant 0 : index
    %512 = vector.load %arg9[%c0_109, %c0_110] : memref<32x96xf32, #tpu.memory_space<vmem>>, vector<32x96xf32>
    %c0_111 = arith.constant 0 : index
    %c0_112 = arith.constant 0 : index
    %513 = vector.load %arg10[%c0_111, %c0_112] : memref<1x96xf32, #tpu.memory_space<vmem>>, vector<1x96xf32>
    %c0_113 = arith.constant 0 : index
    %c0_114 = arith.constant 0 : index
    %514 = vector.load %arg11[%c0_113, %c0_114] : memref<32x96xf32, #tpu.memory_space<vmem>>, vector<32x96xf32>
    %c0_115 = arith.constant 0 : index
    %c0_116 = arith.constant 0 : index
    %515 = vector.load %arg12[%c0_115, %c0_116] : memref<1x96xf32, #tpu.memory_space<vmem>>, vector<1x96xf32>
    %cst_117 = arith.constant dense<0.000000e+00> : vector<32x192xf32>
    %516 = tpu.matmul %509, %510, %cst_117 {dimension_numbers = #tpu.dot_dimension_numbers<[1], [0], [0], [1], [0, 0, 1, 1], [], []>} : vector<32x64xf32>, vector<64x192xf32>, vector<32x192xf32> -> vector<32x192xf32>
    %517 = vector.broadcast %511 : vector<1x192xf32> to vector<32x192xf32>
    %518 = arith.addf %516, %517 : vector<32x192xf32>
    %cst_118 = arith.constant 0.000000e+00 : f32
    %519 = vector.broadcast %cst_118 : f32 to vector<4x32xf32>
    %520 = vector.extract_strided_slice %518 {offsets = [0, 0], sizes = [4, 96], strides = [1, 1]} : vector<32x192xf32> to vector<4x96xf32>
    %cst_119 = arith.constant dense<0.000000e+00> : vector<4x96xf32>
    %521 = tpu.matmul %519, %512, %cst_119 {dimension_numbers = #tpu.dot_dimension_numbers<[1], [0], [0], [1], [0, 0, 1, 1], [], []>} : vector<4x32xf32>, vector<32x96xf32>, vector<4x96xf32> -> vector<4x96xf32>
    %522 = vector.broadcast %513 : vector<1x96xf32> to vector<4x96xf32>
    %523 = arith.addf %521, %522 : vector<4x96xf32>
    %524 = vector.extract_strided_slice %520 {offsets = [0, 0], sizes = [4, 32], strides = [1, 1]} : vector<4x96xf32> to vector<4x32xf32>
    %525 = vector.extract_strided_slice %523 {offsets = [0, 0], sizes = [4, 32], strides = [1, 1]} : vector<4x96xf32> to vector<4x32xf32>
    %526 = arith.addf %524, %525 : vector<4x32xf32>
    %527 = arith.negf %526 : vector<4x32xf32>
    %528 = math.exp %527 : vector<4x32xf32>
    %cst_120 = arith.constant 1.000000e+00 : f32
    %529 = vector.broadcast %cst_120 : f32 to vector<4x32xf32>
    %530 = arith.addf %529, %528 : vector<4x32xf32>
    %531 = arith.divf %529, %530 : vector<4x32xf32>
    %532 = vector.extract_strided_slice %520 {offsets = [0, 32], sizes = [4, 32], strides = [1, 1]} : vector<4x96xf32> to vector<4x32xf32>
    %533 = vector.extract_strided_slice %523 {offsets = [0, 32], sizes = [4, 32], strides = [1, 1]} : vector<4x96xf32> to vector<4x32xf32>
    %534 = arith.addf %532, %533 : vector<4x32xf32>
    %535 = arith.negf %534 : vector<4x32xf32>
    %536 = math.exp %535 : vector<4x32xf32>
    %cst_121 = arith.constant 1.000000e+00 : f32
    %537 = vector.broadcast %cst_121 : f32 to vector<4x32xf32>
    %538 = arith.addf %537, %536 : vector<4x32xf32>
    %539 = arith.divf %537, %538 : vector<4x32xf32>
    %540 = vector.extract_strided_slice %520 {offsets = [0, 64], sizes = [4, 32], strides = [1, 1]} : vector<4x96xf32> to vector<4x32xf32>
    %541 = vector.extract_strided_slice %523 {offsets = [0, 64], sizes = [4, 32], strides = [1, 1]} : vector<4x96xf32> to vector<4x32xf32>
    %542 = arith.mulf %531, %541 : vector<4x32xf32>
    %543 = arith.addf %540, %542 : vector<4x32xf32>
    %544 = math.tanh %543 : vector<4x32xf32>
    %cst_122 = arith.constant 1.000000e+00 : f32
    %545 = vector.broadcast %cst_122 : f32 to vector<4x32xf32>
    %546 = arith.subf %545, %539 : vector<4x32xf32>
    %547 = arith.mulf %546, %544 : vector<4x32xf32>
    %548 = arith.mulf %539, %519 : vector<4x32xf32>
    %549 = arith.addf %547, %548 : vector<4x32xf32>
    %550 = vector.extract_strided_slice %518 {offsets = [4, 0], sizes = [4, 96], strides = [1, 1]} : vector<32x192xf32> to vector<4x96xf32>
    %cst_123 = arith.constant dense<0.000000e+00> : vector<4x96xf32>
    %551 = tpu.matmul %549, %512, %cst_123 {dimension_numbers = #tpu.dot_dimension_numbers<[1], [0], [0], [1], [0, 0, 1, 1], [], []>} : vector<4x32xf32>, vector<32x96xf32>, vector<4x96xf32> -> vector<4x96xf32>
    %552 = vector.broadcast %513 : vector<1x96xf32> to vector<4x96xf32>
    %553 = arith.addf %551, %552 : vector<4x96xf32>
    %554 = vector.extract_strided_slice %550 {offsets = [0, 0], sizes = [4, 32], strides = [1, 1]} : vector<4x96xf32> to vector<4x32xf32>
    %555 = vector.extract_strided_slice %553 {offsets = [0, 0], sizes = [4, 32], strides = [1, 1]} : vector<4x96xf32> to vector<4x32xf32>
    %556 = arith.addf %554, %555 : vector<4x32xf32>
    %557 = arith.negf %556 : vector<4x32xf32>
    %558 = math.exp %557 : vector<4x32xf32>
    %cst_124 = arith.constant 1.000000e+00 : f32
    %559 = vector.broadcast %cst_124 : f32 to vector<4x32xf32>
    %560 = arith.addf %559, %558 : vector<4x32xf32>
    %561 = arith.divf %559, %560 : vector<4x32xf32>
    %562 = vector.extract_strided_slice %550 {offsets = [0, 32], sizes = [4, 32], strides = [1, 1]} : vector<4x96xf32> to vector<4x32xf32>
    %563 = vector.extract_strided_slice %553 {offsets = [0, 32], sizes = [4, 32], strides = [1, 1]} : vector<4x96xf32> to vector<4x32xf32>
    %564 = arith.addf %562, %563 : vector<4x32xf32>
    %565 = arith.negf %564 : vector<4x32xf32>
    %566 = math.exp %565 : vector<4x32xf32>
    %cst_125 = arith.constant 1.000000e+00 : f32
    %567 = vector.broadcast %cst_125 : f32 to vector<4x32xf32>
    %568 = arith.addf %567, %566 : vector<4x32xf32>
    %569 = arith.divf %567, %568 : vector<4x32xf32>
    %570 = vector.extract_strided_slice %550 {offsets = [0, 64], sizes = [4, 32], strides = [1, 1]} : vector<4x96xf32> to vector<4x32xf32>
    %571 = vector.extract_strided_slice %553 {offsets = [0, 64], sizes = [4, 32], strides = [1, 1]} : vector<4x96xf32> to vector<4x32xf32>
    %572 = arith.mulf %561, %571 : vector<4x32xf32>
    %573 = arith.addf %570, %572 : vector<4x32xf32>
    %574 = math.tanh %573 : vector<4x32xf32>
    %cst_126 = arith.constant 1.000000e+00 : f32
    %575 = vector.broadcast %cst_126 : f32 to vector<4x32xf32>
    %576 = arith.subf %575, %569 : vector<4x32xf32>
    %577 = arith.mulf %576, %574 : vector<4x32xf32>
    %578 = arith.mulf %569, %549 : vector<4x32xf32>
    %579 = arith.addf %577, %578 : vector<4x32xf32>
    %580 = vector.extract_strided_slice %518 {offsets = [8, 0], sizes = [4, 96], strides = [1, 1]} : vector<32x192xf32> to vector<4x96xf32>
    %cst_127 = arith.constant dense<0.000000e+00> : vector<4x96xf32>
    %581 = tpu.matmul %579, %512, %cst_127 {dimension_numbers = #tpu.dot_dimension_numbers<[1], [0], [0], [1], [0, 0, 1, 1], [], []>} : vector<4x32xf32>, vector<32x96xf32>, vector<4x96xf32> -> vector<4x96xf32>
    %582 = vector.broadcast %513 : vector<1x96xf32> to vector<4x96xf32>
    %583 = arith.addf %581, %582 : vector<4x96xf32>
    %584 = vector.extract_strided_slice %580 {offsets = [0, 0], sizes = [4, 32], strides = [1, 1]} : vector<4x96xf32> to vector<4x32xf32>
    %585 = vector.extract_strided_slice %583 {offsets = [0, 0], sizes = [4, 32], strides = [1, 1]} : vector<4x96xf32> to vector<4x32xf32>
    %586 = arith.addf %584, %585 : vector<4x32xf32>
    %587 = arith.negf %586 : vector<4x32xf32>
    %588 = math.exp %587 : vector<4x32xf32>
    %cst_128 = arith.constant 1.000000e+00 : f32
    %589 = vector.broadcast %cst_128 : f32 to vector<4x32xf32>
    %590 = arith.addf %589, %588 : vector<4x32xf32>
    %591 = arith.divf %589, %590 : vector<4x32xf32>
    %592 = vector.extract_strided_slice %580 {offsets = [0, 32], sizes = [4, 32], strides = [1, 1]} : vector<4x96xf32> to vector<4x32xf32>
    %593 = vector.extract_strided_slice %583 {offsets = [0, 32], sizes = [4, 32], strides = [1, 1]} : vector<4x96xf32> to vector<4x32xf32>
    %594 = arith.addf %592, %593 : vector<4x32xf32>
    %595 = arith.negf %594 : vector<4x32xf32>
    %596 = math.exp %595 : vector<4x32xf32>
    %cst_129 = arith.constant 1.000000e+00 : f32
    %597 = vector.broadcast %cst_129 : f32 to vector<4x32xf32>
    %598 = arith.addf %597, %596 : vector<4x32xf32>
    %599 = arith.divf %597, %598 : vector<4x32xf32>
    %600 = vector.extract_strided_slice %580 {offsets = [0, 64], sizes = [4, 32], strides = [1, 1]} : vector<4x96xf32> to vector<4x32xf32>
    %601 = vector.extract_strided_slice %583 {offsets = [0, 64], sizes = [4, 32], strides = [1, 1]} : vector<4x96xf32> to vector<4x32xf32>
    %602 = arith.mulf %591, %601 : vector<4x32xf32>
    %603 = arith.addf %600, %602 : vector<4x32xf32>
    %604 = math.tanh %603 : vector<4x32xf32>
    %cst_130 = arith.constant 1.000000e+00 : f32
    %605 = vector.broadcast %cst_130 : f32 to vector<4x32xf32>
    %606 = arith.subf %605, %599 : vector<4x32xf32>
    %607 = arith.mulf %606, %604 : vector<4x32xf32>
    %608 = arith.mulf %599, %579 : vector<4x32xf32>
    %609 = arith.addf %607, %608 : vector<4x32xf32>
    %610 = vector.extract_strided_slice %518 {offsets = [12, 0], sizes = [4, 96], strides = [1, 1]} : vector<32x192xf32> to vector<4x96xf32>
    %cst_131 = arith.constant dense<0.000000e+00> : vector<4x96xf32>
    %611 = tpu.matmul %609, %512, %cst_131 {dimension_numbers = #tpu.dot_dimension_numbers<[1], [0], [0], [1], [0, 0, 1, 1], [], []>} : vector<4x32xf32>, vector<32x96xf32>, vector<4x96xf32> -> vector<4x96xf32>
    %612 = vector.broadcast %513 : vector<1x96xf32> to vector<4x96xf32>
    %613 = arith.addf %611, %612 : vector<4x96xf32>
    %614 = vector.extract_strided_slice %610 {offsets = [0, 0], sizes = [4, 32], strides = [1, 1]} : vector<4x96xf32> to vector<4x32xf32>
    %615 = vector.extract_strided_slice %613 {offsets = [0, 0], sizes = [4, 32], strides = [1, 1]} : vector<4x96xf32> to vector<4x32xf32>
    %616 = arith.addf %614, %615 : vector<4x32xf32>
    %617 = arith.negf %616 : vector<4x32xf32>
    %618 = math.exp %617 : vector<4x32xf32>
    %cst_132 = arith.constant 1.000000e+00 : f32
    %619 = vector.broadcast %cst_132 : f32 to vector<4x32xf32>
    %620 = arith.addf %619, %618 : vector<4x32xf32>
    %621 = arith.divf %619, %620 : vector<4x32xf32>
    %622 = vector.extract_strided_slice %610 {offsets = [0, 32], sizes = [4, 32], strides = [1, 1]} : vector<4x96xf32> to vector<4x32xf32>
    %623 = vector.extract_strided_slice %613 {offsets = [0, 32], sizes = [4, 32], strides = [1, 1]} : vector<4x96xf32> to vector<4x32xf32>
    %624 = arith.addf %622, %623 : vector<4x32xf32>
    %625 = arith.negf %624 : vector<4x32xf32>
    %626 = math.exp %625 : vector<4x32xf32>
    %cst_133 = arith.constant 1.000000e+00 : f32
    %627 = vector.broadcast %cst_133 : f32 to vector<4x32xf32>
    %628 = arith.addf %627, %626 : vector<4x32xf32>
    %629 = arith.divf %627, %628 : vector<4x32xf32>
    %630 = vector.extract_strided_slice %610 {offsets = [0, 64], sizes = [4, 32], strides = [1, 1]} : vector<4x96xf32> to vector<4x32xf32>
    %631 = vector.extract_strided_slice %613 {offsets = [0, 64], sizes = [4, 32], strides = [1, 1]} : vector<4x96xf32> to vector<4x32xf32>
    %632 = arith.mulf %621, %631 : vector<4x32xf32>
    %633 = arith.addf %630, %632 : vector<4x32xf32>
    %634 = math.tanh %633 : vector<4x32xf32>
    %cst_134 = arith.constant 1.000000e+00 : f32
    %635 = vector.broadcast %cst_134 : f32 to vector<4x32xf32>
    %636 = arith.subf %635, %629 : vector<4x32xf32>
    %637 = arith.mulf %636, %634 : vector<4x32xf32>
    %638 = arith.mulf %629, %609 : vector<4x32xf32>
    %639 = arith.addf %637, %638 : vector<4x32xf32>
    %640 = vector.extract_strided_slice %518 {offsets = [16, 0], sizes = [4, 96], strides = [1, 1]} : vector<32x192xf32> to vector<4x96xf32>
    %cst_135 = arith.constant dense<0.000000e+00> : vector<4x96xf32>
    %641 = tpu.matmul %639, %512, %cst_135 {dimension_numbers = #tpu.dot_dimension_numbers<[1], [0], [0], [1], [0, 0, 1, 1], [], []>} : vector<4x32xf32>, vector<32x96xf32>, vector<4x96xf32> -> vector<4x96xf32>
    %642 = vector.broadcast %513 : vector<1x96xf32> to vector<4x96xf32>
    %643 = arith.addf %641, %642 : vector<4x96xf32>
    %644 = vector.extract_strided_slice %640 {offsets = [0, 0], sizes = [4, 32], strides = [1, 1]} : vector<4x96xf32> to vector<4x32xf32>
    %645 = vector.extract_strided_slice %643 {offsets = [0, 0], sizes = [4, 32], strides = [1, 1]} : vector<4x96xf32> to vector<4x32xf32>
    %646 = arith.addf %644, %645 : vector<4x32xf32>
    %647 = arith.negf %646 : vector<4x32xf32>
    %648 = math.exp %647 : vector<4x32xf32>
    %cst_136 = arith.constant 1.000000e+00 : f32
    %649 = vector.broadcast %cst_136 : f32 to vector<4x32xf32>
    %650 = arith.addf %649, %648 : vector<4x32xf32>
    %651 = arith.divf %649, %650 : vector<4x32xf32>
    %652 = vector.extract_strided_slice %640 {offsets = [0, 32], sizes = [4, 32], strides = [1, 1]} : vector<4x96xf32> to vector<4x32xf32>
    %653 = vector.extract_strided_slice %643 {offsets = [0, 32], sizes = [4, 32], strides = [1, 1]} : vector<4x96xf32> to vector<4x32xf32>
    %654 = arith.addf %652, %653 : vector<4x32xf32>
    %655 = arith.negf %654 : vector<4x32xf32>
    %656 = math.exp %655 : vector<4x32xf32>
    %cst_137 = arith.constant 1.000000e+00 : f32
    %657 = vector.broadcast %cst_137 : f32 to vector<4x32xf32>
    %658 = arith.addf %657, %656 : vector<4x32xf32>
    %659 = arith.divf %657, %658 : vector<4x32xf32>
    %660 = vector.extract_strided_slice %640 {offsets = [0, 64], sizes = [4, 32], strides = [1, 1]} : vector<4x96xf32> to vector<4x32xf32>
    %661 = vector.extract_strided_slice %643 {offsets = [0, 64], sizes = [4, 32], strides = [1, 1]} : vector<4x96xf32> to vector<4x32xf32>
    %662 = arith.mulf %651, %661 : vector<4x32xf32>
    %663 = arith.addf %660, %662 : vector<4x32xf32>
    %664 = math.tanh %663 : vector<4x32xf32>
    %cst_138 = arith.constant 1.000000e+00 : f32
    %665 = vector.broadcast %cst_138 : f32 to vector<4x32xf32>
    %666 = arith.subf %665, %659 : vector<4x32xf32>
    %667 = arith.mulf %666, %664 : vector<4x32xf32>
    %668 = arith.mulf %659, %639 : vector<4x32xf32>
    %669 = arith.addf %667, %668 : vector<4x32xf32>
    %670 = vector.extract_strided_slice %518 {offsets = [20, 0], sizes = [4, 96], strides = [1, 1]} : vector<32x192xf32> to vector<4x96xf32>
    %cst_139 = arith.constant dense<0.000000e+00> : vector<4x96xf32>
    %671 = tpu.matmul %669, %512, %cst_139 {dimension_numbers = #tpu.dot_dimension_numbers<[1], [0], [0], [1], [0, 0, 1, 1], [], []>} : vector<4x32xf32>, vector<32x96xf32>, vector<4x96xf32> -> vector<4x96xf32>
    %672 = vector.broadcast %513 : vector<1x96xf32> to vector<4x96xf32>
    %673 = arith.addf %671, %672 : vector<4x96xf32>
    %674 = vector.extract_strided_slice %670 {offsets = [0, 0], sizes = [4, 32], strides = [1, 1]} : vector<4x96xf32> to vector<4x32xf32>
    %675 = vector.extract_strided_slice %673 {offsets = [0, 0], sizes = [4, 32], strides = [1, 1]} : vector<4x96xf32> to vector<4x32xf32>
    %676 = arith.addf %674, %675 : vector<4x32xf32>
    %677 = arith.negf %676 : vector<4x32xf32>
    %678 = math.exp %677 : vector<4x32xf32>
    %cst_140 = arith.constant 1.000000e+00 : f32
    %679 = vector.broadcast %cst_140 : f32 to vector<4x32xf32>
    %680 = arith.addf %679, %678 : vector<4x32xf32>
    %681 = arith.divf %679, %680 : vector<4x32xf32>
    %682 = vector.extract_strided_slice %670 {offsets = [0, 32], sizes = [4, 32], strides = [1, 1]} : vector<4x96xf32> to vector<4x32xf32>
    %683 = vector.extract_strided_slice %673 {offsets = [0, 32], sizes = [4, 32], strides = [1, 1]} : vector<4x96xf32> to vector<4x32xf32>
    %684 = arith.addf %682, %683 : vector<4x32xf32>
    %685 = arith.negf %684 : vector<4x32xf32>
    %686 = math.exp %685 : vector<4x32xf32>
    %cst_141 = arith.constant 1.000000e+00 : f32
    %687 = vector.broadcast %cst_141 : f32 to vector<4x32xf32>
    %688 = arith.addf %687, %686 : vector<4x32xf32>
    %689 = arith.divf %687, %688 : vector<4x32xf32>
    %690 = vector.extract_strided_slice %670 {offsets = [0, 64], sizes = [4, 32], strides = [1, 1]} : vector<4x96xf32> to vector<4x32xf32>
    %691 = vector.extract_strided_slice %673 {offsets = [0, 64], sizes = [4, 32], strides = [1, 1]} : vector<4x96xf32> to vector<4x32xf32>
    %692 = arith.mulf %681, %691 : vector<4x32xf32>
    %693 = arith.addf %690, %692 : vector<4x32xf32>
    %694 = math.tanh %693 : vector<4x32xf32>
    %cst_142 = arith.constant 1.000000e+00 : f32
    %695 = vector.broadcast %cst_142 : f32 to vector<4x32xf32>
    %696 = arith.subf %695, %689 : vector<4x32xf32>
    %697 = arith.mulf %696, %694 : vector<4x32xf32>
    %698 = arith.mulf %689, %669 : vector<4x32xf32>
    %699 = arith.addf %697, %698 : vector<4x32xf32>
    %700 = vector.extract_strided_slice %518 {offsets = [24, 0], sizes = [4, 96], strides = [1, 1]} : vector<32x192xf32> to vector<4x96xf32>
    %cst_143 = arith.constant dense<0.000000e+00> : vector<4x96xf32>
    %701 = tpu.matmul %699, %512, %cst_143 {dimension_numbers = #tpu.dot_dimension_numbers<[1], [0], [0], [1], [0, 0, 1, 1], [], []>} : vector<4x32xf32>, vector<32x96xf32>, vector<4x96xf32> -> vector<4x96xf32>
    %702 = vector.broadcast %513 : vector<1x96xf32> to vector<4x96xf32>
    %703 = arith.addf %701, %702 : vector<4x96xf32>
    %704 = vector.extract_strided_slice %700 {offsets = [0, 0], sizes = [4, 32], strides = [1, 1]} : vector<4x96xf32> to vector<4x32xf32>
    %705 = vector.extract_strided_slice %703 {offsets = [0, 0], sizes = [4, 32], strides = [1, 1]} : vector<4x96xf32> to vector<4x32xf32>
    %706 = arith.addf %704, %705 : vector<4x32xf32>
    %707 = arith.negf %706 : vector<4x32xf32>
    %708 = math.exp %707 : vector<4x32xf32>
    %cst_144 = arith.constant 1.000000e+00 : f32
    %709 = vector.broadcast %cst_144 : f32 to vector<4x32xf32>
    %710 = arith.addf %709, %708 : vector<4x32xf32>
    %711 = arith.divf %709, %710 : vector<4x32xf32>
    %712 = vector.extract_strided_slice %700 {offsets = [0, 32], sizes = [4, 32], strides = [1, 1]} : vector<4x96xf32> to vector<4x32xf32>
    %713 = vector.extract_strided_slice %703 {offsets = [0, 32], sizes = [4, 32], strides = [1, 1]} : vector<4x96xf32> to vector<4x32xf32>
    %714 = arith.addf %712, %713 : vector<4x32xf32>
    %715 = arith.negf %714 : vector<4x32xf32>
    %716 = math.exp %715 : vector<4x32xf32>
    %cst_145 = arith.constant 1.000000e+00 : f32
    %717 = vector.broadcast %cst_145 : f32 to vector<4x32xf32>
    %718 = arith.addf %717, %716 : vector<4x32xf32>
    %719 = arith.divf %717, %718 : vector<4x32xf32>
    %720 = vector.extract_strided_slice %700 {offsets = [0, 64], sizes = [4, 32], strides = [1, 1]} : vector<4x96xf32> to vector<4x32xf32>
    %721 = vector.extract_strided_slice %703 {offsets = [0, 64], sizes = [4, 32], strides = [1, 1]} : vector<4x96xf32> to vector<4x32xf32>
    %722 = arith.mulf %711, %721 : vector<4x32xf32>
    %723 = arith.addf %720, %722 : vector<4x32xf32>
    %724 = math.tanh %723 : vector<4x32xf32>
    %cst_146 = arith.constant 1.000000e+00 : f32
    %725 = vector.broadcast %cst_146 : f32 to vector<4x32xf32>
    %726 = arith.subf %725, %719 : vector<4x32xf32>
    %727 = arith.mulf %726, %724 : vector<4x32xf32>
    %728 = arith.mulf %719, %699 : vector<4x32xf32>
    %729 = arith.addf %727, %728 : vector<4x32xf32>
    %730 = vector.extract_strided_slice %518 {offsets = [28, 0], sizes = [4, 96], strides = [1, 1]} : vector<32x192xf32> to vector<4x96xf32>
    %cst_147 = arith.constant dense<0.000000e+00> : vector<4x96xf32>
    %731 = tpu.matmul %729, %512, %cst_147 {dimension_numbers = #tpu.dot_dimension_numbers<[1], [0], [0], [1], [0, 0, 1, 1], [], []>} : vector<4x32xf32>, vector<32x96xf32>, vector<4x96xf32> -> vector<4x96xf32>
    %732 = vector.broadcast %513 : vector<1x96xf32> to vector<4x96xf32>
    %733 = arith.addf %731, %732 : vector<4x96xf32>
    %734 = vector.extract_strided_slice %730 {offsets = [0, 0], sizes = [4, 32], strides = [1, 1]} : vector<4x96xf32> to vector<4x32xf32>
    %735 = vector.extract_strided_slice %733 {offsets = [0, 0], sizes = [4, 32], strides = [1, 1]} : vector<4x96xf32> to vector<4x32xf32>
    %736 = arith.addf %734, %735 : vector<4x32xf32>
    %737 = arith.negf %736 : vector<4x32xf32>
    %738 = math.exp %737 : vector<4x32xf32>
    %cst_148 = arith.constant 1.000000e+00 : f32
    %739 = vector.broadcast %cst_148 : f32 to vector<4x32xf32>
    %740 = arith.addf %739, %738 : vector<4x32xf32>
    %741 = arith.divf %739, %740 : vector<4x32xf32>
    %742 = vector.extract_strided_slice %730 {offsets = [0, 32], sizes = [4, 32], strides = [1, 1]} : vector<4x96xf32> to vector<4x32xf32>
    %743 = vector.extract_strided_slice %733 {offsets = [0, 32], sizes = [4, 32], strides = [1, 1]} : vector<4x96xf32> to vector<4x32xf32>
    %744 = arith.addf %742, %743 : vector<4x32xf32>
    %745 = arith.negf %744 : vector<4x32xf32>
    %746 = math.exp %745 : vector<4x32xf32>
    %cst_149 = arith.constant 1.000000e+00 : f32
    %747 = vector.broadcast %cst_149 : f32 to vector<4x32xf32>
    %748 = arith.addf %747, %746 : vector<4x32xf32>
    %749 = arith.divf %747, %748 : vector<4x32xf32>
    %750 = vector.extract_strided_slice %730 {offsets = [0, 64], sizes = [4, 32], strides = [1, 1]} : vector<4x96xf32> to vector<4x32xf32>
    %751 = vector.extract_strided_slice %733 {offsets = [0, 64], sizes = [4, 32], strides = [1, 1]} : vector<4x96xf32> to vector<4x32xf32>
    %752 = arith.mulf %741, %751 : vector<4x32xf32>
    %753 = arith.addf %750, %752 : vector<4x32xf32>
    %754 = math.tanh %753 : vector<4x32xf32>
    %cst_150 = arith.constant 1.000000e+00 : f32
    %755 = vector.broadcast %cst_150 : f32 to vector<4x32xf32>
    %756 = arith.subf %755, %749 : vector<4x32xf32>
    %757 = arith.mulf %756, %754 : vector<4x32xf32>
    %758 = arith.mulf %749, %729 : vector<4x32xf32>
    %759 = arith.addf %757, %758 : vector<4x32xf32>
    %760 = vector.extract_strided_slice %518 {offsets = [28, 96], sizes = [4, 96], strides = [1, 1]} : vector<32x192xf32> to vector<4x96xf32>
    %cst_151 = arith.constant 0.000000e+00 : f32
    %761 = vector.broadcast %cst_151 : f32 to vector<4x32xf32>
    %cst_152 = arith.constant dense<0.000000e+00> : vector<4x96xf32>
    %762 = tpu.matmul %761, %514, %cst_152 {dimension_numbers = #tpu.dot_dimension_numbers<[1], [0], [0], [1], [0, 0, 1, 1], [], []>} : vector<4x32xf32>, vector<32x96xf32>, vector<4x96xf32> -> vector<4x96xf32>
    %763 = vector.broadcast %515 : vector<1x96xf32> to vector<4x96xf32>
    %764 = arith.addf %762, %763 : vector<4x96xf32>
    %765 = vector.extract_strided_slice %760 {offsets = [0, 0], sizes = [4, 32], strides = [1, 1]} : vector<4x96xf32> to vector<4x32xf32>
    %766 = vector.extract_strided_slice %764 {offsets = [0, 0], sizes = [4, 32], strides = [1, 1]} : vector<4x96xf32> to vector<4x32xf32>
    %767 = arith.addf %765, %766 : vector<4x32xf32>
    %768 = arith.negf %767 : vector<4x32xf32>
    %769 = math.exp %768 : vector<4x32xf32>
    %cst_153 = arith.constant 1.000000e+00 : f32
    %770 = vector.broadcast %cst_153 : f32 to vector<4x32xf32>
    %771 = arith.addf %770, %769 : vector<4x32xf32>
    %772 = arith.divf %770, %771 : vector<4x32xf32>
    %773 = vector.extract_strided_slice %760 {offsets = [0, 32], sizes = [4, 32], strides = [1, 1]} : vector<4x96xf32> to vector<4x32xf32>
    %774 = vector.extract_strided_slice %764 {offsets = [0, 32], sizes = [4, 32], strides = [1, 1]} : vector<4x96xf32> to vector<4x32xf32>
    %775 = arith.addf %773, %774 : vector<4x32xf32>
    %776 = arith.negf %775 : vector<4x32xf32>
    %777 = math.exp %776 : vector<4x32xf32>
    %cst_154 = arith.constant 1.000000e+00 : f32
    %778 = vector.broadcast %cst_154 : f32 to vector<4x32xf32>
    %779 = arith.addf %778, %777 : vector<4x32xf32>
    %780 = arith.divf %778, %779 : vector<4x32xf32>
    %781 = vector.extract_strided_slice %760 {offsets = [0, 64], sizes = [4, 32], strides = [1, 1]} : vector<4x96xf32> to vector<4x32xf32>
    %782 = vector.extract_strided_slice %764 {offsets = [0, 64], sizes = [4, 32], strides = [1, 1]} : vector<4x96xf32> to vector<4x32xf32>
    %783 = arith.mulf %772, %782 : vector<4x32xf32>
    %784 = arith.addf %781, %783 : vector<4x32xf32>
    %785 = math.tanh %784 : vector<4x32xf32>
    %cst_155 = arith.constant 1.000000e+00 : f32
    %786 = vector.broadcast %cst_155 : f32 to vector<4x32xf32>
    %787 = arith.subf %786, %780 : vector<4x32xf32>
    %788 = arith.mulf %787, %785 : vector<4x32xf32>
    %789 = arith.mulf %780, %761 : vector<4x32xf32>
    %790 = arith.addf %788, %789 : vector<4x32xf32>
    %c0_156 = arith.constant 0 : index
    %c0_157 = arith.constant 0 : index
    %791 = vector.load %arg13[%c0_156, %c0_157] : memref<64x8xf32, #tpu.memory_space<vmem>>, vector<64x8xf32>
    %792 = vector.extract_strided_slice %791 {offsets = [0, 0], sizes = [32, 8], strides = [1, 1]} : vector<64x8xf32> to vector<32x8xf32>
    %cst_158 = arith.constant dense<0.000000e+00> : vector<4x8xf32>
    %793 = tpu.matmul %759, %792, %cst_158 {dimension_numbers = #tpu.dot_dimension_numbers<[1], [0], [0], [1], [0, 0, 1, 1], [], []>} : vector<4x32xf32>, vector<32x8xf32>, vector<4x8xf32> -> vector<4x8xf32>
    %794 = arith.addf %1, %793 : vector<4x8xf32>
    %795 = vector.extract_strided_slice %791 {offsets = [32, 0], sizes = [32, 8], strides = [1, 1]} : vector<64x8xf32> to vector<32x8xf32>
    %cst_159 = arith.constant dense<0.000000e+00> : vector<4x8xf32>
    %796 = tpu.matmul %790, %795, %cst_159 {dimension_numbers = #tpu.dot_dimension_numbers<[1], [0], [0], [1], [0, 0, 1, 1], [], []>} : vector<4x32xf32>, vector<32x8xf32>, vector<4x8xf32> -> vector<4x8xf32>
    %797 = arith.addf %794, %796 : vector<4x8xf32>
    %c0_160 = arith.constant 0 : index
    %c0_161 = arith.constant 0 : index
    %798 = vector.load %arg14[%c0_160, %c0_161] : memref<1x8xf32, #tpu.memory_space<vmem>>, vector<1x8xf32>
    %799 = vector.broadcast %798 : vector<1x8xf32> to vector<4x8xf32>
    %800 = arith.addf %797, %799 : vector<4x8xf32>
    %c0_162 = arith.constant 0 : index
    %c0_163 = arith.constant 0 : index
    %801 = vector.load %arg15[%c0_162, %c0_163] : memref<4x8xf32, #tpu.memory_space<vmem>>, vector<4x8xf32>
    tpu.vector_store %arg15[%c0_162, %c0_163], %800 {strides = array<i32>} : memref<4x8xf32, #tpu.memory_space<vmem>>, vector<4x8xf32>,
    return
  }
}

</mosaic_0001>

<bundles_post_ra>
// kernel: gru_model_forward.1
= control target key start
LH: loop header
LB: loop body
LE: loop exit
PB: predicated region body
PF: predicated region fallthrough
CT: control target
= control target key end

     0   :  { %vm73_vm0 = vcmask 64512   ;;  %s3334_s0 = inlined_call_operand.vmem [shape: f32[32,8], index: 0, kind: input, shape index: {}]   ;;  %s3335_s1 = inlined_call_operand.vmem [shape: f32[8,192], index: 1, kind: input, shape index: {}]   ;;  %s3336_s2 = inlined_call_operand.vmem [shape: f32[1,192], index: 2, kind: input, shape index: {}]   ;;  %s3337_s3 = inlined_call_operand.vmem [shape: f32[32,96], index: 3, kind: input, shape index: {}]   ;;  %s3338_s4 = inlined_call_operand.vmem [shape: f32[1,96], index: 4, kind: input, shape index: {}]   ;;  %s3339_s5 = inlined_call_operand.vmem [shape: f32[32,96], index: 5, kind: input, shape index: {}]   ;;  %s3340_s6 = inlined_call_operand.vmem [shape: f32[1,96], index: 6, kind: input, shape index: {}]   ;;  %s3341_s7 = inlined_call_operand.vmem [shape: f32[64,192], index: 7, kind: input, shape index: {}]   ;;  %s3342_s8 = inlined_call_operand.vmem [shape: f32[1,192], index: 8, kind: input, shape index: {}]   ;;  %s3343_s9 = inlined_call_operand.vmem [shape: f32[32,96], index: 9, kind: input, shape index: {}]   ;;  %s3344_s10 = inlined_call_operand.vmem [shape: f32[1,96], index: 10, kind: input, shape index: {}]   ;;  %s3345_s11 = inlined_call_operand.vmem [shape: f32[32,96], index: 11, kind: input, shape index: {}]   ;;  %s3346_s12 = inlined_call_operand.vmem [shape: f32[1,96], index: 12, kind: input, shape index: {}]   ;;  %s3347_s13 = inlined_call_operand.vmem [shape: f32[64,8], index: 13, kind: input, shape index: {}]   ;;  %s3348_s14 = inlined_call_operand.vmem [shape: f32[1,8], index: 14, kind: input, shape index: {}]   ;;  %s3349_s15 = inlined_call_operand.hbm [shape: f32[4,8], index: 15, kind: output, shape index: {}]  }
   0x1   :  { %v2631_v0 = vld [vmem:[%s3337_s3 + $0x18] sm:$0xff]  ;;  %v2636_v1 = vld [vmem:[%s3337_s3 + $0x10] sm:$0xff]  ;;  %v55_v2 = vld [vmem:[%s3335_s1] sm:$0xff] }
   0x2   :  { %163 = vmatpush.msra.mxu2 %v2631_v0  ;;  %v2645_v3 = vld [vmem:[%s3334_s0] sm:$0xff]  ;;  %230 = vmatpush.msra.mxu3 %v2631_v0  ;;  %v2651_v4 = vld [vmem:[%s3337_s3 + $0x8] sm:$0xff] }
   0x3   :  { %101 = vmatpush.msra.mxu0 %v55_v2  ;;  %v2659_v5 = vld [vmem:[%s3337_s3] sm:$0xff] }
   0x4   :  { %164 = vmatpush.msra.mxu2 %v2636_v1  ;;  %2245 = vmatmul.msk.f32.vlgmr.msra.gmra.mxu0 %vm73_vm0, %v2645_v3 }
   0x5   :  { %231 = vmatpush.msra.mxu3 %v2636_v1 }
   0x6   :  { %20 = vsyncpa [#allocation4], 0  ;;  %165 = vmatpush.msra.mxu2 %v2651_v4  ;;  %v2543_v6 = vmov 0.0   ;;  %v2682_v7 = vld [vmem:[%s3338_s4] ss:$0 sm:$0xff]  ;;  %s2544_s16 = smov 64  }
   0x7   :  { %232 = vmatpush.msra.mxu3 %v2651_v4  ;;  %v2689_v10 = vld [vmem:[%s3336_s2] sm:$0x3]  ;;  %s2545_s2 = smov 96   ;;  %vm214_vm5 = vcmask 257024   ;;  %vm147_vm6 = vcmask 261120   ;;  %s2547_s30 = smov [#allocation3]  }
   0x8   :  { %166 = vmatpush.msra.mxu2 %v2659_v5  ;;  %v2692_v11 = vperm.slane %v2689_v10, 0  ;;  %s2234_s17 = sshll.u32 %s2547_s30, 4  ;;  %s2236_s18 = sshll.u32 %s3349_s15, 4  ;;  %s2235_s17 = int_to_ptr.vmem [resolvable:$true] %s2234_s17  ;;  %s2237_s18 = int_to_ptr.hbm [resolvable:$true] %s2236_s18 }
   0x9   :  { %167 = vmatmul.f32.vlgmr.msra.gmra.mxu2 %v2543_v6  ;;  %233 = vmatpush.msra.mxu3 %v2659_v5 }
   0xa   :  { %304 = vmatpush.msrb.mxu2 %v2631_v0 }
   0xb   :  { %371 = vmatpush.msrb.mxu3 %v2631_v0 }
   0xc   :  { %305 = vmatpush.msrb.mxu2 %v2636_v1 }
   0xd   :  { %372 = vmatpush.msrb.mxu3 %v2636_v1 }
   0xe   :  { %306 = vmatpush.msrb.mxu2 %v2651_v4 }
   0xf   :  { %373 = vmatpush.msrb.mxu3 %v2651_v4 }
  0x10   :  { %307 = vmatpush.msrb.mxu2 %v2659_v5 }
  0x11   :  { %374 = vmatpush.msrb.mxu3 %v2659_v5 }
  0x12   :  { %444 = vmatpush.msra.mxu2 %v2631_v0 }
  0x14   :  { %445 = vmatpush.msra.mxu2 %v2636_v1 }
  0x16   :  { %446 = vmatpush.msra.mxu2 %v2651_v4 }
  0x18   :  { %447 = vmatpush.msra.mxu2 %v2659_v5 }
  0x81   :  { %v103_v12 = vpop.f32.mrf.mxu0 }
  0x82   :  { %v2695_v13 = vadd.f32 %v103_v12, %v2692_v11 }
  0x8c   :  { %v168_v8 = vpop.f32.mrf.mxu2 }
  0x8d   :  { %v169_v9 = vadd.f32 %v2682_v7, %v168_v8 }
  0x8f   :  { %192 = vrot.lane.b32.xlu0 %v169_v9, %s2544_s16  ;;  %v171_v14 = vadd.f32 %v169_v9, %v2695_v13 }
  0x91   :  { %v2253_v15 = vmul.f32 -1.442695, %v171_v14  ;;  %v2721_v14 = vld [vmem:[%s3334_s0 + $0x8] sm:$0xff] }
  0x92   :  { %2246 = vmatmul.msk.f32.gmra.mxu0 %vm73_vm0, %v2721_v14 }
  0x93   :  { %2328 = vpow2.f32 %v2253_v15 }
  0x99   :  { %v2329_v16 = vpop.eup %2328 }
  0x9a   :  { %v175_v17 = vadd.f32 1.0, %v2329_v16 }
  0x9c   :  { %2330 = vrcp.f32 %v175_v17  ;;  %v187_v23 = vand.u32 2147483648, %v175_v17  ;;  %vm181_vm2 = vweird.f32 %v175_v17  ;;  %v185_v24 = vand.u32 2147483647, %v175_v17 }
  0x9e   :  { %v188_v26 = vor.u32 1.1754944e-38, %v187_v23  ;;  %vm186_vm4 = vcmp.eq.f32.partialorder %v185_v24, 8.507059e+37 }
  0xa2   :  { %v2331_v18 = vpop.eup %2330 }
  0xa3   :  { %v177_v19 = vmul.f32 %v2331_v18, %v175_v17  ;;  %vm182_vm1 = vweird.f32 %v2331_v18 }
  0xa4   :  { %vm183_vm3 = vmor %vm181_vm2, %vm182_vm1 }
  0xa5   :  { %v178_v20 = vsub.f32 1.0, %v177_v19 }
  0xa7   :  { %v179_v21 = vmul.f32 %v2331_v18, %v178_v20 }
  0xa9   :  { %v180_v22 = vadd.f32 %v2331_v18, %v179_v21 }
  0xab   :  { %v184_v25 = vsel %vm183_vm3, %v2331_v18, %v180_v22 }
  0xac   :  { %v189_v28 = vsel %vm186_vm4, %v188_v26, %v184_v25 }
  0xad   :  { %v202_v33 = vsub.f32 1.0, %v189_v28  ;;  %v208_v35 = vmul.f32 0.0, %v189_v28 }
 0x101   :  { %v193_v27 = vpop.permute.xlu0 %192 }
 0x102   :  { %v195_v29 = vmul.f32 %v193_v27, %v189_v28 }
 0x104   :  { %197 = vrot.lane.b32.xlu0 %v195_v29, %s2544_s16 }
 0x10f   :  { %v106_v18 = vpop.f32.mrf.mxu0 }
 0x110   :  { %v2733_v19 = vadd.f32 %v106_v18, %v2692_v11 }
 0x176   :  { %v198_v30 = vpop.permute.xlu0 %197 }
 0x177   :  { %v200_v31 = vadd.f32 %v198_v30, %v2695_v13 }
 0x179   :  { %2332 = vtanh.f32 %v200_v31 }
 0x17f   :  { %v2333_v32 = vpop.eup %2332 }
 0x180   :  { %204 = vrot.lane.b32.xlu1 %v2333_v32, %s2545_s2 }
 0x1f2   :  { %v205_v34 = vpop.permute.xlu1 %204 }
 0x1f3   :  { %v207_v36 = vmul.f32 %v205_v34, %v202_v33 }
 0x1f5   :  { %v209_v37 = vadd.f32 %v208_v35, %v207_v36 }
 0x1f7   :  { %211 = vrot.lane.b32.xlu1 %v209_v37, %s2545_s2  ;;  %v277_v54 = vrot.slane %v209_v37, 4 }
 0x269   :  { %v212_v38 = vpop.permute.xlu1 %211 }
 0x26a   :  { %215 = vst.msk [vmem:[#allocation2] sm:$0xf] %vm214_vm5, %v212_v38  ;;  %2254 = vmatmul.msk.f32.vlgmr.msra.gmra.mxu3 %vm147_vm6, %v212_v38 }
 0x26b   :  { %511 = vmatpush.msra.mxu3 %v2631_v0 }
 0x26d   :  { %512 = vmatpush.msra.mxu3 %v2636_v1 }
 0x26f   :  { %513 = vmatpush.msra.mxu3 %v2651_v4 }
 0x271   :  { %514 = vmatpush.msra.mxu3 %v2659_v5 }
 0x2ed   :  { %v235_v39 = vpop.f32.mrf.mxu3 }
 0x2ee   :  { %v236_v40 = vadd.f32 %v2682_v7, %v235_v39 }
 0x2f0   :  { %v239_v41 = vrot.slane %v236_v40, 4 }
 0x2f2   :  { %v241_v42 = vadd.f32 %v239_v41, %v2695_v13  ;;  %261 = vrot.lane.b32.xlu2 %v239_v41, %s2544_s16 }
 0x2f4   :  { %v2255_v43 = vmul.f32 -1.442695, %v241_v42 }
 0x2f6   :  { %2334 = vpow2.f32 %v2255_v43 }
 0x2fc   :  { %v2335_v44 = vpop.eup %2334 }
 0x2fd   :  { %v245_v45 = vadd.f32 1.0, %v2335_v44 }
 0x2ff   :  { %2336 = vrcp.f32 %v245_v45  ;;  %v257_v49 = vand.u32 2147483648, %v245_v45  ;;  %v255_v51 = vand.u32 2147483647, %v245_v45  ;;  %vm251_vm8 = vweird.f32 %v245_v45 }
 0x301   :  { %v258_v53 = vor.u32 1.1754944e-38, %v257_v49  ;;  %vm256_vm10 = vcmp.eq.f32.partialorder %v255_v51, 8.507059e+37 }
 0x305   :  { %v2337_v46 = vpop.eup %2336 }
 0x306   :  { %v247_v47 = vmul.f32 %v2337_v46, %v245_v45  ;;  %vm252_vm7 = vweird.f32 %v2337_v46 }
 0x307   :  { %vm253_vm9 = vmor %vm251_vm8, %vm252_vm7 }
 0x308   :  { %v248_v48 = vsub.f32 1.0, %v247_v47 }
 0x30a   :  { %v249_v50 = vmul.f32 %v2337_v46, %v248_v48 }
 0x30c   :  { %v250_v52 = vadd.f32 %v2337_v46, %v249_v50 }
 0x30e   :  { %v254_v55 = vsel %vm253_vm9, %v2337_v46, %v250_v52 }
 0x30f   :  { %v259_v56 = vsel %vm256_vm10, %v258_v53, %v254_v55 }
 0x310   :  { %v279_v57 = vmul.f32 %v277_v54, %v259_v56  ;;  %v271_v63 = vsub.f32 1.0, %v259_v56 }
 0x34c   :  { %v262_v58 = vpop.permute.xlu2 %261 }
 0x34d   :  { %v264_v59 = vmul.f32 %v262_v58, %v259_v56 }
 0x34f   :  { %266 = vrot.lane.b32.xlu2 %v264_v59, %s2544_s16 }
 0x3a9   :  { %v267_v60 = vpop.permute.xlu2 %266 }
 0x3aa   :  { %v269_v61 = vadd.f32 %v267_v60, %v2695_v13 }
 0x3ac   :  { %2338 = vtanh.f32 %v269_v61 }
 0x3b2   :  { %v2339_v62 = vpop.eup %2338 }
 0x3b3   :  { %273 = vrot.lane.b32.xlu0 %v2339_v62, %s2545_s2 }
 0x425   :  { %v274_v2 = vpop.permute.xlu0 %273 }
 0x426   :  { %v276_v8 = vmul.f32 %v274_v2, %v271_v63  ;;  %v53_v63 = vld [vmem:[%s3334_s0 + $0x10] sm:$0xff]  ;;  %v2758_v2 = vld [vmem:[%s3339_s5 + $0x18] sm:$0xff] }
 0x427   :  { %2247 = vmatmul.msk.f32.gmra.mxu0 %vm73_vm0, %v53_v63 }
 0x428   :  { %v2714_v9 = vadd.f32 %v279_v57, %v276_v8  ;;  %722 = vmatpush.msrb.mxu0 %v2758_v2  ;;  %v54_v8 = vld [vmem:[%s3334_s0 + $0x18] sm:$0xff] }
 0x42a   :  { %v287_v12 = vrot.slane %v2714_v9, 4 }
 0x42c   :  { %288 = vrot.lane.b32.xlu1 %v287_v12, %s2545_s2 }
 0x42f   :  { %2248 = vmatmul.msk.f32.gmra.mxu0 %vm73_vm0, %v54_v8 }
 0x49e   :  { %v289_v15 = vpop.permute.xlu1 %288 }
 0x49f   :  { %2256 = vmatmul.msk.f32.vlgmr.msrb.gmra.mxu2 %vm147_vm6, %v289_v15 }
 0x4a0   :  { %584 = vmatpush.msrb.mxu2 %v2631_v0 }
 0x4a2   :  { %585 = vmatpush.msrb.mxu2 %v2636_v1 }
 0x4a4   :  { %586 = vmatpush.msrb.mxu2 %v2651_v4 }
 0x4a6   :  { %587 = vmatpush.msrb.mxu2 %v2659_v5 }
 0x522   :  { %v309_v16 = vpop.f32.mrf.mxu2 }
 0x523   :  { %v310_v17 = vadd.f32 %v2682_v7, %v309_v16 }
 0x525   :  { %333 = vrot.lane.b32.xlu2 %v310_v17, %s2544_s16  ;;  %v312_v20 = vadd.f32 %v310_v17, %v2733_v19 }
 0x527   :  { %v2257_v21 = vmul.f32 -1.442695, %v312_v20 }
 0x529   :  { %2340 = vpow2.f32 %v2257_v21 }
 0x52f   :  { %v2341_v22 = vpop.eup %2340 }
 0x530   :  { %v316_v23 = vadd.f32 1.0, %v2341_v22  ;;  %v2775_v22 = vld [vmem:[%s3339_s5 + $0x10] sm:$0xff] }
 0x531   :  { %723 = vmatpush.msrb.mxu0 %v2775_v22 }
 0x532   :  { %2342 = vrcp.f32 %v316_v23  ;;  %v328_v29 = vand.u32 2147483648, %v316_v23  ;;  %vm322_vm12 = vweird.f32 %v316_v23  ;;  %v326_v30 = vand.u32 2147483647, %v316_v23 }
 0x534   :  { %v329_v32 = vor.u32 1.1754944e-38, %v328_v29  ;;  %vm327_vm14 = vcmp.eq.f32.partialorder %v326_v30, 8.507059e+37 }
 0x538   :  { %v2343_v24 = vpop.eup %2342 }
 0x539   :  { %v318_v25 = vmul.f32 %v2343_v24, %v316_v23  ;;  %vm323_vm11 = vweird.f32 %v2343_v24  ;;  %v2780_v23 = vld [vmem:[%s3339_s5 + $0x8] sm:$0xff] }
 0x53a   :  { %vm324_vm13 = vmor %vm322_vm12, %vm323_vm11  ;;  %724 = vmatpush.msrb.mxu0 %v2780_v23 }
 0x53b   :  { %v319_v26 = vsub.f32 1.0, %v318_v25 }
 0x53d   :  { %v320_v27 = vmul.f32 %v2343_v24, %v319_v26  ;;  %v109_v26 = vpop.f32.mrf.mxu0 }
 0x53f   :  { %v321_v28 = vadd.f32 %v2343_v24, %v320_v27 }
 0x541   :  { %v325_v31 = vsel %vm324_vm13, %v2343_v24, %v321_v28  ;;  %v2786_v24 = vld [vmem:[%s3339_s5] sm:$0xff] }
 0x542   :  { %v330_v34 = vsel %vm327_vm14, %v329_v32, %v325_v31  ;;  %725 = vmatpush.msrb.mxu0 %v2786_v24  ;;  %v2803_v28 = vld [vmem:[%s3340_s6] ss:$0 sm:$0xff]  ;;  %v56_v32 = vld [vmem:[%s3335_s1 + $0x8] sm:$0xff]  ;;  %s2546_s1 = smov 32  }
 0x543   :  { %v343_v39 = vsub.f32 1.0, %v330_v34  ;;  %v350_v41 = vmul.f32 %v330_v34, %v287_v12  ;;  %726 = vmatmul.f32.vlgmr.msrb.gmra.mxu0 %v2543_v6  ;;  %130 = vmatpush.msra.mxu1 %v56_v32 }
 0x544   :  { %1088 = vmatpush.msra.mxu0 %v2758_v2  ;;  %2249 = vmatmul.msk.f32.vlgmr.msra.gmra.mxu1 %vm73_vm0, %v2645_v3 }
 0x545   :  { %v112_v27 = vpop.f32.mrf.mxu0  ;;  %814 = vmatpush.msrb.mxu1 %v2758_v2 }
 0x546   :  { %1089 = vmatpush.msra.mxu0 %v2775_v22 }
 0x547   :  { %815 = vmatpush.msrb.mxu1 %v2775_v22 }
 0x548   :  { %1090 = vmatpush.msra.mxu0 %v2780_v23 }
 0x549   :  { %816 = vmatpush.msrb.mxu1 %v2780_v23 }
 0x54a   :  { %1091 = vmatpush.msra.mxu0 %v2786_v24 }
 0x54b   :  { %817 = vmatpush.msrb.mxu1 %v2786_v24 }
 0x54c   :  { %2250 = vmatmul.msk.f32.gmra.mxu1 %vm73_vm0, %v2721_v14  ;;  %v2828_v14 = vadd.f32 %v109_v26, %v2692_v11 }
 0x54d   :  { %1181 = vmatpush.msra.mxu1 %v2758_v2 }
 0x54f   :  { %1182 = vmatpush.msra.mxu1 %v2775_v22 }
 0x551   :  { %1183 = vmatpush.msra.mxu1 %v2780_v23 }
 0x553   :  { %1184 = vmatpush.msra.mxu1 %v2786_v24 }
 0x554   :  { %2251 = vmatmul.msk.f32.gmra.mxu1 %vm73_vm0, %v53_v63 }
 0x55c   :  { %2252 = vmatmul.msk.f32.gmra.mxu1 %vm73_vm0, %v54_v8 }
 0x57f   :  { %v334_v33 = vpop.permute.xlu2 %333 }
 0x580   :  { %v336_v35 = vmul.f32 %v334_v33, %v330_v34 }
 0x582   :  { %338 = vrot.lane.b32.xlu0 %v336_v35, %s2544_s16  ;;  %v2832_v35 = vadd.f32 %v112_v27, %v2692_v11 }
 0x5c0   :  { %v727_v29 = vpop.f32.mrf.mxu0 }
 0x5c1   :  { %v728_v30 = vadd.f32 %v2803_v28, %v727_v29  ;;  %v2837_v63 = vpop.f32.mrf.mxu1 }
 0x5c3   :  { %v731_v31 = vrot.slane %v728_v30, 4 }
 0x5c9   :  { %v2839_v8 = vpop.f32.mrf.mxu1 }
 0x5f4   :  { %v339_v36 = vpop.permute.xlu0 %338 }
 0x5f5   :  { %v341_v37 = vadd.f32 %v339_v36, %v2733_v19 }
 0x5f7   :  { %2344 = vtanh.f32 %v341_v37 }
 0x5fd   :  { %v2345_v38 = vpop.eup %2344 }
 0x5fe   :  { %345 = vrot.lane.b32.xlu1 %v2345_v38, %s2545_s2 }
 0x670   :  { %v346_v40 = vpop.permute.xlu1 %345 }
 0x671   :  { %v348_v42 = vmul.f32 %v346_v40, %v343_v39 }
 0x673   :  { %v351_v43 = vadd.f32 %v350_v41, %v348_v42 }
 0x675   :  { %353 = vrot.lane.b32.xlu2 %v351_v43, %s2545_s2  ;;  %v418_v12 = vrot.slane %v351_v43, 4 }
 0x6cf   :  { %v354_v44 = vpop.permute.xlu2 %353 }
 0x6d0   :  { %356 = vst.msk [vmem:[#allocation2 + $0x8] sm:$0xf] %vm214_vm5, %v354_v44  ;;  %2258 = vmatmul.msk.f32.vlgmr.msrb.gmra.mxu3 %vm147_vm6, %v354_v44 }
 0x6d1   :  { %651 = vmatpush.msrb.mxu3 %v2631_v0 }
 0x6d3   :  { %652 = vmatpush.msrb.mxu3 %v2636_v1 }
 0x6d5   :  { %653 = vmatpush.msrb.mxu3 %v2651_v4 }
 0x6d7   :  { %654 = vmatpush.msrb.mxu3 %v2659_v5 }
 0x753   :  { %v376_v45 = vpop.f32.mrf.mxu3 }
 0x754   :  { %v377_v46 = vadd.f32 %v2682_v7, %v376_v45 }
 0x756   :  { %v380_v47 = vrot.slane %v377_v46, 4 }
 0x758   :  { %402 = vrot.lane.b32.xlu0 %v380_v47, %s2544_s16  ;;  %v382_v48 = vadd.f32 %v380_v47, %v2733_v19 }
 0x75a   :  { %v2259_v49 = vmul.f32 -1.442695, %v382_v48 }
 0x75c   :  { %2346 = vpow2.f32 %v2259_v49 }
 0x762   :  { %v2347_v50 = vpop.eup %2346 }
 0x763   :  { %v386_v51 = vadd.f32 1.0, %v2347_v50 }
 0x765   :  { %2348 = vrcp.f32 %v386_v51  ;;  %v398_v5 = vand.u32 2147483648, %v386_v51  ;;  %vm392_vm1 = vweird.f32 %v386_v51  ;;  %v396_v54 = vand.u32 2147483647, %v386_v51 }
 0x767   :  { %v399_v56 = vor.u32 1.1754944e-38, %v398_v5  ;;  %vm397_vm3 = vcmp.eq.f32.partialorder %v396_v54, 8.507059e+37 }
 0x76b   :  { %v2349_v0 = vpop.eup %2348 }
 0x76c   :  { %v388_v52 = vmul.f32 %v2349_v0, %v386_v51  ;;  %vm393_vm15 = vweird.f32 %v2349_v0 }
 0x76d   :  { %vm394_vm2 = vmor %vm392_vm1, %vm393_vm15 }
 0x76e   :  { %v389_v1 = vsub.f32 1.0, %v388_v52 }
 0x770   :  { %v390_v53 = vmul.f32 %v2349_v0, %v389_v1 }
 0x772   :  { %v391_v4 = vadd.f32 %v2349_v0, %v390_v53 }
 0x774   :  { %v395_v55 = vsel %vm394_vm2, %v2349_v0, %v391_v4 }
 0x775   :  { %v400_v58 = vsel %vm397_vm3, %v399_v56, %v395_v55 }
 0x776   :  { %v412_v15 = vsub.f32 1.0, %v400_v58  ;;  %v420_v18 = vmul.f32 %v418_v12, %v400_v58  ;;  %v2841_v12 = vpop.f32.mrf.mxu1 }
 0x7ca   :  { %v403_v57 = vpop.permute.xlu0 %402 }
 0x7cb   :  { %v405_v59 = vmul.f32 %v403_v57, %v400_v58 }
 0x7cd   :  { %407 = vrot.lane.b32.xlu1 %v405_v59, %s2544_s16 }
 0x83f   :  { %v408_v60 = vpop.permute.xlu1 %407 }
 0x840   :  { %v410_v61 = vadd.f32 %v408_v60, %v2733_v19 }
 0x842   :  { %2350 = vtanh.f32 %v410_v61 }
 0x848   :  { %v2351_v62 = vpop.eup %2350 }
 0x849   :  { %414 = vrot.lane.b32.xlu2 %v2351_v62, %s2545_s2 }
 0x851   :  { %732 = vrot.lane.b32.xlu2 %v731_v31, %s2545_s2 }
 0x8a3   :  { %v415_v16 = vpop.permute.xlu2 %414 }
 0x8a4   :  { %v417_v17 = vmul.f32 %v415_v16, %v412_v15  ;;  %v2844_v16 = vperm.slane %v2689_v10, 1 }
 0x8a6   :  { %v2766_v20 = vadd.f32 %v420_v18, %v417_v17  ;;  %v141_v18 = vpop.f32.mrf.mxu1 }
 0x8a8   :  { %v427_v21 = vrot.slane %v2766_v20, 4 }
 0x8aa   :  { %428 = vrot.lane.b32.xlu0 %v427_v21, %s2545_s2 }
 0x8ab   :  { %v733_v36 = vpop.permute.xlu2 %732 }
 0x8ac   :  { %v735_v38 = vadd.f32 %v733_v36, %v2832_v35 }
 0x8ae   :  { %v2268_v39 = vmul.f32 -1.442695, %v735_v38 }
 0x91c   :  { %v429_v25 = vpop.permute.xlu0 %428 }
 0x91d   :  { %2260 = vmatmul.msk.f32.vlgmr.msra.gmra.mxu2 %vm147_vm6, %v429_v25  ;;  %v2848_v25 = vadd.f32 %v141_v18, %v2844_v16 }
 0x91e   :  { %905 = vmatpush.msra.mxu2 %v2758_v2 }
 0x91f   :  { %v755_v10 = vadd.f32 %v733_v36, %v2848_v25 }
 0x920   :  { %906 = vmatpush.msra.mxu2 %v2775_v22 }
 0x922   :  { %907 = vmatpush.msra.mxu2 %v2780_v23 }
 0x924   :  { %908 = vmatpush.msra.mxu2 %v2786_v24 }
 0x9a0   :  { %v449_v33 = vpop.f32.mrf.mxu2 }
 0x9a1   :  { %v450_v3 = vadd.f32 %v2682_v7, %v449_v33 }
 0x9a3   :  { %473 = vrot.lane.b32.xlu1 %v450_v3, %s2544_s16  ;;  %v452_v34 = vadd.f32 %v450_v3, %v2828_v14 }
 0x9a5   :  { %v2261_v37 = vmul.f32 -1.442695, %v452_v34 }
 0x9a7   :  { %2352 = vpow2.f32 %v2261_v37 }
 0x9a8   :  { %2354 = vpow2.f32 %v2268_v39 }
 0x9ab   :  { %775 = vrot.lane.b32.xlu1 %v731_v31, %s2546_s1  ;;  %v2269_v31 = vmul.f32 -1.442695, %v755_v10 }
 0x9ad   :  { %v2353_v40 = vpop.eup %2352 }
 0x9ae   :  { %v456_v41 = vadd.f32 1.0, %v2353_v40  ;;  %v2355_v42 = vpop.eup %2354 }
 0x9af   :  { %v739_v43 = vadd.f32 1.0, %v2355_v42 }
 0x9b0   :  { %2356 = vrcp.f32 %v456_v41  ;;  %v468_v51 = vand.u32 2147483648, %v456_v41  ;;  %vm462_vm4 = vweird.f32 %v456_v41  ;;  %v466_v0 = vand.u32 2147483647, %v456_v41 }
 0x9b1   :  { %2358 = vrcp.f32 %v739_v43  ;;  %vm745_vm8 = vweird.f32 %v739_v43  ;;  %v751_v4 = vand.u32 2147483648, %v739_v43  ;;  %v749_v54 = vand.u32 2147483647, %v739_v43 }
 0x9b2   :  { %v469_v53 = vor.u32 1.1754944e-38, %v468_v51  ;;  %vm467_vm10 = vcmp.eq.f32.partialorder %v466_v0, 8.507059e+37 }
 0x9b3   :  { %v752_v58 = vor.u32 1.1754944e-38, %v751_v4  ;;  %vm750_vm12 = vcmp.eq.f32.partialorder %v749_v54, 8.507059e+37 }
 0x9b6   :  { %v2357_v44 = vpop.eup %2356 }
 0x9b7   :  { %v458_v45 = vmul.f32 %v2357_v44, %v456_v41  ;;  %v2359_v46 = vpop.eup %2358  ;;  %vm463_vm0 = vweird.f32 %v2357_v44 }
 0x9b8   :  { %v741_v48 = vmul.f32 %v2359_v46, %v739_v43  ;;  %vm464_vm7 = vmor %vm462_vm4, %vm463_vm0  ;;  %vm746_vm9 = vweird.f32 %v2359_v46 }
 0x9b9   :  { %v459_v47 = vsub.f32 1.0, %v458_v45  ;;  %vm747_vm11 = vmor %vm745_vm8, %vm746_vm9 }
 0x9ba   :  { %v742_v49 = vsub.f32 1.0, %v741_v48 }
 0x9bb   :  { %v460_v11 = vmul.f32 %v2357_v44, %v459_v47 }
 0x9bc   :  { %v743_v52 = vmul.f32 %v2359_v46, %v742_v49 }
 0x9bd   :  { %v461_v50 = vadd.f32 %v2357_v44, %v460_v11 }
 0x9be   :  { %v744_v5 = vadd.f32 %v2359_v46, %v743_v52 }
 0x9bf   :  { %v465_v1 = vsel %vm464_vm7, %v2357_v44, %v461_v50 }
 0x9c0   :  { %v470_v56 = vsel %vm467_vm10, %v469_v53, %v465_v1  ;;  %v748_v59 = vsel %vm747_vm11, %v2359_v46, %v744_v5 }
 0x9c1   :  { %v753_v60 = vsel %vm750_vm12, %v752_v58, %v748_v59  ;;  %v483_v43 = vsub.f32 1.0, %v470_v56  ;;  %v490_v45 = vmul.f32 %v470_v56, %v427_v21 }
 0xa15   :  { %v474_v55 = vpop.permute.xlu1 %473 }
 0xa16   :  { %v476_v57 = vmul.f32 %v474_v55, %v470_v56 }
 0xa18   :  { %478 = vrot.lane.b32.xlu0 %v476_v57, %s2544_s16 }
 0xa1d   :  { %v776_v61 = vpop.permute.xlu1 %775 }
 0xa1e   :  { %v778_v62 = vmul.f32 %v776_v61, %v753_v60 }
 0xa20   :  { %780 = vrot.lane.b32.xlu0 %v778_v62, %s2544_s16 }
 0xa8a   :  { %v479_v15 = vpop.permute.xlu0 %478 }
 0xa8b   :  { %v481_v17 = vadd.f32 %v479_v15, %v2828_v14 }
 0xa8d   :  { %2360 = vtanh.f32 %v481_v17 }
 0xa92   :  { %v781_v26 = vpop.permute.xlu0 %780 }
 0xa93   :  { %v2361_v27 = vpop.eup %2360  ;;  %v783_v29 = vadd.f32 %v781_v26, %v2848_v25 }
 0xa94   :  { %485 = vrot.lane.b32.xlu2 %v2361_v27, %s2545_s2 }
 0xa95   :  { %2362 = vtanh.f32 %v783_v29 }
 0xa96   :  { %2364 = vpow2.f32 %v2269_v31 }
 0xa9b   :  { %v2363_v30 = vpop.eup %2362 }
 0xa9c   :  { %787 = vrot.lane.b32.xlu2 %v2363_v30, %s2545_s2  ;;  %v2365_v32 = vpop.eup %2364 }
 0xa9d   :  { %v759_v33 = vadd.f32 1.0, %v2365_v32 }
 0xa9f   :  { %2366 = vrcp.f32 %v759_v33  ;;  %vm765_vm13 = vweird.f32 %v759_v33  ;;  %v771_v39 = vand.u32 2147483648, %v759_v33  ;;  %v769_v41 = vand.u32 2147483647, %v759_v33 }
 0xaa1   :  { %v772_v42 = vor.u32 1.1754944e-38, %v771_v39  ;;  %vm770_vm1 = vcmp.eq.f32.partialorder %v769_v41, 8.507059e+37 }
 0xaa5   :  { %v2367_v3 = vpop.eup %2366 }
 0xaa6   :  { %v761_v34 = vmul.f32 %v2367_v3, %v759_v33  ;;  %vm766_vm14 = vweird.f32 %v2367_v3 }
 0xaa7   :  { %vm767_vm15 = vmor %vm765_vm13, %vm766_vm14 }
 0xaa8   :  { %v762_v37 = vsub.f32 1.0, %v761_v34 }
 0xaaa   :  { %v763_v38 = vmul.f32 %v2367_v3, %v762_v37 }
 0xaac   :  { %v764_v40 = vadd.f32 %v2367_v3, %v763_v38 }
 0xaae   :  { %v768_v44 = vsel %vm767_vm15, %v2367_v3, %v764_v40 }
 0xaaf   :  { %v773_v47 = vsel %vm770_vm1, %v772_v42, %v768_v44 }
 0xab0   :  { %v785_v11 = vsub.f32 1.0, %v773_v47  ;;  %v791_v49 = vmul.f32 0.0, %v773_v47 }
 0xaee   :  { %v486_v36 = vpop.permute.xlu2 %485 }
 0xaef   :  { %v488_v46 = vmul.f32 %v486_v36, %v483_v43 }
 0xaf1   :  { %v2856_v48 = vadd.f32 %v490_v45, %v488_v46 }
 0xaf3   :  { %493 = vrot.lane.b32.xlu1 %v2856_v48, %s2545_s2 }
 0xaf6   :  { %v788_v50 = vpop.permute.xlu2 %787 }
 0xaf7   :  { %v790_v51 = vmul.f32 %v788_v50, %v785_v11 }
 0xaf9   :  { %v2860_v0 = vadd.f32 %v791_v49, %v790_v51 }
 0xafb   :  { %v799_v52 = vrot.slane %v2860_v0, 4 }
 0xafd   :  { %2270 = vmatmul.msk.f32.vlgmr.msrb.gmra.mxu1 %vm147_vm6, %v799_v52 }
 0xb65   :  { %v494_v21 = vpop.permute.xlu1 %493 }
 0xb66   :  { %496 = vst.msk [vmem:[#allocation2 + $0x10] sm:$0xf] %vm214_vm5, %v494_v21  ;;  %2262 = vmatmul.msk.f32.vlgmr.msra.gmra.mxu3 %vm147_vm6, %v494_v21 }
 0xb67   :  { %998 = vmatpush.msra.mxu3 %v2758_v2 }
 0xb69   :  { %999 = vmatpush.msra.mxu3 %v2775_v22 }
 0xb6b   :  { %1000 = vmatpush.msra.mxu3 %v2780_v23 }
 0xb6d   :  { %1001 = vmatpush.msra.mxu3 %v2786_v24 }
 0xb7a   :  { %v819_v1 = vpop.f32.mrf.mxu1 }
 0xb7b   :  { %v820_v53 = vadd.f32 %v2803_v28, %v819_v1 }
 0xb7d   :  { %823 = vrot.lane.b32.xlu1 %v820_v53, %s2545_s2 }
 0xbe9   :  { %v516_v4 = vpop.f32.mrf.mxu3 }
 0xbea   :  { %v517_v5 = vadd.f32 %v2682_v7, %v516_v4 }
 0xbec   :  { %v520_v54 = vrot.slane %v517_v5, 4 }
 0xbee   :  { %542 = vrot.lane.b32.xlu0 %v520_v54, %s2544_s16  ;;  %v522_v55 = vadd.f32 %v520_v54, %v2828_v14 }
 0xbef   :  { %v2878_v57 = vpop.permute.xlu1 %823 }
 0xbf0   :  { %v2263_v56 = vmul.f32 -1.442695, %v522_v55  ;;  %v826_v58 = vadd.f32 %v2878_v57, %v2832_v35 }
 0xbf2   :  { %2368 = vpow2.f32 %v2263_v56  ;;  %v2271_v59 = vmul.f32 -1.442695, %v826_v58 }
 0xbf4   :  { %2370 = vpow2.f32 %v2271_v59  ;;  %v846_v59 = vadd.f32 %v2878_v57, %v2848_v25 }
 0xbf6   :  { %866 = vrot.lane.b32.xlu0 %v820_v53, %s2546_s1  ;;  %v558_v53 = vrot.slane %v2856_v48, 4 }
 0xbf8   :  { %v2369_v60 = vpop.eup %2368 }
 0xbf9   :  { %v526_v61 = vadd.f32 1.0, %v2369_v60  ;;  %v2272_v60 = vmul.f32 -1.442695, %v846_v59 }
 0xbfa   :  { %v2371_v62 = vpop.eup %2370 }
 0xbfb   :  { %2372 = vrcp.f32 %v526_v61  ;;  %v830_v15 = vadd.f32 1.0, %v2371_v62  ;;  %v538_v32 = vand.u32 2147483648, %v526_v61  ;;  %vm532_vm3 = vweird.f32 %v526_v61 }
 0xbfc   :  { %v536_v33 = vand.u32 2147483647, %v526_v61 }
 0xbfd   :  { %2374 = vrcp.f32 %v830_v15  ;;  %v539_v37 = vor.u32 1.1754944e-38, %v538_v32  ;;  %v842_v42 = vand.u32 2147483648, %v830_v15  ;;  %vm836_vm8 = vweird.f32 %v830_v15 }
 0xbfe   :  { %vm537_vm4 = vcmp.eq.f32.partialorder %v536_v33, 8.507059e+37  ;;  %v840_v43 = vand.u32 2147483647, %v830_v15 }
 0xbff   :  { %v843_v36 = vor.u32 1.1754944e-38, %v842_v42 }
 0xc00   :  { %vm841_vm10 = vcmp.eq.f32.partialorder %v840_v43, 8.507059e+37 }
 0xc01   :  { %v2373_v17 = vpop.eup %2372 }
 0xc02   :  { %v528_v18 = vmul.f32 %v2373_v17, %v526_v61  ;;  %vm533_vm2 = vweird.f32 %v2373_v17 }
 0xc03   :  { %v2375_v27 = vpop.eup %2374  ;;  %vm534_vm0 = vmor %vm532_vm3, %vm533_vm2 }
 0xc04   :  { %v529_v26 = vsub.f32 1.0, %v528_v18  ;;  %v832_v30 = vmul.f32 %v2375_v27, %v830_v15  ;;  %vm837_vm7 = vweird.f32 %v2375_v27 }
 0xc05   :  { %vm838_vm9 = vmor %vm836_vm8, %vm837_vm7 }
 0xc06   :  { %v530_v29 = vmul.f32 %v2373_v17, %v529_v26  ;;  %v833_v31 = vsub.f32 1.0, %v832_v30 }
 0xc08   :  { %v531_v10 = vadd.f32 %v2373_v17, %v530_v29  ;;  %v834_v34 = vmul.f32 %v2375_v27, %v833_v31 }
 0xc0a   :  { %v535_v3 = vsel %vm534_vm0, %v2373_v17, %v531_v10  ;;  %v835_v41 = vadd.f32 %v2375_v27, %v834_v34 }
 0xc0b   :  { %v540_v38 = vsel %vm537_vm4, %v539_v37, %v535_v3 }
 0xc0c   :  { %v839_v44 = vsel %vm838_vm9, %v2375_v27, %v835_v41  ;;  %v552_v4 = vsub.f32 1.0, %v540_v38  ;;  %v560_v54 = vmul.f32 %v558_v53, %v540_v38 }
 0xc0d   :  { %v844_v45 = vsel %vm841_vm10, %v843_v36, %v839_v44 }
 0xc60   :  { %v543_v39 = vpop.permute.xlu0 %542 }
 0xc61   :  { %v545_v40 = vmul.f32 %v543_v39, %v540_v38 }
 0xc63   :  { %547 = vrot.lane.b32.xlu2 %v545_v40, %s2544_s16 }
 0xc68   :  { %v867_v46 = vpop.permute.xlu0 %866 }
 0xc69   :  { %v869_v47 = vmul.f32 %v867_v46, %v844_v45 }
 0xc6b   :  { %871 = vrot.lane.b32.xlu2 %v869_v47, %s2544_s16 }
 0xcbd   :  { %v548_v11 = vpop.permute.xlu2 %547 }
 0xcbe   :  { %v550_v49 = vadd.f32 %v548_v11, %v2828_v14 }
 0xcc0   :  { %2376 = vtanh.f32 %v550_v49 }
 0xcc5   :  { %v872_v50 = vpop.permute.xlu2 %871 }
 0xcc6   :  { %v2377_v51 = vpop.eup %2376  ;;  %v874_v21 = vadd.f32 %v872_v50, %v2848_v25 }
 0xcc7   :  { %554 = vrot.lane.b32.xlu1 %v2377_v51, %s2545_s2 }
 0xcc8   :  { %2378 = vtanh.f32 %v874_v21 }
 0xcc9   :  { %2380 = vpow2.f32 %v2272_v60 }
 0xcce   :  { %v2379_v1 = vpop.eup %2378 }
 0xccf   :  { %878 = vrot.lane.b32.xlu1 %v2379_v1, %s2545_s2  ;;  %v2381_v61 = vpop.eup %2380 }
 0xcd0   :  { %v850_v62 = vadd.f32 1.0, %v2381_v61 }
 0xcd2   :  { %2382 = vrcp.f32 %v850_v62  ;;  %v862_v27 = vand.u32 2147483648, %v850_v62  ;;  %vm856_vm12 = vweird.f32 %v850_v62  ;;  %v860_v29 = vand.u32 2147483647, %v850_v62 }
 0xcd4   :  { %v863_v10 = vor.u32 1.1754944e-38, %v862_v27  ;;  %vm861_vm14 = vcmp.eq.f32.partialorder %v860_v29, 8.507059e+37 }
 0xcd8   :  { %v2383_v48 = vpop.eup %2382 }
 0xcd9   :  { %v852_v15 = vmul.f32 %v2383_v48, %v850_v62  ;;  %vm857_vm11 = vweird.f32 %v2383_v48 }
 0xcda   :  { %vm858_vm13 = vmor %vm856_vm12, %vm857_vm11 }
 0xcdb   :  { %v853_v17 = vsub.f32 1.0, %v852_v15 }
 0xcdd   :  { %v854_v18 = vmul.f32 %v2383_v48, %v853_v17 }
 0xcdf   :  { %v855_v26 = vadd.f32 %v2383_v48, %v854_v18 }
 0xce1   :  { %v859_v30 = vsel %vm858_vm13, %v2383_v48, %v855_v26 }
 0xce2   :  { %v864_v31 = vsel %vm861_vm14, %v863_v10, %v859_v30 }
 0xce3   :  { %v876_v32 = vsub.f32 1.0, %v864_v31  ;;  %v883_v3 = vmul.f32 %v864_v31, %v799_v52 }
 0xd39   :  { %v555_v5 = vpop.permute.xlu1 %554 }
 0xd3a   :  { %v557_v55 = vmul.f32 %v555_v5, %v552_v4 }
 0xd3c   :  { %v2889_v56 = vadd.f32 %v560_v54, %v557_v55 }
 0xd3e   :  { %v567_v58 = vrot.slane %v2889_v56, 4 }
 0xd40   :  { %568 = vrot.lane.b32.xlu0 %v567_v58, %s2545_s2 }
 0xd41   :  { %v879_v25 = vpop.permute.xlu1 %878 }
 0xd42   :  { %v881_v33 = vmul.f32 %v879_v25, %v876_v32  ;;  %v2921_v32 = vadd.f32 %v2841_v12, %v2844_v16 }
 0xd44   :  { %v2903_v34 = vadd.f32 %v883_v3, %v881_v33 }
 0xdb2   :  { %v569_v57 = vpop.permute.xlu0 %568 }
 0xdb3   :  { %2264 = vmatmul.msk.f32.vlgmr.msrb.gmra.mxu2 %vm147_vm6, %v569_v57 }
 0xdb4   :  { %1271 = vmatpush.msrb.mxu2 %v2758_v2 }
 0xdb6   :  { %1272 = vmatpush.msrb.mxu2 %v2775_v22 }
 0xdb8   :  { %1273 = vmatpush.msrb.mxu2 %v2780_v23 }
 0xdba   :  { %1274 = vmatpush.msrb.mxu2 %v2786_v24 }
 0xdbb   :  { %2273 = vmatmul.msk.f32.vlgmr.msra.gmra.mxu2 %vm147_vm6, %v2903_v34 }
 0xe36   :  { %v589_v37 = vpop.f32.mrf.mxu2 }
 0xe37   :  { %v590_v38 = vadd.f32 %v2682_v7, %v589_v37 }
 0xe39   :  { %613 = vrot.lane.b32.xlu2 %v590_v38, %s2544_s16  ;;  %v592_v52 = vadd.f32 %v590_v38, %v2832_v35 }
 0xe3b   :  { %v2265_v42 = vmul.f32 -1.442695, %v592_v52 }
 0xe3d   :  { %2384 = vpow2.f32 %v2265_v42 }
 0xe3e   :  { %v910_v39 = vpop.f32.mrf.mxu2 }
 0xe3f   :  { %v911_v40 = vadd.f32 %v2803_v28, %v910_v39 }
 0xe41   :  { %v914_v41 = vrot.slane %v911_v40, 4 }
 0xe43   :  { %915 = vrot.lane.b32.xlu0 %v914_v41, %s2545_s2  ;;  %958 = vrot.lane.b32.xlu2 %v914_v41, %s2546_s1  ;;  %v2385_v43 = vpop.eup %2384 }
 0xe44   :  { %v596_v44 = vadd.f32 1.0, %v2385_v43 }
 0xe46   :  { %2386 = vrcp.f32 %v596_v44  ;;  %v608_v11 = vand.u32 2147483648, %v596_v44  ;;  %vm602_vm1 = vweird.f32 %v596_v44  ;;  %v606_v49 = vand.u32 2147483647, %v596_v44 }
 0xe48   :  { %v609_v51 = vor.u32 1.1754944e-38, %v608_v11  ;;  %vm607_vm3 = vcmp.eq.f32.partialorder %v606_v49, 8.507059e+37 }
 0xe4c   :  { %v2387_v36 = vpop.eup %2386 }
 0xe4d   :  { %v598_v45 = vmul.f32 %v2387_v36, %v596_v44  ;;  %vm603_vm15 = vweird.f32 %v2387_v36 }
 0xe4e   :  { %vm604_vm2 = vmor %vm602_vm1, %vm603_vm15 }
 0xe4f   :  { %v599_v7 = vsub.f32 1.0, %v598_v45 }
 0xe51   :  { %v600_v46 = vmul.f32 %v2387_v36, %v599_v7 }
 0xe53   :  { %v601_v47 = vadd.f32 %v2387_v36, %v600_v46 }
 0xe55   :  { %v605_v50 = vsel %vm604_vm2, %v2387_v36, %v601_v47 }
 0xe56   :  { %v610_v1 = vsel %vm607_vm3, %v609_v51, %v605_v50 }
 0xe57   :  { %v623_v38 = vsub.f32 1.0, %v610_v1  ;;  %v630_v40 = vmul.f32 %v610_v1, %v567_v58 }
 0xe93   :  { %v614_v21 = vpop.permute.xlu2 %613 }
 0xe94   :  { %v616_v53 = vmul.f32 %v614_v21, %v610_v1 }
 0xe96   :  { %618 = vrot.lane.b32.xlu1 %v616_v53, %s2544_s16  ;;  %v974_v53 = vrot.slane %v2903_v34, 4 }
 0xe9d   :  { %v959_v29 = vpop.permute.xlu2 %958 }
 0xeb5   :  { %v916_v4 = vpop.permute.xlu0 %915 }
 0xeb6   :  { %v918_v5 = vadd.f32 %v916_v4, %v2828_v14  ;;  %v938_v12 = vadd.f32 %v916_v4, %v2921_v32 }
 0xeb8   :  { %v2274_v54 = vmul.f32 -1.442695, %v918_v5  ;;  %v2275_v42 = vmul.f32 -1.442695, %v938_v12 }
 0xeba   :  { %2388 = vpow2.f32 %v2274_v54 }
 0xec0   :  { %v2389_v55 = vpop.eup %2388 }
 0xec1   :  { %v922_v59 = vadd.f32 1.0, %v2389_v55 }
 0xec3   :  { %2390 = vrcp.f32 %v922_v59  ;;  %v934_v48 = vand.u32 2147483648, %v922_v59  ;;  %v932_v17 = vand.u32 2147483647, %v922_v59  ;;  %vm928_vm4 = vweird.f32 %v922_v59 }
 0xec5   :  { %v935_v26 = vor.u32 1.1754944e-38, %v934_v48  ;;  %vm933_vm8 = vcmp.eq.f32.partialorder %v932_v17, 8.507059e+37 }
 0xec9   :  { %v2391_v60 = vpop.eup %2390 }
 0xeca   :  { %v924_v61 = vmul.f32 %v2391_v60, %v922_v59  ;;  %vm929_vm0 = vweird.f32 %v2391_v60 }
 0xecb   :  { %vm930_vm7 = vmor %vm928_vm4, %vm929_vm0 }
 0xecc   :  { %v925_v62 = vsub.f32 1.0, %v924_v61 }
 0xece   :  { %v926_v15 = vmul.f32 %v2391_v60, %v925_v62 }
 0xed0   :  { %v927_v18 = vadd.f32 %v2391_v60, %v926_v15 }
 0xed2   :  { %v931_v27 = vsel %vm930_vm7, %v2391_v60, %v927_v18 }
 0xed3   :  { %v936_v30 = vsel %vm933_vm8, %v935_v26, %v931_v27 }
 0xed4   :  { %v961_v10 = vmul.f32 %v959_v29, %v936_v30 }
 0xed6   :  { %963 = vrot.lane.b32.xlu0 %v961_v10, %s2544_s16 }
 0xf08   :  { %v619_v31 = vpop.permute.xlu1 %618 }
 0xf09   :  { %v621_v25 = vadd.f32 %v619_v31, %v2832_v35 }
 0xf0b   :  { %2392 = vtanh.f32 %v621_v25 }
 0xf11   :  { %v2393_v57 = vpop.eup %2392 }
 0xf12   :  { %625 = vrot.lane.b32.xlu1 %v2393_v57, %s2545_s2 }
 0xf48   :  { %v964_v33 = vpop.permute.xlu0 %963 }
 0xf49   :  { %v966_v3 = vadd.f32 %v964_v33, %v2921_v32 }
 0xf4b   :  { %2394 = vtanh.f32 %v966_v3 }
 0xf4c   :  { %2396 = vpow2.f32 %v2275_v42 }
 0xf51   :  { %v2395_v37 = vpop.eup %2394 }
 0xf52   :  { %970 = vrot.lane.b32.xlu0 %v2395_v37, %s2545_s2  ;;  %v2397_v43 = vpop.eup %2396 }
 0xf53   :  { %v942_v44 = vadd.f32 1.0, %v2397_v43 }
 0xf55   :  { %2398 = vrcp.f32 %v942_v44  ;;  %v954_v58 = vand.u32 2147483648, %v942_v44  ;;  %vm948_vm10 = vweird.f32 %v942_v44  ;;  %v952_v11 = vand.u32 2147483647, %v942_v44 }
 0xf57   :  { %v955_v50 = vor.u32 1.1754944e-38, %v954_v58  ;;  %vm953_vm12 = vcmp.eq.f32.partialorder %v952_v11, 8.507059e+37 }
 0xf5b   :  { %v2399_v36 = vpop.eup %2398 }
 0xf5c   :  { %v944_v45 = vmul.f32 %v2399_v36, %v942_v44  ;;  %vm949_vm9 = vweird.f32 %v2399_v36 }
 0xf5d   :  { %vm950_vm11 = vmor %vm948_vm10, %vm949_vm9 }
 0xf5e   :  { %v945_v7 = vsub.f32 1.0, %v944_v45 }
 0xf60   :  { %v946_v46 = vmul.f32 %v2399_v36, %v945_v7 }
 0xf62   :  { %v947_v47 = vadd.f32 %v2399_v36, %v946_v46 }
 0xf64   :  { %v951_v49 = vsel %vm950_vm11, %v2399_v36, %v947_v47 }
 0xf65   :  { %v956_v51 = vsel %vm953_vm12, %v955_v50, %v951_v49 }
 0xf66   :  { %v968_v1 = vsub.f32 1.0, %v956_v51  ;;  %v976_v54 = vmul.f32 %v974_v53, %v956_v51 }
 0xf84   :  { %v626_v39 = vpop.permute.xlu1 %625 }
 0xf85   :  { %v628_v41 = vmul.f32 %v626_v39, %v623_v38 }
 0xf87   :  { %v2927_v52 = vadd.f32 %v630_v40, %v628_v41 }
 0xf89   :  { %633 = vrot.lane.b32.xlu2 %v2927_v52, %s2545_s2 }
 0xfc4   :  { %v971_v21 = vpop.permute.xlu0 %970 }
 0xfc5   :  { %v973_v4 = vmul.f32 %v971_v21, %v968_v1 }
 0xfc7   :  { %v2936_v55 = vadd.f32 %v976_v54, %v973_v4 }
 0xfc9   :  { %v983_v59 = vrot.slane %v2936_v55, 4 }
 0xfe3   :  { %v634_v5 = vpop.permute.xlu2 %633 }
 0xfe4   :  { %636 = vst.msk [vmem:[#allocation2 + $0x18] sm:$0xf] %vm214_vm5, %v634_v5  ;;  %2266 = vmatmul.msk.f32.vlgmr.msrb.gmra.mxu3 %vm147_vm6, %v634_v5 }
 0xfe5   :  { %1364 = vmatpush.msrb.mxu3 %v2758_v2 }
 0xfe7   :  { %1365 = vmatpush.msrb.mxu3 %v2775_v22 }
 0xfe9   :  { %1366 = vmatpush.msrb.mxu3 %v2780_v23 }
 0xfeb   :  { %1367 = vmatpush.msrb.mxu3 %v2786_v24 }
 0xfec   :  { %2276 = vmatmul.msk.f32.vlgmr.msra.gmra.mxu3 %vm147_vm6, %v983_v59 }
0x1067   :  { %v2943_v60 = vpop.f32.mrf.mxu3 }
0x106f   :  { %v1003_v61 = vpop.f32.mrf.mxu3 }
0x1070   :  { %v1004_v62 = vadd.f32 %v2803_v28, %v1003_v61 }
0x1072   :  { %1050 = vrot.lane.b32.xlu2 %v1004_v62, %s2546_s1  ;;  %1007 = vrot.lane.b32.xlu1 %v1004_v62, %s2545_s2 }
0x10cc   :  { %v1051_v25 = vpop.permute.xlu2 %1050 }
0x10e4   :  { %v1008_v2 = vpop.permute.xlu1 %1007 }
0x10e5   :  { %v1010_v22 = vadd.f32 %v1008_v2, %v2828_v14  ;;  %v1030_v38 = vadd.f32 %v1008_v2, %v2921_v32 }
0x10e7   :  { %v2277_v48 = vmul.f32 -1.442695, %v1010_v22  ;;  %v2278_v39 = vmul.f32 -1.442695, %v1030_v38 }
0x10e9   :  { %2400 = vpow2.f32 %v2277_v48 }
0x10ef   :  { %v2401_v23 = vpop.eup %2400 }
0x10f0   :  { %v1014_v15 = vadd.f32 1.0, %v2401_v23 }
0x10f2   :  { %2402 = vrcp.f32 %v1014_v15  ;;  %v1026_v26 = vand.u32 2147483648, %v1014_v15  ;;  %v1024_v29 = vand.u32 2147483647, %v1014_v15  ;;  %vm1020_vm13 = vweird.f32 %v1014_v15 }
0x10f4   :  { %v1027_v10 = vor.u32 1.1754944e-38, %v1026_v26  ;;  %vm1025_vm15 = vcmp.eq.f32.partialorder %v1024_v29, 8.507059e+37 }
0x10f8   :  { %v2403_v24 = vpop.eup %2402 }
0x10f9   :  { %v1016_v17 = vmul.f32 %v2403_v24, %v1014_v15  ;;  %vm1021_vm5 = vweird.f32 %v2403_v24 }
0x10fa   :  { %vm1022_vm14 = vmor %vm1020_vm13, %vm1021_vm5 }
0x10fb   :  { %v1017_v18 = vsub.f32 1.0, %v1016_v17 }
0x10fd   :  { %v1018_v27 = vmul.f32 %v2403_v24, %v1017_v18 }
0x10ff   :  { %v1019_v30 = vadd.f32 %v2403_v24, %v1018_v27 }
0x1101   :  { %v1023_v31 = vsel %vm1022_vm14, %v2403_v24, %v1019_v30  ;;  %v2964_v30 = vadd.f32 %v2839_v8, %v2844_v16 }
0x1102   :  { %v1028_v14 = vsel %vm1025_vm15, %v1027_v10, %v1023_v31 }
0x1103   :  { %v1053_v57 = vmul.f32 %v1051_v25, %v1028_v14 }
0x1105   :  { %1055 = vrot.lane.b32.xlu0 %v1053_v57, %s2544_s16 }
0x1177   :  { %v1056_v33 = vpop.permute.xlu0 %1055 }
0x1178   :  { %v1058_v3 = vadd.f32 %v1056_v33, %v2921_v32 }
0x117a   :  { %2404 = vtanh.f32 %v1058_v3 }
0x117b   :  { %2406 = vpow2.f32 %v2278_v39 }
0x1180   :  { %v2405_v37 = vpop.eup %2404 }
0x1181   :  { %1062 = vrot.lane.b32.xlu1 %v2405_v37, %s2545_s2  ;;  %v2407_v40 = vpop.eup %2406 }
0x1182   :  { %v1034_v41 = vadd.f32 1.0, %v2407_v40 }
0x1184   :  { %2408 = vrcp.f32 %v1034_v41  ;;  %v1046_v45 = vand.u32 2147483648, %v1034_v41  ;;  %vm1040_vm2 = vweird.f32 %v1034_v41  ;;  %v1044_v7 = vand.u32 2147483647, %v1034_v41 }
0x1186   :  { %v1047_v47 = vor.u32 1.1754944e-38, %v1046_v45  ;;  %vm1045_vm0 = vcmp.eq.f32.partialorder %v1044_v7, 8.507059e+37 }
0x118a   :  { %v2409_v12 = vpop.eup %2408 }
0x118b   :  { %v1036_v42 = vmul.f32 %v2409_v12, %v1034_v41  ;;  %vm1041_vm1 = vweird.f32 %v2409_v12 }
0x118c   :  { %vm1042_vm3 = vmor %vm1040_vm2, %vm1041_vm1 }
0x118d   :  { %v1037_v43 = vsub.f32 1.0, %v1036_v42 }
0x118f   :  { %v1038_v44 = vmul.f32 %v2409_v12, %v1037_v43 }
0x1191   :  { %v1039_v36 = vadd.f32 %v2409_v12, %v1038_v44 }
0x1193   :  { %v1043_v46 = vsel %vm1042_vm3, %v2409_v12, %v1039_v36 }
0x1194   :  { %v1048_v58 = vsel %vm1045_vm0, %v1047_v47, %v1043_v46 }
0x1195   :  { %v1060_v32 = vsub.f32 1.0, %v1048_v58  ;;  %v1067_v49 = vmul.f32 %v1048_v58, %v983_v59 }
0x11f3   :  { %v1063_v11 = vpop.permute.xlu1 %1062 }
0x11f4   :  { %v1065_v50 = vmul.f32 %v1063_v11, %v1060_v32 }
0x11f6   :  { %v2953_v51 = vadd.f32 %v1067_v49, %v1065_v50 }
0x11f8   :  { %2279 = vmatmul.msk.f32.vlgmr.msra.gmra.mxu0 %vm147_vm6, %v2953_v51  ;;  %v1157_v45 = vrot.slane %v2953_v51, 4 }
0x1275   :  { %v1093_v21 = vpop.f32.mrf.mxu0 }
0x1276   :  { %v1094_v1 = vadd.f32 %v2803_v28, %v1093_v21 }
0x1278   :  { %v1097_v53 = vrot.slane %v1094_v1, 4 }
0x127a   :  { %1141 = vrot.lane.b32.xlu0 %v1097_v53, %s2546_s1  ;;  %1098 = vrot.lane.b32.xlu2 %v1097_v53, %s2545_s2 }
0x12d4   :  { %v1099_v4 = vpop.permute.xlu2 %1098 }
0x12d5   :  { %v1101_v5 = vadd.f32 %v1099_v4, %v2733_v19  ;;  %v1121_v14 = vadd.f32 %v1099_v4, %v2964_v30 }
0x12d7   :  { %v2280_v54 = vmul.f32 -1.442695, %v1101_v5  ;;  %v2281_v57 = vmul.f32 -1.442695, %v1121_v14 }
0x12d9   :  { %2410 = vpow2.f32 %v2280_v54 }
0x12df   :  { %v2411_v59 = vpop.eup %2410 }
0x12e0   :  { %v1105_v61 = vadd.f32 1.0, %v2411_v59 }
0x12e2   :  { %2412 = vrcp.f32 %v1105_v61  ;;  %v1117_v48 = vand.u32 2147483648, %v1105_v61  ;;  %v1115_v15 = vand.u32 2147483647, %v1105_v61  ;;  %vm1111_vm7 = vweird.f32 %v1105_v61 }
0x12e4   :  { %v1118_v17 = vor.u32 1.1754944e-38, %v1117_v48  ;;  %vm1116_vm9 = vcmp.eq.f32.partialorder %v1115_v15, 8.507059e+37 }
0x12e8   :  { %v2413_v62 = vpop.eup %2412 }
0x12e9   :  { %v1107_v2 = vmul.f32 %v2413_v62, %v1105_v61  ;;  %vm1112_vm4 = vweird.f32 %v2413_v62 }
0x12ea   :  { %vm1113_vm8 = vmor %vm1111_vm7, %vm1112_vm4 }
0x12eb   :  { %v1108_v22 = vsub.f32 1.0, %v1107_v2 }
0x12ec   :  { %v1142_v26 = vpop.permute.xlu0 %1141 }
0x12ed   :  { %v1109_v23 = vmul.f32 %v2413_v62, %v1108_v22 }
0x12ef   :  { %v1110_v24 = vadd.f32 %v2413_v62, %v1109_v23 }
0x12f1   :  { %v1114_v18 = vsel %vm1113_vm8, %v2413_v62, %v1110_v24 }
0x12f2   :  { %v1119_v27 = vsel %vm1116_vm9, %v1118_v17, %v1114_v18 }
0x12f3   :  { %v1144_v29 = vmul.f32 %v1142_v26, %v1119_v27 }
0x12f5   :  { %1146 = vrot.lane.b32.xlu1 %v1144_v29, %s2544_s16 }
0x1367   :  { %v1147_v10 = vpop.permute.xlu1 %1146 }
0x1368   :  { %v1149_v31 = vadd.f32 %v1147_v10, %v2964_v30 }
0x136a   :  { %2414 = vtanh.f32 %v1149_v31 }
0x136b   :  { %2416 = vpow2.f32 %v2281_v57 }
0x1370   :  { %v2415_v25 = vpop.eup %2414 }
0x1371   :  { %1153 = vrot.lane.b32.xlu2 %v2415_v25, %s2545_s2  ;;  %v2417_v33 = vpop.eup %2416 }
0x1372   :  { %v1125_v3 = vadd.f32 1.0, %v2417_v33 }
0x1374   :  { %2418 = vrcp.f32 %v1125_v3  ;;  %v1137_v41 = vand.u32 2147483648, %v1125_v3  ;;  %vm1131_vm11 = vweird.f32 %v1125_v3  ;;  %v1135_v12 = vand.u32 2147483647, %v1125_v3 }
0x1376   :  { %v1138_v43 = vor.u32 1.1754944e-38, %v1137_v41  ;;  %vm1136_vm5 = vcmp.eq.f32.partialorder %v1135_v12, 8.507059e+37 }
0x137a   :  { %v2419_v37 = vpop.eup %2418 }
0x137b   :  { %v1127_v38 = vmul.f32 %v2419_v37, %v1125_v3  ;;  %vm1132_vm10 = vweird.f32 %v2419_v37 }
0x137c   :  { %vm1133_vm12 = vmor %vm1131_vm11, %vm1132_vm10 }
0x137d   :  { %v1128_v39 = vsub.f32 1.0, %v1127_v38 }
0x137f   :  { %v1129_v40 = vmul.f32 %v2419_v37, %v1128_v39 }
0x1381   :  { %v1130_v8 = vadd.f32 %v2419_v37, %v1129_v40 }
0x1383   :  { %v1134_v42 = vsel %vm1133_vm12, %v2419_v37, %v1130_v8 }
0x1384   :  { %v1139_v44 = vsel %vm1136_vm5, %v1138_v43, %v1134_v42 }
0x1385   :  { %v1151_v36 = vsub.f32 1.0, %v1139_v44  ;;  %v1159_v46 = vmul.f32 %v1157_v45, %v1139_v44  ;;  %v2989_v44 = vld [vmem:[%s3340_s6] ss:$0 sm:$0xff] }
0x13cb   :  { %v1154_v7 = vpop.permute.xlu2 %1153 }
0x13cc   :  { %v1156_v47 = vmul.f32 %v1154_v7, %v1151_v36 }
0x13ce   :  { %v2970_v58 = vadd.f32 %v1159_v46, %v1156_v47 }
0x13d0   :  { %v1166_v32 = vrot.slane %v2970_v58, 4 }
0x13d2   :  { %2282 = vmatmul.msk.f32.vlgmr.msra.gmra.mxu1 %vm147_vm6, %v1166_v32 }
0x144f   :  { %v1186_v11 = vpop.f32.mrf.mxu1 }
0x1450   :  { %v1187_v49 = vadd.f32 %v2803_v28, %v1186_v11 }
0x1452   :  { %1233 = vrot.lane.b32.xlu1 %v1187_v49, %s2546_s1  ;;  %1190 = vrot.lane.b32.xlu0 %v1187_v49, %s2545_s2 }
0x14c4   :  { %v1191_v50 = vpop.permute.xlu0 %1190  ;;  %v1234_v23 = vpop.permute.xlu1 %1233 }
0x14c5   :  { %v1193_v21 = vadd.f32 %v1191_v50, %v2733_v19  ;;  %v1213_v26 = vadd.f32 %v1191_v50, %v2964_v30 }
0x14c7   :  { %v2283_v1 = vmul.f32 -1.442695, %v1193_v21  ;;  %v2284_v27 = vmul.f32 -1.442695, %v1213_v26 }
0x14c9   :  { %2420 = vpow2.f32 %v2283_v1 }
0x14cf   :  { %v2421_v53 = vpop.eup %2420 }
0x14d0   :  { %v1197_v4 = vadd.f32 1.0, %v2421_v53 }
0x14d2   :  { %2422 = vrcp.f32 %v1197_v4  ;;  %v1209_v61 = vand.u32 2147483648, %v1197_v4  ;;  %v1207_v2 = vand.u32 2147483647, %v1197_v4  ;;  %vm1203_vm14 = vweird.f32 %v1197_v4 }
0x14d4   :  { %v1210_v22 = vor.u32 1.1754944e-38, %v1209_v61  ;;  %vm1208_vm1 = vcmp.eq.f32.partialorder %v1207_v2, 8.507059e+37 }
0x14d8   :  { %v2423_v5 = vpop.eup %2422 }
0x14d9   :  { %v1199_v54 = vmul.f32 %v2423_v5, %v1197_v4  ;;  %vm1204_vm13 = vweird.f32 %v2423_v5 }
0x14da   :  { %vm1205_vm15 = vmor %vm1203_vm14, %vm1204_vm13 }
0x14db   :  { %v1200_v59 = vsub.f32 1.0, %v1199_v54 }
0x14dd   :  { %v1201_v62 = vmul.f32 %v2423_v5, %v1200_v59 }
0x14df   :  { %v1202_v28 = vadd.f32 %v2423_v5, %v1201_v62 }
0x14e1   :  { %v1206_v48 = vsel %vm1205_vm15, %v2423_v5, %v1202_v28  ;;  %v2998_v28 = vadd.f32 %v2837_v63, %v2844_v16 }
0x14e2   :  { %v1211_v19 = vsel %vm1208_vm1, %v1210_v22, %v1206_v48 }
0x14e3   :  { %v1236_v15 = vmul.f32 %v1234_v23, %v1211_v19 }
0x14e5   :  { %1238 = vrot.lane.b32.xlu2 %v1236_v15, %s2544_s16 }
0x153f   :  { %v1239_v24 = vpop.permute.xlu2 %1238 }
0x1540   :  { %v1241_v17 = vadd.f32 %v1239_v24, %v2964_v30 }
0x1542   :  { %2424 = vtanh.f32 %v1241_v17 }
0x1543   :  { %2426 = vpow2.f32 %v2284_v27 }
0x1548   :  { %v2425_v18 = vpop.eup %2424 }
0x1549   :  { %1245 = vrot.lane.b32.xlu0 %v2425_v18, %s2545_s2  ;;  %v2427_v29 = vpop.eup %2426 }
0x154a   :  { %v1217_v10 = vadd.f32 1.0, %v2427_v29 }
0x154c   :  { %2428 = vrcp.f32 %v1217_v10  ;;  %v1229_v3 = vand.u32 2147483648, %v1217_v10  ;;  %vm1223_vm3 = vweird.f32 %v1217_v10  ;;  %v1227_v37 = vand.u32 2147483647, %v1217_v10 }
0x154e   :  { %v1230_v39 = vor.u32 1.1754944e-38, %v1229_v3  ;;  %vm1228_vm4 = vcmp.eq.f32.partialorder %v1227_v37, 8.507059e+37 }
0x1552   :  { %v2429_v31 = vpop.eup %2428 }
0x1553   :  { %v1219_v25 = vmul.f32 %v2429_v31, %v1217_v10  ;;  %vm1224_vm2 = vweird.f32 %v2429_v31 }
0x1554   :  { %vm1225_vm0 = vmor %vm1223_vm3, %vm1224_vm2  ;;  %vm285_vm3 = vcmask 261124  }
0x1555   :  { %v1220_v14 = vsub.f32 1.0, %v1219_v25 }
0x1557   :  { %v1221_v57 = vmul.f32 %v2429_v31, %v1220_v14 }
0x1559   :  { %v1222_v33 = vadd.f32 %v2429_v31, %v1221_v57 }
0x155b   :  { %v1226_v38 = vsel %vm1225_vm0, %v2429_v31, %v1222_v33  ;;  %vm797_vm0 = vcmask 523524  }
0x155c   :  { %v1231_v40 = vsel %vm1228_vm4, %v1230_v39, %v1226_v38 }
0x155d   :  { %v1243_v30 = vsub.f32 1.0, %v1231_v40  ;;  %v1250_v41 = vmul.f32 %v1231_v40, %v1166_v32 }
0x15bb   :  { %v1246_v8 = vpop.permute.xlu0 %1245 }
0x15bc   :  { %v1248_v12 = vmul.f32 %v1246_v8, %v1243_v30 }
0x15be   :  { %v2982_v42 = vadd.f32 %v1250_v41, %v1248_v12 }
0x15c0   :  { %2285 = vmatmul.msk.f32.vlgmr.msrb.gmra.mxu2 %vm147_vm6, %v2982_v42  ;;  %v1340_v33 = vrot.slane %v2982_v42, 4 }
0x1643   :  { %v1276_v43 = vpop.f32.mrf.mxu2 }
0x1644   :  { %v1277_v36 = vadd.f32 %v2989_v44, %v1276_v43 }
0x1646   :  { %v1280_v45 = vrot.slane %v1277_v36, 4 }
0x1648   :  { %1324 = vrot.lane.b32.xlu2 %v1280_v45, %s2546_s1  ;;  %1281 = vrot.lane.b32.xlu1 %v1280_v45, %s2545_s2 }
0x16a2   :  { %v1325_v61 = vpop.permute.xlu2 %1324 }
0x16ba   :  { %v1282_v7 = vpop.permute.xlu1 %1281 }
0x16bb   :  { %v1284_v46 = vadd.f32 %v1282_v7, %v2695_v13  ;;  %v1304_v19 = vadd.f32 %v1282_v7, %v2998_v28 }
0x16bd   :  { %v2286_v47 = vmul.f32 -1.442695, %v1284_v46  ;;  %v2287_v15 = vmul.f32 -1.442695, %v1304_v19 }
0x16bf   :  { %2430 = vpow2.f32 %v2286_v47 }
0x16c5   :  { %v2431_v32 = vpop.eup %2430 }
0x16c6   :  { %v1288_v11 = vadd.f32 1.0, %v2431_v32 }
0x16c8   :  { %2432 = vrcp.f32 %v1288_v11  ;;  %v1300_v1 = vand.u32 2147483648, %v1288_v11  ;;  %v1298_v4 = vand.u32 2147483647, %v1288_v11  ;;  %vm1294_vm8 = vweird.f32 %v1288_v11 }
0x16ca   :  { %v1301_v54 = vor.u32 1.1754944e-38, %v1300_v1  ;;  %vm1299_vm10 = vcmp.eq.f32.partialorder %v1298_v4, 8.507059e+37 }
0x16ce   :  { %v2433_v49 = vpop.eup %2432 }
0x16cf   :  { %v1290_v50 = vmul.f32 %v2433_v49, %v1288_v11  ;;  %vm1295_vm7 = vweird.f32 %v2433_v49 }
0x16d0   :  { %vm1296_vm9 = vmor %vm1294_vm8, %vm1295_vm7 }
0x16d1   :  { %v1291_v21 = vsub.f32 1.0, %v1290_v50 }
0x16d3   :  { %v1292_v53 = vmul.f32 %v2433_v49, %v1291_v21 }
0x16d5   :  { %v1293_v5 = vadd.f32 %v2433_v49, %v1292_v53 }
0x16d7   :  { %v1297_v59 = vsel %vm1296_vm9, %v2433_v49, %v1293_v5 }
0x16d8   :  { %v1302_v62 = vsel %vm1299_vm10, %v1301_v54, %v1297_v59  ;;  %vm889_vm10 = vcmask 519424  }
0x16d9   :  { %v1327_v2 = vmul.f32 %v1325_v61, %v1302_v62 }
0x16db   :  { %1329 = vrot.lane.b32.xlu0 %v1327_v2, %s2544_s16 }
0x174d   :  { %v1330_v22 = vpop.permute.xlu0 %1329 }
0x174e   :  { %v1332_v48 = vadd.f32 %v1330_v22, %v2998_v28 }
0x1750   :  { %2434 = vtanh.f32 %v1332_v48  ;;  %v3027_v48 = vld [vmem:[%s3343_s9 + $0x18] sm:$0xff] }
0x1751   :  { %2436 = vpow2.f32 %v2287_v15  ;;  %1559 = vmatpush.msra.mxu2 %v3027_v48  ;;  %1623 = vmatpush.msra.mxu3 %v3027_v48  ;;  %v1458_v15 = vld [vmem:[%s3341_s7 + $0x70] sm:$0xff] }
0x1752   :  { %1497 = vmatpush.msrb.mxu0 %v1458_v15 }
0x1756   :  { %v2435_v23 = vpop.eup %2434 }
0x1757   :  { %1336 = vrot.lane.b32.xlu1 %v2435_v23, %s2545_s2  ;;  %v2437_v24 = vpop.eup %2436  ;;  %v3034_v23 = vld [vmem:[%s3343_s9 + $0x10] sm:$0xff] }
0x1758   :  { %v1308_v17 = vadd.f32 1.0, %v2437_v24  ;;  %1560 = vmatpush.msra.mxu2 %v3034_v23  ;;  %v1459_v24 = vld [vmem:[%s3341_s7 + $0x78] sm:$0xff]  ;;  %1624 = vmatpush.msra.mxu3 %v3034_v23 }
0x1759   :  { %1526 = vmatpush.msrb.mxu1 %v1459_v24 }
0x175a   :  { %2438 = vrcp.f32 %v1308_v17  ;;  %v1320_v16 = vand.u32 2147483648, %v1308_v17  ;;  %vm1314_vm12 = vweird.f32 %v1308_v17  ;;  %v1318_v10 = vand.u32 2147483647, %v1308_v17 }
0x175c   :  { %v1321_v25 = vor.u32 1.1754944e-38, %v1320_v16  ;;  %vm1319_vm13 = vcmp.eq.f32.partialorder %v1318_v10, 8.507059e+37  ;;  %v1452_v16 = vld [vmem:[%s3341_s7 + $0x40] sm:$0xff]  ;;  %v1453_v10 = vld [vmem:[%s3341_s7 + $0x48] sm:$0xff] }
0x1760   :  { %v2439_v18 = vpop.eup %2438 }
0x1761   :  { %v1310_v26 = vmul.f32 %v2439_v18, %v1308_v17  ;;  %vm1315_vm11 = vweird.f32 %v2439_v18  ;;  %v1456_v17 = vld [vmem:[%s3341_s7 + $0x60] sm:$0xff] }
0x1762   :  { %vm1316_vm5 = vmor %vm1314_vm12, %vm1315_vm11  ;;  %1498 = vmatpush.msrb.mxu0 %v1456_v17  ;;  %vm1476_vm11 = vcmask 523264  }
0x1763   :  { %v1311_v27 = vsub.f32 1.0, %v1310_v26  ;;  %v1457_v26 = vld [vmem:[%s3341_s7 + $0x68] sm:$0xff] }
0x1764   :  { %1527 = vmatpush.msrb.mxu1 %v1457_v26 }
0x1765   :  { %v1312_v29 = vmul.f32 %v2439_v18, %v1311_v27  ;;  %v1454_v27 = vld [vmem:[%s3341_s7 + $0x50] sm:$0xff] }
0x1766   :  { %1499 = vmatpush.msrb.mxu0 %v1454_v27 }
0x1767   :  { %v1313_v63 = vadd.f32 %v2439_v18, %v1312_v29 }
0x1768   :  { %1500 = vmatpush.msrb.mxu0 %v1452_v16 }
0x1769   :  { %v1317_v31 = vsel %vm1316_vm5, %v2439_v18, %v1313_v63  ;;  %v3055_v18 = vld [vmem:[%s3343_s9] sm:$0xff]  ;;  %v1455_v63 = vld [vmem:[%s3341_s7 + $0x58] sm:$0xff] }
0x176a   :  { %v1322_v14 = vsel %vm1319_vm13, %v1321_v25, %v1317_v31  ;;  %1528 = vmatpush.msrb.mxu1 %v1455_v63 }
0x176b   :  { %v1334_v57 = vsub.f32 1.0, %v1322_v14  ;;  %v1342_v37 = vmul.f32 %v1340_v33, %v1322_v14 }
0x176c   :  { %1529 = vmatpush.msrb.mxu1 %v1453_v10 }
0x17c9   :  { %v1337_v3 = vpop.permute.xlu1 %1336 }
0x17ca   :  { %v1339_v38 = vmul.f32 %v1337_v3, %v1334_v57 }
0x17cc   :  { %v3004_v39 = vadd.f32 %v1342_v37, %v1339_v38 }
0x17ce   :  { %v1349_v40 = vrot.slane %v3004_v39, 4 }
0x17d0   :  { %2288 = vmatmul.msk.f32.vlgmr.msrb.gmra.mxu3 %vm147_vm6, %v1349_v40 }
0x1853   :  { %v1369_v30 = vpop.f32.mrf.mxu3 }
0x1854   :  { %v1370_v8 = vadd.f32 %v2989_v44, %v1369_v30 }
0x1856   :  { %1416 = vrot.lane.b32.xlu0 %v1370_v8, %s2546_s1  ;;  %1373 = vrot.lane.b32.xlu2 %v1370_v8, %s2545_s2 }
0x185e   :  { %282 = vrot.lane.b32.xlu0 %v2714_v9, %s2545_s2 }
0x18b0   :  { %v1374_v41 = vpop.permute.xlu2 %1373 }
0x18b1   :  { %v1376_v12 = vadd.f32 %v1374_v41, %v2695_v13  ;;  %v1396_v61 = vadd.f32 %v1374_v41, %v2998_v28 }
0x18b3   :  { %v2289_v43 = vmul.f32 -1.442695, %v1376_v12  ;;  %v2290_v62 = vmul.f32 -1.442695, %v1396_v61 }
0x18b5   :  { %2440 = vpow2.f32 %v2289_v43 }
0x18bb   :  { %v2441_v36 = vpop.eup %2440 }
0x18bc   :  { %v1380_v45 = vadd.f32 1.0, %v2441_v36  ;;  %v1450_v36 = vld [vmem:[%s3341_s7 + $0x30] sm:$0xff] }
0x18bd   :  { %1501 = vmatpush.msrb.mxu0 %v1450_v36 }
0x18be   :  { %2442 = vrcp.f32 %v1380_v45  ;;  %v1392_v44 = vand.u32 2147483648, %v1380_v45  ;;  %v1390_v49 = vand.u32 2147483647, %v1380_v45  ;;  %vm1386_vm15 = vweird.f32 %v1380_v45 }
0x18c0   :  { %v1393_v9 = vor.u32 1.1754944e-38, %v1392_v44  ;;  %vm1391_vm2 = vcmp.eq.f32.partialorder %v1390_v49, 8.507059e+37  ;;  %v3122_v49 = vld [vmem:[%s3344_s10] ss:$0 sm:$0xff] }
0x18c4   :  { %v2443_v7 = vpop.eup %2442 }
0x18c5   :  { %v1382_v46 = vmul.f32 %v2443_v7, %v1380_v45  ;;  %vm1387_vm14 = vweird.f32 %v2443_v7  ;;  %v1451_v45 = vld [vmem:[%s3341_s7 + $0x38] sm:$0xff] }
0x18c6   :  { %vm1388_vm1 = vmor %vm1386_vm15, %vm1387_vm14  ;;  %1530 = vmatpush.msrb.mxu1 %v1451_v45 }
0x18c7   :  { %v1383_v47 = vsub.f32 1.0, %v1382_v46  ;;  %v1447_v46 = vld [vmem:[%s3341_s7 + $0x18] sm:$0xff] }
0x18c8   :  { %v1417_v32 = vpop.permute.xlu0 %1416 }
0x18c9   :  { %v1384_v11 = vmul.f32 %v2443_v7, %v1383_v47  ;;  %v1444_v47 = vld [vmem:[%s3341_s7] sm:$0xff] }
0x18cb   :  { %v1385_v50 = vadd.f32 %v2443_v7, %v1384_v11 }
0x18cd   :  { %v1389_v21 = vsel %vm1388_vm1, %v2443_v7, %v1385_v50  ;;  %v1448_v7 = vld [vmem:[%s3341_s7 + $0x20] sm:$0xff] }
0x18ce   :  { %v1394_v13 = vsel %vm1391_vm2, %v1393_v9, %v1389_v21  ;;  %1502 = vmatpush.msrb.mxu0 %v1448_v7  ;;  %v3129_v21 = vld [vmem:[%s3342_s8] sm:$0x3] }
0x18cf   :  { %v1419_v1 = vmul.f32 %v1417_v32, %v1394_v13  ;;  %v1445_v32 = vld [vmem:[%s3341_s7 + $0x8] sm:$0xff]  ;;  %v3132_v13 = vperm.slane %v3129_v21, 0 }
0x18d0   :  { %v283_v53 = vpop.permute.xlu0 %282 }
0x18d1   :  { %286 = vst.msk [vmem:[#allocation2] sm:$0xf0] %vm285_vm3, %v283_v53  ;;  %1421 = vrot.lane.b32.xlu1 %v1419_v1, %s2544_s16 }
0x18d9   :  { %1345 = vrot.lane.b32.xlu1 %v3004_v39, %s2546_s1  ;;  %v1449_v39 = vld [vmem:[%s3341_s7 + $0x28] sm:$0xff] }
0x18da   :  { %1531 = vmatpush.msrb.mxu1 %v1449_v39 }
0x18dc   :  { %1532 = vmatpush.msrb.mxu1 %v1447_v46 }
0x18de   :  { %1533 = vmatpush.msrb.mxu1 %v1445_v32 }
0x1943   :  { %v1422_v4 = vpop.permute.xlu1 %1421 }
0x1944   :  { %v1424_v5 = vadd.f32 %v1422_v4, %v2998_v28  ;;  %v3039_v28 = vld [vmem:[%s3343_s9 + $0x8] sm:$0xff] }
0x1945   :  { %1561 = vmatpush.msra.mxu2 %v3039_v28  ;;  %1625 = vmatpush.msra.mxu3 %v3039_v28 }
0x1946   :  { %2444 = vtanh.f32 %v1424_v5 }
0x1947   :  { %2446 = vpow2.f32 %v2290_v62  ;;  %1562 = vmatpush.msra.mxu2 %v3055_v18  ;;  %1626 = vmatpush.msra.mxu3 %v3055_v18 }
0x1948   :  { %1563 = vmatmul.f32.vlgmr.msra.gmra.mxu2 %v2543_v6 }
0x1949   :  { %1692 = vmatpush.msrb.mxu2 %v3027_v48  ;;  %1757 = vmatpush.msrb.mxu3 %v3027_v48 }
0x194b   :  { %v1346_v54 = vpop.permute.xlu1 %1345  ;;  %1693 = vmatpush.msrb.mxu2 %v3034_v23  ;;  %1758 = vmatpush.msrb.mxu3 %v3034_v23 }
0x194c   :  { %v2445_v59 = vpop.eup %2444  ;;  %1348 = vst.msk [vmem:[#allocation2] sm:$0xf0] %vm797_vm0, %v1346_v54 }
0x194d   :  { %1428 = vrot.lane.b32.xlu2 %v2445_v59, %s2545_s2  ;;  %v2447_v2 = vpop.eup %2446  ;;  %1694 = vmatpush.msrb.mxu2 %v3039_v28 }
0x194e   :  { %v1400_v22 = vadd.f32 1.0, %v2447_v2  ;;  %1759 = vmatpush.msrb.mxu3 %v3039_v28 }
0x194f   :  { %1695 = vmatpush.msrb.mxu2 %v3055_v18 }
0x1950   :  { %2448 = vrcp.f32 %v1400_v22  ;;  %1760 = vmatpush.msrb.mxu3 %v3055_v18  ;;  %v1412_v57 = vand.u32 2147483648, %v1400_v22  ;;  %vm1406_vm7 = vweird.f32 %v1400_v22  ;;  %v1410_v33 = vand.u32 2147483647, %v1400_v22 }
0x1951   :  { %1826 = vmatpush.msra.mxu2 %v3027_v48 }
0x1952   :  { %v1413_v37 = vor.u32 1.1754944e-38, %v1412_v57  ;;  %vm1411_vm9 = vcmp.eq.f32.partialorder %v1410_v33, 8.507059e+37 }
0x1953   :  { %1827 = vmatpush.msra.mxu2 %v3034_v23 }
0x1955   :  { %1828 = vmatpush.msra.mxu2 %v3039_v28 }
0x1956   :  { %v2449_v19 = vpop.eup %2448 }
0x1957   :  { %v1402_v29 = vmul.f32 %v2449_v19, %v1400_v22  ;;  %vm1407_vm4 = vweird.f32 %v2449_v19  ;;  %1829 = vmatpush.msra.mxu2 %v3055_v18 }
0x1958   :  { %vm1408_vm8 = vmor %vm1406_vm7, %vm1407_vm4 }
0x1959   :  { %v1403_v31 = vsub.f32 1.0, %v1402_v29 }
0x195b   :  { %v1404_v25 = vmul.f32 %v2449_v19, %v1403_v31 }
0x195d   :  { %v1405_v14 = vadd.f32 %v2449_v19, %v1404_v25 }
0x195f   :  { %v1409_v3 = vsel %vm1408_vm8, %v2449_v19, %v1405_v14 }
0x1960   :  { %v1414_v38 = vsel %vm1411_vm9, %v1413_v37, %v1409_v3 }
0x1961   :  { %v1426_v30 = vsub.f32 1.0, %v1414_v38  ;;  %v1433_v41 = vmul.f32 %v1414_v38, %v1349_v40  ;;  %v1446_v40 = vld [vmem:[%s3341_s7 + $0x10] sm:$0xff] }
0x1962   :  { %1503 = vmatpush.msrb.mxu0 %v1446_v40 }
0x1964   :  { %1504 = vmatpush.msrb.mxu0 %v1444_v47 }
0x19a7   :  { %v1429_v8 = vpop.permute.xlu2 %1428 }
0x19a8   :  { %v1431_v12 = vmul.f32 %v1429_v8, %v1426_v30 }
0x19aa   :  { %v1434_v43 = vadd.f32 %v1433_v41, %v1431_v12 }
0x19ac   :  { %1436 = vrot.lane.b32.xlu2 %v1434_v43, %s2546_s1 }
0x19cb   :  { %v1564_v50 = vpop.f32.mrf.mxu2 }
0x19cc   :  { %v1565_v9 = vadd.f32 %v3122_v49, %v1564_v50 }
0x19ce   :  { %1588 = vrot.lane.b32.xlu0 %v1565_v9, %s2544_s16 }
0x1a06   :  { %v1437_v44 = vpop.permute.xlu2 %1436 }
0x1a07   :  { %1439 = vst.msk [vmem:[#allocation2] sm:$0xf] %vm889_vm10, %v1437_v44 }
0x1a0e   :  { %v1440_v11 = vld [vmem:[#allocation2] sm:$0xff] }
0x1a0f   :  { %2291 = vmatmul.msk.f32.vlgmr.msrb.gmra.mxu0 %vm1476_vm11, %v1440_v11  ;;  %2295 = vmatmul.msk.f32.vlgmr.msrb.gmra.mxu1 %vm1476_vm11, %v1440_v11 }
0x1a40   :  { %v1589_v26 = vpop.permute.xlu0 %1588 }
0x1a8c   :  { %v1506_v1 = vpop.f32.mrf.mxu0  ;;  %v1535_v53 = vpop.f32.mrf.mxu1 }
0x1a8d   :  { %v3135_v4 = vadd.f32 %v1506_v1, %v3132_v13 }
0x1a8f   :  { %v1567_v5 = vadd.f32 %v1565_v9, %v3135_v4 }
0x1a91   :  { %v2299_v54 = vmul.f32 -1.442695, %v1567_v5 }
0x1a93   :  { %2450 = vpow2.f32 %v2299_v54 }
0x1a99   :  { %v2451_v59 = vpop.eup %2450 }
0x1a9a   :  { %v1571_v61 = vadd.f32 1.0, %v2451_v59 }
0x1a9c   :  { %2452 = vrcp.f32 %v1571_v61  ;;  %v1583_v19 = vand.u32 2147483648, %v1571_v61  ;;  %v1581_v24 = vand.u32 2147483647, %v1571_v61  ;;  %vm1577_vm5 = vweird.f32 %v1571_v61 }
0x1a9e   :  { %v1584_v27 = vor.u32 1.1754944e-38, %v1583_v19  ;;  %vm1582_vm14 = vcmp.eq.f32.partialorder %v1581_v24, 8.507059e+37 }
0x1aa2   :  { %v2453_v62 = vpop.eup %2452 }
0x1aa3   :  { %v1573_v2 = vmul.f32 %v2453_v62, %v1571_v61  ;;  %vm1578_vm12 = vweird.f32 %v2453_v62 }
0x1aa4   :  { %vm1579_vm13 = vmor %vm1577_vm5, %vm1578_vm12 }
0x1aa5   :  { %v1574_v22 = vsub.f32 1.0, %v1573_v2 }
0x1aa7   :  { %v1575_v15 = vmul.f32 %v2453_v62, %v1574_v22 }
0x1aa9   :  { %v1576_v17 = vadd.f32 %v2453_v62, %v1575_v15 }
0x1aab   :  { %v1580_v29 = vsel %vm1579_vm13, %v2453_v62, %v1576_v17 }
0x1aac   :  { %v1585_v63 = vsel %vm1582_vm14, %v1584_v27, %v1580_v29 }
0x1aad   :  { %v1591_v16 = vmul.f32 %v1589_v26, %v1585_v63  ;;  %v1598_v14 = vsub.f32 1.0, %v1585_v63  ;;  %v1604_v33 = vmul.f32 0.0, %v1585_v63 }
0x1aaf   :  { %1593 = vrot.lane.b32.xlu1 %v1591_v16, %s2544_s16 }
0x1b21   :  { %v1594_v10 = vpop.permute.xlu1 %1593 }
0x1b22   :  { %v1596_v31 = vadd.f32 %v1594_v10, %v3135_v4 }
0x1b24   :  { %2454 = vtanh.f32 %v1596_v31 }
0x1b2a   :  { %v2455_v25 = vpop.eup %2454 }
0x1b2b   :  { %1600 = vrot.lane.b32.xlu2 %v2455_v25, %s2545_s2 }
0x1b85   :  { %v1601_v57 = vpop.permute.xlu2 %1600 }
0x1b86   :  { %v1603_v3 = vmul.f32 %v1601_v57, %v1598_v14 }
0x1b88   :  { %v1605_v37 = vadd.f32 %v1604_v33, %v1603_v3 }
0x1b8a   :  { %1607 = vrot.lane.b32.xlu0 %v1605_v37, %s2545_s2  ;;  %v1670_v62 = vrot.slane %v1605_v37, 4 }
0x1bfc   :  { %v1608_v38 = vpop.permute.xlu0 %1607 }
0x1bfd   :  { %2300 = vmatmul.msk.f32.vlgmr.msra.gmra.mxu3 %vm147_vm6, %v1608_v38 }
0x1bfe   :  { %1891 = vmatpush.msra.mxu3 %v3027_v48 }
0x1c00   :  { %1892 = vmatpush.msra.mxu3 %v3034_v23 }
0x1c02   :  { %1893 = vmatpush.msra.mxu3 %v3039_v28 }
0x1c04   :  { %1894 = vmatpush.msra.mxu3 %v3055_v18 }
0x1c80   :  { %v1628_v30 = vpop.f32.mrf.mxu3 }
0x1c81   :  { %v1629_v8 = vadd.f32 %v3122_v49, %v1628_v30 }
0x1c83   :  { %v1632_v41 = vrot.slane %v1629_v8, 4 }
0x1c85   :  { %1654 = vrot.lane.b32.xlu1 %v1632_v41, %s2544_s16  ;;  %v1634_v12 = vadd.f32 %v1632_v41, %v3135_v4 }
0x1c87   :  { %v2301_v43 = vmul.f32 -1.442695, %v1634_v12 }
0x1c89   :  { %2456 = vpow2.f32 %v2301_v43 }
0x1c8f   :  { %v2457_v36 = vpop.eup %2456 }
0x1c90   :  { %v1638_v45 = vadd.f32 1.0, %v2457_v36 }
0x1c92   :  { %2458 = vrcp.f32 %v1638_v45  ;;  %v1650_v32 = vand.u32 2147483648, %v1638_v45  ;;  %vm1644_vm1 = vweird.f32 %v1638_v45  ;;  %v1648_v44 = vand.u32 2147483647, %v1638_v45 }
0x1c94   :  { %v1651_v50 = vor.u32 1.1754944e-38, %v1650_v32  ;;  %vm1649_vm4 = vcmp.eq.f32.partialorder %v1648_v44, 8.507059e+37 }
0x1c98   :  { %v2459_v7 = vpop.eup %2458 }
0x1c99   :  { %v1640_v39 = vmul.f32 %v2459_v7, %v1638_v45  ;;  %vm1645_vm15 = vweird.f32 %v2459_v7 }
0x1c9a   :  { %vm1646_vm2 = vmor %vm1644_vm1, %vm1645_vm15 }
0x1c9b   :  { %v1641_v40 = vsub.f32 1.0, %v1640_v39 }
0x1c9d   :  { %v1642_v46 = vmul.f32 %v2459_v7, %v1641_v40 }
0x1c9f   :  { %v1643_v47 = vadd.f32 %v2459_v7, %v1642_v46 }
0x1ca1   :  { %v1647_v11 = vsel %vm1646_vm2, %v2459_v7, %v1643_v47 }
0x1ca2   :  { %v1652_v1 = vsel %vm1649_vm4, %v1651_v50, %v1647_v11 }
0x1ca3   :  { %v1664_v2 = vsub.f32 1.0, %v1652_v1  ;;  %v1672_v15 = vmul.f32 %v1670_v62, %v1652_v1 }
0x1cf7   :  { %v1655_v9 = vpop.permute.xlu1 %1654 }
0x1cf8   :  { %v1657_v53 = vmul.f32 %v1655_v9, %v1652_v1 }
0x1cfa   :  { %1659 = vrot.lane.b32.xlu2 %v1657_v53, %s2544_s16 }
0x1d02   :  { %423 = vrot.lane.b32.xlu2 %v2766_v20, %s2545_s2 }
0x1d54   :  { %v1660_v5 = vpop.permute.xlu2 %1659 }
0x1d55   :  { %v1662_v54 = vadd.f32 %v1660_v5, %v3135_v4 }
0x1d57   :  { %2460 = vtanh.f32 %v1662_v54 }
0x1d5c   :  { %v424_v59 = vpop.permute.xlu2 %423 }
0x1d5d   :  { %v2461_v61 = vpop.eup %2460  ;;  %426 = vst.msk [vmem:[#allocation2 + $0x8] sm:$0xf0] %vm285_vm3, %v424_v59 }
0x1d5e   :  { %1666 = vrot.lane.b32.xlu0 %v2461_v61, %s2545_s2 }
0x1d66   :  { %1162 = vrot.lane.b32.xlu0 %v2970_v58, %s2546_s1 }
0x1dd0   :  { %v1667_v22 = vpop.permute.xlu0 %1666 }
0x1dd1   :  { %v1669_v19 = vmul.f32 %v1667_v22, %v1664_v2 }
0x1dd3   :  { %v1673_v24 = vadd.f32 %v1672_v15, %v1669_v19 }
0x1dd5   :  { %v1675_v20 = vrot.slane %v1673_v24, 4 }
0x1dd7   :  { %1676 = vrot.lane.b32.xlu1 %v1675_v20, %s2545_s2 }
0x1dd8   :  { %v1163_v4 = vpop.permute.xlu0 %1162 }
0x1dd9   :  { %1165 = vst.msk [vmem:[#allocation2 + $0x8] sm:$0xf0] %vm797_vm0, %v1163_v4 }
0x1ddf   :  { %1253 = vrot.lane.b32.xlu1 %v2982_v42, %s2546_s1 }
0x1e49   :  { %v1677_v17 = vpop.permute.xlu1 %1676 }
0x1e4a   :  { %2302 = vmatmul.msk.f32.vlgmr.msrb.gmra.mxu2 %vm147_vm6, %v1677_v17 }
0x1e4b   :  { %1960 = vmatpush.msrb.mxu2 %v3027_v48 }
0x1e4d   :  { %1961 = vmatpush.msrb.mxu2 %v3034_v23 }
0x1e4f   :  { %1962 = vmatpush.msrb.mxu2 %v3039_v28 }
0x1e51   :  { %v1254_v58 = vpop.permute.xlu1 %1253  ;;  %1963 = vmatpush.msrb.mxu2 %v3055_v18 }
0x1e52   :  { %1256 = vst.msk [vmem:[#allocation2 + $0x8] sm:$0xf] %vm889_vm10, %v1254_v58 }
0x1e59   :  { %v1441_v26 = vld [vmem:[#allocation2 + $0x8] sm:$0xff] }
0x1e5a   :  { %2292 = vmatmul.msk.f32.gmra.mxu0 %vm1476_vm11, %v1441_v26  ;;  %2296 = vmatmul.msk.f32.gmra.mxu1 %vm1476_vm11, %v1441_v26 }
0x1ecd   :  { %v1697_v42 = vpop.f32.mrf.mxu2 }
0x1ece   :  { %v1698_v27 = vadd.f32 %v3122_v49, %v1697_v42 }
0x1ed0   :  { %1721 = vrot.lane.b32.xlu2 %v1698_v27, %s2544_s16 }
0x1ed7   :  { %v1537_v29 = vpop.f32.mrf.mxu1  ;;  %v1509_v63 = vpop.f32.mrf.mxu0 }
0x1ed8   :  { %v3173_v16 = vadd.f32 %v1509_v63, %v3132_v13 }
0x1eda   :  { %v1700_v10 = vadd.f32 %v1698_v27, %v3173_v16 }
0x1edc   :  { %v2303_v31 = vmul.f32 -1.442695, %v1700_v10 }
0x1ede   :  { %2462 = vpow2.f32 %v2303_v31 }
0x1ee4   :  { %v2463_v25 = vpop.eup %2462 }
0x1ee5   :  { %v1704_v14 = vadd.f32 1.0, %v2463_v25 }
0x1ee7   :  { %2464 = vrcp.f32 %v1704_v14  ;;  %v1716_v30 = vand.u32 2147483648, %v1704_v14  ;;  %vm1710_vm8 = vweird.f32 %v1704_v14  ;;  %v1714_v8 = vand.u32 2147483647, %v1704_v14 }
0x1ee9   :  { %v1717_v12 = vor.u32 1.1754944e-38, %v1716_v30  ;;  %vm1715_vm12 = vcmp.eq.f32.partialorder %v1714_v8, 8.507059e+37 }
0x1eed   :  { %v2465_v57 = vpop.eup %2464 }
0x1eee   :  { %v1706_v33 = vmul.f32 %v2465_v57, %v1704_v14  ;;  %vm1711_vm7 = vweird.f32 %v2465_v57 }
0x1eef   :  { %vm1712_vm9 = vmor %vm1710_vm8, %vm1711_vm7 }
0x1ef0   :  { %v1707_v3 = vsub.f32 1.0, %v1706_v33 }
0x1ef2   :  { %v1708_v37 = vmul.f32 %v2465_v57, %v1707_v3 }
0x1ef4   :  { %v1709_v38 = vadd.f32 %v2465_v57, %v1708_v37 }
0x1ef6   :  { %v1713_v41 = vsel %vm1712_vm9, %v2465_v57, %v1709_v38 }
0x1ef7   :  { %v1718_v36 = vsel %vm1715_vm12, %v1717_v12, %v1713_v41 }
0x1ef8   :  { %v1731_v46 = vsub.f32 1.0, %v1718_v36  ;;  %v1738_v32 = vmul.f32 %v1718_v36, %v1675_v20 }
0x1f2a   :  { %v1722_v43 = vpop.permute.xlu2 %1721 }
0x1f2b   :  { %v1724_v45 = vmul.f32 %v1722_v43, %v1718_v36 }
0x1f2d   :  { %1726 = vrot.lane.b32.xlu0 %v1724_v45, %s2544_s16 }
0x1f9f   :  { %v1727_v7 = vpop.permute.xlu0 %1726 }
0x1fa0   :  { %v1729_v39 = vadd.f32 %v1727_v7, %v3173_v16 }
0x1fa2   :  { %2466 = vtanh.f32 %v1729_v39 }
0x1fa8   :  { %v2467_v40 = vpop.eup %2466 }
0x1fa9   :  { %1733 = vrot.lane.b32.xlu1 %v2467_v40, %s2545_s2 }
0x201b   :  { %v1734_v47 = vpop.permute.xlu1 %1733 }
0x201c   :  { %v1736_v44 = vmul.f32 %v1734_v47, %v1731_v46 }
0x201e   :  { %v1739_v11 = vadd.f32 %v1738_v32, %v1736_v44 }
0x2020   :  { %1741 = vrot.lane.b32.xlu2 %v1739_v11, %s2545_s2  ;;  %v1804_v27 = vrot.slane %v1739_v11, 4 }
0x207a   :  { %v1742_v50 = vpop.permute.xlu2 %1741 }
0x207b   :  { %2304 = vmatmul.msk.f32.vlgmr.msrb.gmra.mxu3 %vm147_vm6, %v1742_v50 }
0x207c   :  { %2025 = vmatpush.msrb.mxu3 %v3027_v48 }
0x207e   :  { %2026 = vmatpush.msrb.mxu3 %v3034_v23 }
0x2080   :  { %2027 = vmatpush.msrb.mxu3 %v3039_v28 }
0x2082   :  { %2028 = vmatpush.msrb.mxu3 %v3055_v18 }
0x20fe   :  { %v1762_v9 = vpop.f32.mrf.mxu3 }
0x20ff   :  { %v1763_v1 = vadd.f32 %v3122_v49, %v1762_v9 }
0x2101   :  { %v1766_v53 = vrot.slane %v1763_v1, 4 }
0x2103   :  { %1788 = vrot.lane.b32.xlu0 %v1766_v53, %s2544_s16  ;;  %v1768_v5 = vadd.f32 %v1766_v53, %v3173_v16 }
0x2105   :  { %v2305_v54 = vmul.f32 -1.442695, %v1768_v5  ;;  %v2515_v5 = vld [vmem:[%s3338_s4] ss:$0 sm:$0xff] }
0x2107   :  { %2468 = vpow2.f32 %v2305_v54  ;;  %v657_v54 = vadd.f32 %v2515_v5, %v2943_v60 }
0x210d   :  { %v2469_v59 = vpop.eup %2468 }
0x210e   :  { %v1772_v61 = vadd.f32 1.0, %v2469_v59  ;;  %v660_v59 = vrot.slane %v657_v54, 4 }
0x2110   :  { %2470 = vrcp.f32 %v1772_v61  ;;  %v1784_v18 = vand.u32 2147483648, %v1772_v61  ;;  %vm1778_vm13 = vweird.f32 %v1772_v61  ;;  %v1782_v22 = vand.u32 2147483647, %v1772_v61 }
0x2112   :  { %v1785_v15 = vor.u32 1.1754944e-38, %v1784_v18  ;;  %vm1783_vm15 = vcmp.eq.f32.partialorder %v1782_v22, 8.507059e+37  ;;  %v662_v18 = vadd.f32 %v660_v59, %v2832_v35 }
0x2114   :  { %v2267_v22 = vmul.f32 -1.442695, %v662_v18  ;;  %v1469_v18 = vld [vmem:[%s3345_s11 + $0x18] sm:$0xff] }
0x2116   :  { %v2471_v48 = vpop.eup %2470 }
0x2117   :  { %v1774_v62 = vmul.f32 %v2471_v48, %v1772_v61  ;;  %vm1779_vm5 = vweird.f32 %v2471_v48 }
0x2118   :  { %vm1780_vm14 = vmor %vm1778_vm13, %vm1779_vm5 }
0x2119   :  { %v1775_v23 = vsub.f32 1.0, %v1774_v62 }
0x211b   :  { %v1776_v2 = vmul.f32 %v2471_v48, %v1775_v23 }
0x211d   :  { %v1777_v28 = vadd.f32 %v2471_v48, %v1776_v2 }
0x211f   :  { %v1781_v19 = vsel %vm1780_vm14, %v2471_v48, %v1777_v28 }
0x2120   :  { %v1786_v20 = vsel %vm1783_vm15, %v1785_v15, %v1781_v19 }
0x2121   :  { %v1798_v29 = vsub.f32 1.0, %v1786_v20  ;;  %v1806_v31 = vmul.f32 %v1804_v27, %v1786_v20 }
0x2175   :  { %v1789_v24 = vpop.permute.xlu0 %1788 }
0x2176   :  { %v1791_v4 = vmul.f32 %v1789_v24, %v1786_v20 }
0x2178   :  { %1793 = vrot.lane.b32.xlu1 %v1791_v4, %s2544_s16 }
0x2180   :  { %563 = vrot.lane.b32.xlu1 %v2889_v56, %s2545_s2 }
0x21ea   :  { %v1794_v17 = vpop.permute.xlu1 %1793 }
0x21eb   :  { %v1796_v58 = vadd.f32 %v1794_v17, %v3173_v16 }
0x21ed   :  { %2472 = vtanh.f32 %v1796_v58 }
0x21f2   :  { %v564_v26 = vpop.permute.xlu1 %563 }
0x21f3   :  { %v2473_v42 = vpop.eup %2472  ;;  %566 = vst.msk [vmem:[#allocation2 + $0x10] sm:$0xf0] %vm285_vm3, %v564_v26 }
0x21f4   :  { %1800 = vrot.lane.b32.xlu2 %v2473_v42, %s2545_s2 }
0x21fc   :  { %979 = vrot.lane.b32.xlu2 %v2936_v55, %s2546_s1 }
0x224e   :  { %v1801_v63 = vpop.permute.xlu2 %1800 }
0x224f   :  { %v1803_v10 = vmul.f32 %v1801_v63, %v1798_v29 }
0x2251   :  { %v1807_v25 = vadd.f32 %v1806_v31, %v1803_v10 }
0x2253   :  { %v1809_v56 = vrot.slane %v1807_v25, 4 }
0x2255   :  { %1810 = vrot.lane.b32.xlu0 %v1809_v56, %s2545_s2 }
0x2256   :  { %v980_v16 = vpop.permute.xlu2 %979 }
0x2257   :  { %982 = vst.msk [vmem:[#allocation2 + $0x10] sm:$0xf0] %vm797_vm0, %v980_v16 }
0x225d   :  { %1070 = vrot.lane.b32.xlu0 %v2953_v51, %s2546_s1 }
0x22c7   :  { %v1811_v14 = vpop.permute.xlu0 %1810 }
0x22c8   :  { %2306 = vmatmul.msk.f32.vlgmr.msra.gmra.mxu2 %vm147_vm6, %v1811_v14 }
0x22c9   :  { %2091 = vmatpush.msra.mxu2 %v1469_v18 }
0x22cf   :  { %v1071_v57 = vpop.permute.xlu0 %1070 }
0x22d0   :  { %1073 = vst.msk [vmem:[#allocation2 + $0x10] sm:$0xf] %vm889_vm10, %v1071_v57 }
0x22d7   :  { %v1442_v55 = vld [vmem:[#allocation2 + $0x10] sm:$0xff] }
0x22d8   :  { %2293 = vmatmul.msk.f32.gmra.mxu0 %vm1476_vm11, %v1442_v55  ;;  %2297 = vmatmul.msk.f32.gmra.mxu1 %vm1476_vm11, %v1442_v55 }
0x234b   :  { %v1831_v33 = vpop.f32.mrf.mxu2 }
0x234c   :  { %v1832_v3 = vadd.f32 %v3122_v49, %v1831_v33 }
0x234e   :  { %1855 = vrot.lane.b32.xlu1 %v1832_v3, %s2544_s16 }
0x2355   :  { %v1539_v37 = vpop.f32.mrf.mxu1  ;;  %v1512_v38 = vpop.f32.mrf.mxu0 }
0x2356   :  { %v3207_v51 = vadd.f32 %v1512_v38, %v3132_v13 }
0x2358   :  { %v1834_v30 = vadd.f32 %v1832_v3, %v3207_v51 }
0x235a   :  { %v2307_v8 = vmul.f32 -1.442695, %v1834_v30 }
0x235c   :  { %2474 = vpow2.f32 %v2307_v8 }
0x2362   :  { %v2475_v41 = vpop.eup %2474 }
0x2363   :  { %v1838_v12 = vadd.f32 1.0, %v2475_v41 }
0x2365   :  { %2476 = vrcp.f32 %v1838_v12  ;;  %v1850_v40 = vand.u32 2147483648, %v1838_v12  ;;  %vm1844_vm2 = vweird.f32 %v1838_v12  ;;  %v1848_v46 = vand.u32 2147483647, %v1838_v12 }
0x2367   :  { %v1851_v32 = vor.u32 1.1754944e-38, %v1850_v40  ;;  %vm1849_vm7 = vcmp.eq.f32.partialorder %v1848_v46, 8.507059e+37 }
0x236b   :  { %v2477_v43 = vpop.eup %2476 }
0x236c   :  { %v1840_v36 = vmul.f32 %v2477_v43, %v1838_v12  ;;  %vm1845_vm1 = vweird.f32 %v2477_v43 }
0x236d   :  { %vm1846_vm4 = vmor %vm1844_vm2, %vm1845_vm1 }
0x236e   :  { %v1841_v45 = vsub.f32 1.0, %v1840_v36 }
0x2370   :  { %v1842_v7 = vmul.f32 %v2477_v43, %v1841_v45 }
0x2372   :  { %v1843_v39 = vadd.f32 %v2477_v43, %v1842_v7 }
0x2374   :  { %v1847_v47 = vsel %vm1846_vm4, %v2477_v43, %v1843_v39 }
0x2375   :  { %v1852_v11 = vsel %vm1849_vm7, %v1851_v32, %v1847_v47 }
0x2376   :  { %v1865_v61 = vsub.f32 1.0, %v1852_v11  ;;  %v1872_v62 = vmul.f32 %v1852_v11, %v1809_v56 }
0x23c0   :  { %v1856_v44 = vpop.permute.xlu1 %1855 }
0x23c1   :  { %v1858_v50 = vmul.f32 %v1856_v44, %v1852_v11 }
0x23c3   :  { %1860 = vrot.lane.b32.xlu2 %v1858_v50, %s2544_s16 }
0x241d   :  { %v1861_v9 = vpop.permute.xlu2 %1860 }
0x241e   :  { %v1863_v1 = vadd.f32 %v1861_v9, %v3207_v51  ;;  %v698_v9 = vrot.slane %v2927_v52, 4 }
0x2420   :  { %2478 = vtanh.f32 %v1863_v1 }
0x2421   :  { %2480 = vpow2.f32 %v2267_v22  ;;  %v1468_v22 = vld [vmem:[%s3345_s11 + $0x10] sm:$0xff] }
0x2422   :  { %2092 = vmatpush.msra.mxu2 %v1468_v22 }
0x2426   :  { %v2479_v53 = vpop.eup %2478 }
0x2427   :  { %1867 = vrot.lane.b32.xlu0 %v2479_v53, %s2545_s2  ;;  %v2481_v19 = vpop.eup %2480 }
0x2428   :  { %v666_v15 = vadd.f32 1.0, %v2481_v19  ;;  %v1466_v19 = vld [vmem:[%s3345_s11] sm:$0xff] }
0x242a   :  { %2482 = vrcp.f32 %v666_v15  ;;  %v678_v27 = vand.u32 2147483648, %v666_v15  ;;  %vm672_vm9 = vweird.f32 %v666_v15  ;;  %v676_v29 = vand.u32 2147483647, %v666_v15 }
0x242c   :  { %v679_v56 = vor.u32 1.1754944e-38, %v678_v27  ;;  %vm677_vm5 = vcmp.eq.f32.partialorder %v676_v29, 8.507059e+37 }
0x242f   :  { %682 = vrot.lane.b32.xlu0 %v660_v59, %s2544_s16 }
0x2430   :  { %v2483_v60 = vpop.eup %2482 }
0x2431   :  { %v668_v24 = vmul.f32 %v2483_v60, %v666_v15  ;;  %vm673_vm8 = vweird.f32 %v2483_v60 }
0x2432   :  { %vm674_vm12 = vmor %vm672_vm9, %vm673_vm8 }
0x2433   :  { %v669_v20 = vsub.f32 1.0, %v668_v24 }
0x2435   :  { %v670_v4 = vmul.f32 %v2483_v60, %v669_v20 }
0x2437   :  { %v671_v26 = vadd.f32 %v2483_v60, %v670_v4 }
0x2439   :  { %v675_v10 = vsel %vm674_vm12, %v2483_v60, %v671_v26 }
0x243a   :  { %v680_v16 = vsel %vm677_vm5, %v679_v56, %v675_v10 }
0x243b   :  { %v692_v1 = vsub.f32 1.0, %v680_v16 }
0x2499   :  { %v1868_v48 = vpop.permute.xlu0 %1867 }
0x249a   :  { %v1870_v23 = vmul.f32 %v1868_v48, %v1865_v61 }
0x249c   :  { %v1873_v2 = vadd.f32 %v1872_v62, %v1870_v23 }
0x249e   :  { %1875 = vrot.lane.b32.xlu1 %v1873_v2, %s2545_s2  ;;  %v1938_v43 = vrot.slane %v1873_v2, 4 }
0x24a1   :  { %v683_v25 = vpop.permute.xlu0 %682 }
0x24a2   :  { %v685_v14 = vmul.f32 %v683_v25, %v680_v16 }
0x2510   :  { %v1876_v28 = vpop.permute.xlu1 %1875 }
0x2511   :  { %2308 = vmatmul.msk.f32.vlgmr.msra.gmra.mxu3 %vm147_vm6, %v1876_v28 }
0x2594   :  { %v1896_v17 = vpop.f32.mrf.mxu3 }
0x2595   :  { %v1897_v58 = vadd.f32 %v3122_v49, %v1896_v17 }
0x2597   :  { %v1900_v42 = vrot.slane %v1897_v58, 4 }
0x2599   :  { %v1902_v63 = vadd.f32 %v1900_v42, %v3207_v51  ;;  %1922 = vrot.lane.b32.xlu2 %v1900_v42, %s2544_s16 }
0x259b   :  { %v2309_v31 = vmul.f32 -1.442695, %v1902_v63 }
0x259d   :  { %2484 = vpow2.f32 %v2309_v31 }
0x25a1   :  { %687 = vrot.lane.b32.xlu2 %v685_v14, %s2544_s16 }
0x25a3   :  { %v2485_v57 = vpop.eup %2484 }
0x25a4   :  { %v1906_v55 = vadd.f32 1.0, %v2485_v57 }
0x25a6   :  { %2486 = vrcp.f32 %v1906_v55  ;;  %v1918_v38 = vand.u32 2147483648, %v1906_v55  ;;  %v1916_v8 = vand.u32 2147483647, %v1906_v55  ;;  %vm1912_vm14 = vweird.f32 %v1906_v55 }
0x25a8   :  { %v1919_v12 = vor.u32 1.1754944e-38, %v1918_v38  ;;  %vm1917_vm1 = vcmp.eq.f32.partialorder %v1916_v8, 8.507059e+37 }
0x25ac   :  { %v2487_v33 = vpop.eup %2486 }
0x25ad   :  { %v1908_v3 = vmul.f32 %v2487_v33, %v1906_v55  ;;  %vm1913_vm13 = vweird.f32 %v2487_v33 }
0x25ae   :  { %vm1914_vm15 = vmor %vm1912_vm14, %vm1913_vm13 }
0x25af   :  { %v1909_v37 = vsub.f32 1.0, %v1908_v3 }
0x25b1   :  { %v1910_v30 = vmul.f32 %v2487_v33, %v1909_v37 }
0x25b3   :  { %v1911_v41 = vadd.f32 %v2487_v33, %v1910_v30 }
0x25b5   :  { %v1915_v36 = vsel %vm1914_vm15, %v2487_v33, %v1911_v41  ;;  %v2326_v33 = vld [vmem:[%s3346_s12] ss:$0 sm:$0xff] }
0x25b6   :  { %v1920_v45 = vsel %vm1917_vm1, %v1919_v12, %v1915_v36 }
0x25b7   :  { %v1940_v7 = vmul.f32 %v1938_v43, %v1920_v45  ;;  %v1932_v59 = vsub.f32 1.0, %v1920_v45 }
0x25f3   :  { %v1923_v39 = vpop.permute.xlu2 %1922 }
0x25f4   :  { %v1925_v40 = vmul.f32 %v1923_v39, %v1920_v45 }
0x25f6   :  { %1927 = vrot.lane.b32.xlu1 %v1925_v40, %s2544_s16 }
0x25fb   :  { %v688_v46 = vpop.permute.xlu2 %687 }
0x25fc   :  { %v690_v47 = vadd.f32 %v688_v46, %v2832_v35  ;;  %v700_v35 = vmul.f32 %v698_v9, %v680_v16 }
0x25fe   :  { %2488 = vtanh.f32 %v690_v47 }
0x2604   :  { %v2489_v32 = vpop.eup %2488 }
0x2605   :  { %694 = vrot.lane.b32.xlu1 %v2489_v32, %s2545_s2 }
0x260d   :  { %794 = vrot.lane.b32.xlu1 %v2860_v0, %s2546_s1 }
0x2668   :  { %v1928_v44 = vpop.permute.xlu1 %1927 }
0x2669   :  { %v1930_v11 = vadd.f32 %v1928_v44, %v3207_v51 }
0x266b   :  { %2490 = vtanh.f32 %v1930_v11 }
0x2671   :  { %v2491_v50 = vpop.eup %2490 }
0x2672   :  { %1934 = vrot.lane.b32.xlu0 %v2491_v50, %s2545_s2 }
0x2677   :  { %v695_v53 = vpop.permute.xlu1 %694 }
0x2678   :  { %v697_v5 = vmul.f32 %v695_v53, %v692_v1 }
0x267a   :  { %v701_v54 = vadd.f32 %v700_v35, %v697_v5 }
0x267c   :  { %703 = vrot.lane.b32.xlu0 %v701_v54, %s2545_s2 }
0x267f   :  { %v795_v52 = vpop.permute.xlu1 %794 }
0x26e4   :  { %v1935_v61 = vpop.permute.xlu0 %1934 }
0x26e5   :  { %v1937_v48 = vmul.f32 %v1935_v61, %v1932_v59 }
0x26e7   :  { %v3234_v0 = vadd.f32 %v1940_v7, %v1937_v48 }
0x26e9   :  { %v1943_v51 = vrot.slane %v3234_v0, 4 }
0x26eb   :  { %1944 = vrot.lane.b32.xlu2 %v1943_v51, %s2545_s2 }
0x26ee   :  { %v704_v62 = vpop.permute.xlu0 %703 }
0x26ef   :  { %706 = vst.msk [vmem:[#allocation2 + $0x18] sm:$0xf0] %vm285_vm3, %v704_v62 }
0x26f0   :  { %798 = vst.msk [vmem:[#allocation2 + $0x18] sm:$0xf0] %vm797_vm0, %v795_v52 }
0x26f3   :  { %886 = vrot.lane.b32.xlu2 %v2903_v34, %s2546_s1  ;;  %v1467_v34 = vld [vmem:[%s3345_s11 + $0x8] sm:$0xff] }
0x26f4   :  { %2093 = vmatpush.msra.mxu2 %v1467_v34 }
0x26f6   :  { %2094 = vmatpush.msra.mxu2 %v1466_v19 }
0x2745   :  { %v1945_v23 = vpop.permute.xlu2 %1944 }
0x2746   :  { %2310 = vmatmul.msk.f32.vlgmr.msrb.gmra.mxu2 %vm147_vm6, %v1945_v23 }
0x274d   :  { %v887_v2 = vpop.permute.xlu2 %886 }
0x274e   :  { %890 = vst.msk [vmem:[#allocation2 + $0x18] sm:$0xf] %vm889_vm10, %v887_v2  ;;  %2095 = vmatmul.f32.vlgmr.msra.gmra.mxu2 %v2543_v6 }
0x2755   :  { %v1443_v28 = vld [vmem:[#allocation2 + $0x18] sm:$0xff] }
0x2756   :  { %2294 = vmatmul.msk.f32.gmra.mxu0 %vm1476_vm11, %v1443_v28  ;;  %2298 = vmatmul.msk.f32.gmra.mxu1 %vm1476_vm11, %v1443_v28 }
0x27c9   :  { %v1965_v15 = vpop.f32.mrf.mxu2 }
0x27ca   :  { %v1966_v60 = vadd.f32 %v3122_v49, %v1965_v15 }
0x27cc   :  { %1989 = vrot.lane.b32.xlu0 %v1966_v60, %s2544_s16 }
0x27d1   :  { %v2096_v3 = vpop.f32.mrf.mxu2 }
0x27d2   :  { %v2097_v38 = vadd.f32 %v2326_v33, %v2096_v3 }
0x27d3   :  { %v1515_v24 = vpop.f32.mrf.mxu0 }
0x27d4   :  { %v3264_v20 = vadd.f32 %v1515_v24, %v3132_v13  ;;  %v2100_v30 = vrot.slane %v2097_v38, 4 }
0x27d6   :  { %v1968_v4 = vadd.f32 %v1966_v60, %v3264_v20 }
0x27d8   :  { %v2311_v17 = vmul.f32 -1.442695, %v1968_v4 }
0x27da   :  { %2492 = vpow2.f32 %v2311_v17 }
0x27e0   :  { %v2493_v58 = vpop.eup %2492 }
0x27e1   :  { %v1972_v26 = vadd.f32 1.0, %v2493_v58 }
0x27e3   :  { %2494 = vrcp.f32 %v1972_v26  ;;  %v1984_v6 = vand.u32 2147483648, %v1972_v26  ;;  %vm1978_vm0 = vweird.f32 %v1972_v26  ;;  %v1982_v31 = vand.u32 2147483647, %v1972_v26 }
0x27e5   :  { %v1985_v13 = vor.u32 1.1754944e-38, %v1984_v6  ;;  %vm1983_vm11 = vcmp.eq.f32.partialorder %v1982_v31, 8.507059e+37 }
0x27e9   :  { %v2495_v42 = vpop.eup %2494 }
0x27ea   :  { %v1974_v27 = vmul.f32 %v2495_v42, %v1972_v26  ;;  %vm1979_vm3 = vweird.f32 %v2495_v42  ;;  %v2169_v26 = vld [vmem:[%s3347_s13 + $0x38] sm:$0xff] }
0x27eb   :  { %vm1980_vm10 = vmor %vm1978_vm0, %vm1979_vm3  ;;  %2213 = vmatpush.msra.mxu0 %v2169_v26  ;;  %vm2227_vm0 = vcmask 60416  }
0x27ec   :  { %v1975_v29 = vsub.f32 1.0, %v1974_v27  ;;  %v1541_v27 = vpop.f32.mrf.mxu1 }
0x27ee   :  { %v1976_v63 = vmul.f32 %v2495_v42, %v1975_v29 }
0x27f0   :  { %v1977_v10 = vadd.f32 %v2495_v42, %v1976_v63 }
0x27f2   :  { %v1981_v25 = vsel %vm1980_vm10, %v2495_v42, %v1977_v10  ;;  %v1473_v42 = vperm.slane %v3129_v21, 1 }
0x27f3   :  { %v1986_v56 = vsel %vm1983_vm11, %v1985_v13, %v1981_v25 }
0x27f4   :  { %v1999_v8 = vsub.f32 1.0, %v1986_v56  ;;  %v2006_v12 = vmul.f32 %v1986_v56, %v1943_v51  ;;  %v1542_v29 = vadd.f32 %v1541_v27, %v1473_v42 }
0x283e   :  { %v1990_v16 = vpop.permute.xlu0 %1989 }
0x283f   :  { %v1992_v14 = vmul.f32 %v1990_v16, %v1986_v56 }
0x2841   :  { %1994 = vrot.lane.b32.xlu1 %v1992_v14, %s2544_s16 }
0x28b3   :  { %v1995_v57 = vpop.permute.xlu1 %1994 }
0x28b4   :  { %v1997_v55 = vadd.f32 %v1995_v57, %v3264_v20  ;;  %v2168_v57 = vld [vmem:[%s3347_s13 + $0x30] sm:$0xff] }
0x28b5   :  { %2214 = vmatpush.msra.mxu0 %v2168_v57 }
0x28b6   :  { %2496 = vtanh.f32 %v1997_v55  ;;  %v2167_v55 = vld [vmem:[%s3347_s13 + $0x28] sm:$0xff] }
0x28b7   :  { %2215 = vmatpush.msra.mxu0 %v2167_v55 }
0x28bc   :  { %v2497_v37 = vpop.eup %2496 }
0x28bd   :  { %2001 = vrot.lane.b32.xlu2 %v2497_v37, %s2545_s2 }
0x28c5   :  { %2101 = vrot.lane.b32.xlu2 %v2100_v30, %s2545_s2 }
0x2917   :  { %v2002_v41 = vpop.permute.xlu2 %2001 }
0x2918   :  { %v2004_v43 = vmul.f32 %v2002_v41, %v1999_v8 }
0x291a   :  { %v3276_v36 = vadd.f32 %v2006_v12, %v2004_v43 }
0x291c   :  { %2009 = vrot.lane.b32.xlu0 %v3276_v36, %s2545_s2 }
0x291f   :  { %v2102_v32 = vpop.permute.xlu2 %2101 }
0x2920   :  { %v2104_v44 = vadd.f32 %v2102_v32, %v3264_v20  ;;  %v2124_v56 = vadd.f32 %v2102_v32, %v1542_v29 }
0x2922   :  { %v2314_v11 = vmul.f32 -1.442695, %v2104_v44  ;;  %v2315_v16 = vmul.f32 -1.442695, %v2124_v56  ;;  %v2072_v44 = vrot.slane %v3276_v36, 4  ;;  %v2163_v36 = vld [vmem:[%s3347_s13 + $0x8] sm:$0xff] }
0x298e   :  { %v2010_v45 = vpop.permute.xlu0 %2009 }
0x298f   :  { %2312 = vmatmul.msk.f32.vlgmr.msrb.gmra.mxu3 %vm147_vm6, %v2010_v45 }
0x2a12   :  { %v2030_v7 = vpop.f32.mrf.mxu3 }
0x2a13   :  { %v2031_v39 = vadd.f32 %v3122_v49, %v2030_v7 }
0x2a15   :  { %v2034_v40 = vrot.slane %v2031_v39, 4 }
0x2a17   :  { %2056 = vrot.lane.b32.xlu1 %v2034_v40, %s2544_s16  ;;  %v2036_v46 = vadd.f32 %v2034_v40, %v3264_v20 }
0x2a19   :  { %v2313_v47 = vmul.f32 -1.442695, %v2036_v46 }
0x2a1b   :  { %2498 = vpow2.f32 %v2313_v47 }
0x2a1c   :  { %2500 = vpow2.f32 %v2314_v11 }
0x2a1f   :  { %2144 = vrot.lane.b32.xlu1 %v2100_v30, %s2546_s1 }
0x2a21   :  { %v2499_v50 = vpop.eup %2498 }
0x2a22   :  { %v2040_v9 = vadd.f32 1.0, %v2499_v50  ;;  %v2501_v1 = vpop.eup %2500 }
0x2a23   :  { %v2108_v53 = vadd.f32 1.0, %v2501_v1 }
0x2a24   :  { %2502 = vrcp.f32 %v2040_v9  ;;  %v2052_v51 = vand.u32 2147483648, %v2040_v9  ;;  %vm2046_vm4 = vweird.f32 %v2040_v9  ;;  %v2050_v62 = vand.u32 2147483647, %v2040_v9 }
0x2a25   :  { %2504 = vrcp.f32 %v2108_v53  ;;  %v2120_v19 = vand.u32 2147483648, %v2108_v53  ;;  %vm2114_vm12 = vweird.f32 %v2108_v53  ;;  %v2118_v15 = vand.u32 2147483647, %v2108_v53 }
0x2a26   :  { %v2053_v2 = vor.u32 1.1754944e-38, %v2052_v51  ;;  %vm2051_vm8 = vcmp.eq.f32.partialorder %v2050_v62, 8.507059e+37  ;;  %v2327_v51 = vld [vmem:[%s3348_s14] ss:$0 sm:$0xff] }
0x2a27   :  { %v2121_v24 = vor.u32 1.1754944e-38, %v2120_v19  ;;  %vm2119_vm13 = vcmp.eq.f32.partialorder %v2118_v15, 8.507059e+37 }
0x2a2a   :  { %v2503_v49 = vpop.eup %2502 }
0x2a2b   :  { %v2042_v5 = vmul.f32 %v2503_v49, %v2040_v9  ;;  %v2505_v54 = vpop.eup %2504  ;;  %vm2047_vm2 = vweird.f32 %v2503_v49 }
0x2a2c   :  { %v2110_v61 = vmul.f32 %v2505_v54, %v2108_v53  ;;  %vm2048_vm7 = vmor %vm2046_vm4, %vm2047_vm2  ;;  %vm2115_vm9 = vweird.f32 %v2505_v54 }
0x2a2d   :  { %v2043_v35 = vsub.f32 1.0, %v2042_v5  ;;  %vm2116_vm5 = vmor %vm2114_vm12, %vm2115_vm9  ;;  %v2165_v5 = vld [vmem:[%s3347_s13 + $0x18] sm:$0xff] }
0x2a2e   :  { %v2111_v0 = vsub.f32 1.0, %v2110_v61  ;;  %2188 = vmatpush.msra.mxu3 %v2165_v5 }
0x2a2f   :  { %v2044_v59 = vmul.f32 %v2503_v49, %v2043_v35  ;;  %v2164_v35 = vld [vmem:[%s3347_s13 + $0x10] sm:$0xff] }
0x2a30   :  { %v2112_v23 = vmul.f32 %v2505_v54, %v2111_v0  ;;  %2189 = vmatpush.msra.mxu3 %v2164_v35 }
0x2a31   :  { %v2045_v48 = vadd.f32 %v2503_v49, %v2044_v59 }
0x2a32   :  { %v2113_v34 = vadd.f32 %v2505_v54, %v2112_v23  ;;  %2190 = vmatpush.msra.mxu3 %v2163_v36 }
0x2a33   :  { %v2049_v52 = vsel %vm2048_vm7, %v2503_v49, %v2045_v48  ;;  %v2516_v48 = vld [vmem:[%s3334_s0] sm:$0xff] }
0x2a34   :  { %v3286_v18 = vsel %vm2051_vm8, %v2053_v2, %v2049_v52  ;;  %v2117_v60 = vsel %vm2116_vm5, %v2505_v54, %v2113_v34  ;;  %v2162_v54 = vld [vmem:[%s3347_s13] sm:$0xff] }
0x2a35   :  { %v2122_v17 = vsel %vm2119_vm13, %v2121_v24, %v2117_v60  ;;  %v2066_v11 = vsub.f32 1.0, %v3286_v18  ;;  %v2074_v1 = vmul.f32 %v2072_v44, %v3286_v18  ;;  %2191 = vmatpush.msra.mxu3 %v2162_v54 }
0x2a89   :  { %v2057_v28 = vpop.permute.xlu1 %2056 }
0x2a8a   :  { %v2059_v22 = vmul.f32 %v2057_v28, %v3286_v18 }
0x2a8c   :  { %2061 = vrot.lane.b32.xlu0 %v2059_v22, %s2544_s16 }
0x2a91   :  { %v2145_v4 = vpop.permute.xlu1 %2144 }
0x2a92   :  { %v2147_v58 = vmul.f32 %v2145_v4, %v2122_v17 }
0x2a94   :  { %2149 = vrot.lane.b32.xlu2 %v2147_v58, %s2544_s16 }
0x2aee   :  { %v2150_v63 = vpop.permute.xlu2 %2149 }
0x2aef   :  { %v2152_v10 = vadd.f32 %v2150_v63, %v1542_v29 }
0x2af1   :  { %2506 = vtanh.f32 %v2152_v10 }
0x2af7   :  { %v2507_v6 = vpop.eup %2506 }
0x2af8   :  { %2156 = vrot.lane.b32.xlu2 %v2507_v6, %s2545_s2 }
0x2afe   :  { %v2062_v31 = vpop.permute.xlu0 %2061 }
0x2aff   :  { %v2064_v25 = vadd.f32 %v2062_v31, %v3264_v20  ;;  %v2166_v20 = vld [vmem:[%s3347_s13 + $0x20] sm:$0xff] }
0x2b00   :  { %2216 = vmatpush.msra.mxu0 %v2166_v20 }
0x2b01   :  { %2508 = vtanh.f32 %v2064_v25 }
0x2b02   :  { %2510 = vpow2.f32 %v2315_v16 }
0x2b07   :  { %v2509_v13 = vpop.eup %2508 }
0x2b08   :  { %2068 = vrot.lane.b32.xlu0 %v2509_v13, %s2545_s2  ;;  %v2511_v21 = vpop.eup %2510 }
0x2b09   :  { %v2128_v14 = vadd.f32 1.0, %v2511_v21 }
0x2b0b   :  { %2512 = vrcp.f32 %v2128_v14  ;;  %v2140_v8 = vand.u32 2147483648, %v2128_v14  ;;  %vm2134_vm15 = vweird.f32 %v2128_v14  ;;  %v2138_v41 = vand.u32 2147483647, %v2128_v14 }
0x2b0d   :  { %v2141_v43 = vor.u32 1.1754944e-38, %v2140_v8  ;;  %vm2139_vm3 = vcmp.eq.f32.partialorder %v2138_v41, 8.507059e+37 }
0x2b11   :  { %v2513_v33 = vpop.eup %2512 }
0x2b12   :  { %v2130_v3 = vmul.f32 %v2513_v33, %v2128_v14  ;;  %vm2135_vm14 = vweird.f32 %v2513_v33 }
0x2b13   :  { %vm2136_vm1 = vmor %vm2134_vm15, %vm2135_vm14 }
0x2b14   :  { %v2131_v37 = vsub.f32 1.0, %v2130_v3 }
0x2b16   :  { %v2132_v38 = vmul.f32 %v2513_v33, %v2131_v37 }
0x2b18   :  { %v2133_v30 = vadd.f32 %v2513_v33, %v2132_v38 }
0x2b1a   :  { %v2137_v12 = vsel %vm2136_vm1, %v2513_v33, %v2133_v30 }
0x2b1b   :  { %v2142_v45 = vsel %vm2139_vm3, %v2141_v43, %v2137_v12 }
0x2b1c   :  { %v2154_v7 = vsub.f32 1.0, %v2142_v45  ;;  %v2160_v40 = vmul.f32 0.0, %v2142_v45 }
0x2b52   :  { %v2157_v39 = vpop.permute.xlu2 %2156 }
0x2b53   :  { %v2159_v46 = vmul.f32 %v2157_v39, %v2154_v7 }
0x2b55   :  { %v2161_v47 = vadd.f32 %v2160_v40, %v2159_v46 }
0x2b57   :  { %v2198_v32 = vrot.slane %v2161_v47, 4 }
0x2b59   :  { %2317 = vmatmul.msk.f32.vlgmr.msra.gmra.mxu0 %vm147_vm6, %v2198_v32 }
0x2b7a   :  { %v2069_v50 = vpop.permute.xlu0 %2068 }
0x2b7b   :  { %v2071_v9 = vmul.f32 %v2069_v50, %v2066_v11 }
0x2b7d   :  { %v2075_v53 = vadd.f32 %v2074_v1, %v2071_v9 }
0x2b7f   :  { %v2171_v49 = vrot.slane %v2075_v53, 4 }
0x2b81   :  { %2172 = vrot.lane.b32.xlu1 %v2171_v49, %s2545_s2 }
0x2bd6   :  { %v2218_v62 = vpop.f32.mrf.mxu0 }
0x2bf3   :  { %v2173_v59 = vpop.permute.xlu1 %2172 }
0x2bf4   :  { %2316 = vmatmul.msk.f32.vlgmr.msra.gmra.mxu3 %vm147_vm6, %v2173_v59 }
0x2c77   :  { %v2193_v61 = vpop.f32.mrf.mxu3 }
0x2c78   :  { %v2196_v0 = vadd.f32 %v2516_v48, %v2193_v61 }
0x2c7a   :  { %v2221_v52 = vadd.f32 %v2218_v62, %v2196_v0 }
0x2c7c   :  { %v2226_v23 = vadd.f32 %v2327_v51, %v2221_v52 }
0x2c7e   :  { %2228 = vst.msk [vmem:[#allocation3] sm:$0xf] %vm2227_vm0, %v2226_v23 }
0x2c7f   :  { %2239 = dma.vmem_to_hbm [thread:$0]  %s2235_s17, 64, %s2237_s18, [#allocation4]  }
0x2c80   :  { %2541 = dma.done.wait [#allocation4], 64  }
0x2c81   :  { %2542 = vsyncadd [#allocation4], 4294967232 }
0x2c82   :  { %2244 = vsyncpa [#allocation4], 1 }

</bundles_post_ra>
